<compile_context>
chip_gen: v6e
topology: v6e:2x2x1
jax: 0.10.0
libtpu: 0.0.40
codegen_flags: <defaults>
</compile_context>

<pallas_src>
import functools

import numpy as np
import jax
import jax.numpy as jnp
from jax.experimental import pallas as pl
from jax.experimental.pallas import tpu as pltpu

_NG = 10                              # GroupNorm groups == hard-coded reshape factor
_HI = jax.lax.Precision.HIGHEST


# -----------------------------------------------------------------------------
# In-kernel helpers (VPU / EUP ops only)
# -----------------------------------------------------------------------------
def _erf(v):
    """Abramowitz & Stegun 7.1.26 rational erf approximation (|err| <= 1.5e-7).
    The divide is replaced by an EUP approximate reciprocal (per review)."""
    a1, a2, a3, a4, a5 = 0.254829592, -0.284496736, 1.421413741, -1.453152027, 1.061405429
    p = 0.3275911
    sgn = jnp.where(v >= 0.0, 1.0, -1.0)
    av = jnp.abs(v)
    t = pl.reciprocal(1.0 + p * av, approx=True)
    poly = ((((a5 * t + a4) * t + a3) * t + a2) * t + a1) * t
    return sgn * (1.0 - poly * jnp.exp(-(av * av)))


def _gelu_exact(v):
    """nn.GELU() default (approximate='none'): 0.5 * v * (1 + erf(v / sqrt(2)))."""
    return 0.5 * v * (1.0 + _erf(v * 0.7071067811865476))


# -----------------------------------------------------------------------------
# Fused kernel: GroupNorm -> (perm + eval-BN folded) 1x1 conv -> GELU -> +residual
# Channels-first layout: activations are (bb, C, HW); no in/out transposes.
# -----------------------------------------------------------------------------
def _fused_kernel(x_ref, vec_ref, gt_ref, g_ref, w_ref, out_ref, *, num_groups, gn_eps):
    """x_ref  : (bb, C, HW) f32  activations (also the residual)
       vec_ref: (C, 3)      f32  columns: GroupNorm gamma, GroupNorm beta, fused conv bias
       gt_ref : (NG, C)     f32  one-hot group->channel matrix   (group reduce)
       g_ref  : (C, NG)     f32  its transpose                   (group broadcast)
       w_ref  : (C, C)      bf16 1x1 conv weight with channel permutation + eval-BN folded
       out_ref: (bb, C, HW) f32
    """
    bb, c, hw = x_ref.shape
    inv_n = 1.0 / float((c // num_groups) * hw)

    gamma = vec_ref[:, 0:1]                       # (C, 1)
    beta = vec_ref[:, 1:2]                        # (C, 1)
    conv_bias = vec_ref[:, 2:3]                   # (C, 1)
    gt = gt_ref[...]                              # (NG, C)
    g = g_ref[...]                                # (C, NG)
    w = w_ref[...]                                # (C, C) bf16

    # bb is a static, tiny block-batch (1 on multi-TC chips, B on single-TC chips).
    for b in range(bb):
        x = x_ref[b]                              # (C, HW) f32

        # ---- GroupNorm: single-pass stats via one-hot group matmuls ----
        s1 = jnp.dot(gt, x, preferred_element_type=jnp.float32)        # (NG, HW)
        s2 = jnp.dot(gt, x * x, preferred_element_type=jnp.float32)    # (NG, HW)
        mean_g = jnp.sum(s1, axis=1, keepdims=True) * inv_n            # (NG, 1)
        ex2_g = jnp.sum(s2, axis=1, keepdims=True) * inv_n             # (NG, 1)
        var_g = ex2_g - mean_g * mean_g
        inv_std_g = jax.lax.rsqrt(var_g + gn_eps)                      # (NG, 1)
        mean_c = jnp.dot(g, mean_g, preferred_element_type=jnp.float32)      # (C, 1)
        inv_std_c = jnp.dot(g, inv_std_g, preferred_element_type=jnp.float32)  # (C, 1)
        scale_c = gamma * inv_std_c
        shift_c = beta - mean_c * scale_c
        xn = x * scale_c + shift_c                                     # one FMA pass

        # ---- 1x1 conv (channel perm + eval BN folded), bf16 MXU, f32 accumulate ----
        y = jnp.dot(w, xn.astype(jnp.bfloat16),
                    preferred_element_type=jnp.float32) + conv_bias    # (C, HW)

        # ---- exact-erf GELU + residual ----
        out_ref[b] = x + _gelu_exact(y)


# -----------------------------------------------------------------------------
# Wrapper
# -----------------------------------------------------------------------------
def _conv_channel_source(C, H, W):
    """perm[new_ch] = original channel that ends up at position new_ch of the
    tensor fed to conv_fuse.  Obtained by replaying the module's literal
    reshape/permute chain (each Mamba block replaced by the identity it
    provably is) on channel indices; asserted to be a pure channel permutation
    (spatial positions preserved)."""
    cg, hw = C // _NG, H * W
    t = (np.arange(C, dtype=np.int64)[None, :, None, None]
         * np.ones((1, 1, H, W), dtype=np.int64))
    t = t.reshape(1, _NG, cg, H, W).reshape(1, _NG, cg * H * W)                      # temporal in
    t = t.reshape(1, _NG, cg, hw).transpose(0, 2, 1, 3).reshape(1, cg, _NG * hw)     # spectral in
    t = t.reshape(1, _NG, cg, hw).reshape(1, C, hw).transpose(0, 2, 1)               # spatial in
    t = t.transpose(0, 2, 1).reshape(1, C, H, W)                                     # conv_fuse input
    perm = t[0, :, 0, 0]
    assert np.all(t == perm[None, :, None, None]), "expected a pure channel permutation"
    return perm


def _parallel_batch_grid_default():
    """True where a 'parallel' grid axis maps to >1 TensorCore (v4/v5p megacore,
    v7x).  On single-TC generations (v2/v3 cores, v5e, v6e) a batch grid is just
    a serial loop with per-step overhead, so we merge the batch instead."""
    try:
        kind = jax.devices()[0].device_kind.lower()
    except Exception:
        return True
    single_tc = ("v2", "v3", "v5e", "v5 lite", "v5lite", "v6e", "v6 lite", "v6lite")
    return not any(m in kind for m in single_tc)


def temporal_spatial_mamba_block(x, params, *, gn_eps=1e-5, bn_eps=1e-5, batch_grid=None):
    """Pallas forward of TemporalSpatialMambaBlock (eval-mode dropout / BN)."""
    B, C, H, W = x.shape
    HW = H * W
    assert C % _NG == 0
    CG = C // _NG

    # Native layout across the kernel boundary: (B,C,H,W) -> (B,C,HW) is a
    # trailing-dim collapse (no copy).  No transposes in the wrapper.
    x3 = x.reshape(B, C, HW)

    # Fold (a) the net channel permutation of the reshape chain and
    # (b) eval-mode BatchNorm2d into the 1x1 conv weight & bias.
    perm = _conv_channel_source(C, H, W)          # perm[new] = orig
    inv = np.argsort(perm)                        # inv[orig] = new
    bn_scale = params["bn_w"] * jax.lax.rsqrt(params["bn_rv"] + bn_eps)          # (C,)
    w_cf = (params["conv_w"][:, inv] * bn_scale[:, None]).astype(jnp.bfloat16)   # (C_out, C_in_orig)
    b_cf = (params["conv_b"] - params["bn_rm"]) * bn_scale + params["bn_b"]
    vecs = jnp.stack([params["gn_w"], params["gn_b"], b_cf], axis=1)             # (C, 3)

    g_np = (np.arange(C)[:, None] // CG == np.arange(_NG)[None, :]).astype(np.float32)
    g_mat = jnp.asarray(g_np)                     # (C, NG)
    gt_mat = jnp.asarray(g_np.T)                  # (NG, C)

    # Batch strategy: one item per grid step (parallel) on multi-TC chips,
    # whole batch in one step on single-TC chips (saves per-step overhead).
    if batch_grid is None:
        batch_grid = _parallel_batch_grid_default()
    merged = (not batch_grid) and (B * C * HW * 4 <= (8 << 20))
    bb = B if merged else 1
    grid = (B // bb,)

    kernel = functools.partial(_fused_kernel, num_groups=_NG, gn_eps=gn_eps)
    flops = 2 * B * C * C * HW + 4 * B * _NG * C * HW
    bytes_accessed = 2 * B * C * HW * 4 + C * C * 2 + C * 3 * 4 + 2 * C * _NG * 4

    out3 = pl.pallas_call(
        kernel,
        out_shape=jax.ShapeDtypeStruct((B, C, HW), jnp.float32),
        grid_spec=pl.GridSpec(
            grid=grid,
            in_specs=[
                pl.BlockSpec((bb, C, HW), lambda i: (i, 0, 0)),   # activations / residual
                pl.BlockSpec((C, 3), lambda i: (0, 0)),           # gamma / beta / fused bias
                pl.BlockSpec((_NG, C), lambda i: (0, 0)),         # group one-hot (reduce)
                pl.BlockSpec((C, _NG), lambda i: (0, 0)),         # group one-hot (broadcast)
                pl.BlockSpec((C, C), lambda i: (0, 0)),           # fused conv weight (bf16)
            ],
            out_specs=pl.BlockSpec((bb, C, HW), lambda i: (i, 0, 0)),
        ),
        compiler_params=pltpu.CompilerParams(
            dimension_semantics=("arbitrary",) if merged else ("parallel",)),
        cost_estimate=pl.CostEstimate(flops=flops,
                                      transcendentals=2 * B * C * HW,
                                      bytes_accessed=bytes_accessed),
    )(x3, vecs, gt_mat, g_mat, w_cf)

    return out3.reshape(B, C, H, W)


# -----------------------------------------------------------------------------
# Synthetic parameters (only the live parameters of the collapsed forward)
# -----------------------------------------------------------------------------
def init_params(key, C):
    ks = jax.random.split(key, 8)
    s_c = 1.0 / float(np.sqrt(C))
    return dict(
        gn_w=1.0 + 0.1 * jax.random.normal(ks[0], (C,), jnp.float32),
        gn_b=0.1 * jax.random.normal(ks[1], (C,), jnp.float32),
        conv_w=jax.random.uniform(ks[2], (C, C), jnp.float32, -s_c, s_c),
        conv_b=jax.random.uniform(ks[3], (C,), jnp.float32, -s_c, s_c),
        bn_w=1.0 + 0.1 * jax.random.normal(ks[4], (C,), jnp.float32),
        bn_b=0.1 * jax.random.normal(ks[5], (C,), jnp.float32),
        bn_rm=0.1 * jax.random.normal(ks[6], (C,), jnp.float32),
        bn_rv=1.0 + jax.random.uniform(ks[7], (C,), jnp.float32, 0.0, 0.5),
    )


# -----------------------------------------------------------------------------
# Check 1: SimplifiedMambaBlock is exactly the identity (literal small-shape ref)
# -----------------------------------------------------------------------------
def _small_mamba_params(key, dim, d_state=16, expand=2):
    ed = dim * expand
    k1, k2, k3, k4 = jax.random.split(key, 4)
    s_in = 1.0 / float(np.sqrt(dim))
    s_ed = 1.0 / float(np.sqrt(ed))
    return dict(
        norm_w=1.0 + 0.05 * jax.random.normal(k4, (dim,), jnp.float32),
        w_in=jax.random.uniform(k1, (dim, 2 * ed), jnp.float32, -s_in, s_in),
        w_xproj=jax.random.uniform(k2, (ed, 2 * d_state + ed), jnp.float32, -s_ed, s_ed),
        A_log=jnp.log(jnp.tile(jnp.arange(1, d_state + 1, dtype=jnp.float32)[None, :], (ed, 1))),
        w_out=jax.random.uniform(k3, (ed, dim), jnp.float32, -s_ed, s_ed),
    )


def _simplified_mamba_ref(x, p, d_state=16, eps=1e-6):
    """Literal transcription of SimplifiedMambaBlock.forward (eval-mode Dropout).
    The depthwise conv1d branch is computed-then-discarded in the PyTorch code
    (its result is never read), so it is omitted here."""
    B, L, _ = x.shape
    ed = p["w_in"].shape[1] // 2
    residual = x
    ms = jnp.mean(x * x, axis=-1, keepdims=True)
    xn = x * jax.lax.rsqrt(ms + eps) * p["norm_w"]                      # RMSNorm
    xz = jnp.matmul(xn, p["w_in"], precision=_HI)
    xs, z = xz[..., :ed], xz[..., ed:]
    xs = jax.nn.silu(xs)
    z = jax.nn.silu(z)
    ssm_p = jnp.matmul(xs, p["w_xproj"], precision=_HI)
    dt = jax.nn.softplus(ssm_p[..., :d_state])
    B_ssm = ssm_p[..., d_state:2 * d_state]
    C_ssm = ssm_p[..., 2 * d_state:]
    A = -jnp.exp(p["A_log"])
    h = jnp.zeros((B, ed, d_state), jnp.float32)
    ys = []
    for t in range(L):
        A_t = jnp.exp(dt[:, t][:, None, :] * A[None])
        _Bx_t = B_ssm[:, t][:, None, :] * xs[:, t][:, :, None]   # computed, never used (as in PyTorch)
        h = A_t * h                                               # Bx_t is never added
        ys.append(h.sum(-1) * C_ssm[:, t, :])
    ssm_out = jnp.stack(ys, axis=1)
    y = ssm_out * z
    return jnp.matmul(y, p["w_out"], precision=_HI) + residual


def _assert_mamba_identity(key):
    dim, L, B = 64, 8, 2
    kp, kx = jax.random.split(key)
    p = _small_mamba_params(kp, dim)
    x = jax.random.normal(kx, (B, L, dim), jnp.float32)
    y = jax.block_until_ready(_simplified_mamba_ref(x, p))
    err = float(jnp.max(jnp.abs(y - x)))
    assert err <= 1e-6, f"SimplifiedMambaBlock expected to be the identity (max err {err})"


# -----------------------------------------------------------------------------
# Check 2: collapsed pure-JAX reference of the full module forward (eval mode)
# -----------------------------------------------------------------------------
def reference_forward(x, params, *, gn_eps=1e-5, bn_eps=1e-5):
    """Literal transcription of TemporalSpatialMambaBlock.forward (eval mode),
    with the three Mamba blocks replaced by the identity they provably are
    (verified separately by _assert_mamba_identity)."""
    B, C, H, W = x.shape
    HW = H * W
    residual = x
    # GroupNorm(10, C)
    xg = x.reshape(B, _NG, -1)
    mean = jnp.mean(xg, axis=-1, keepdims=True)
    var = jnp.var(xg, axis=-1, keepdims=True)
    xn = ((xg - mean) * jax.lax.rsqrt(var + gn_eps)).reshape(B, C, H, W)
    xn = xn * params["gn_w"][None, :, None, None] + params["gn_b"][None, :, None, None]
    # literal reshape/permute chain (Mamba blocks == identity)
    x_t = xn.reshape(B, _NG, C // _NG, H, W).reshape(B, _NG, (C // _NG) * H * W)
    x_s = (x_t.reshape(B, _NG, C // _NG, HW).transpose(0, 2, 1, 3)
           .reshape(B, C // _NG, _NG * HW))
    x_p = x_s.reshape(B, _NG, C // _NG, HW).reshape(B, C, HW).transpose(0, 2, 1)
    z = x_p.transpose(0, 2, 1).reshape(B, C, H, W)
    # conv_fuse: Conv2d(1x1) -> BatchNorm2d(eval) -> GELU(exact) -> Dropout2d(eval, identity)
    c1 = jnp.einsum("oc,bchw->bohw", params["conv_w"], z, precision=_HI)
    c1 = c1 + params["conv_b"][None, :, None, None]
    scale = (params["bn_w"] * jax.lax.rsqrt(params["bn_rv"] + bn_eps))[None, :, None, None]
    bn = (c1 - params["bn_rm"][None, :, None, None]) * scale + params["bn_b"][None, :, None, None]
    return residual + jax.nn.gelu(bn, approximate=False)


if __name__ == "__main__":
    key = jax.random.PRNGKey(0)
    kx, kp, km = jax.random.split(key, 3)

    # Shapes dictated by the module's hard-coded Mamba dims:
    # temporal dim = (C//10)*H*W = 3900, spectral dim = 10*H*W = 1000,
    # spatial dim = C = 390   =>   C = 390, H = W = 10.  Batch kept small.
    B, C, H, W = 2, 390, 10, 10
    x = jax.random.normal(kx, (B, C, H, W), dtype=jnp.float32)
    params = init_params(kp, C)

    out = jax.jit(temporal_spatial_mamba_block)(x, params)
    out = jax.block_until_ready(out)
    assert out.shape == (B, C, H, W)

    # Check 1: the Mamba blocks really are the identity (literal transcription).
    _assert_mamba_identity(km)

    # Check 2: kernel vs collapsed pure-JAX reference at the real shapes.
    # Tolerance accounts for the intentional bf16-input MXU matmul (f32
    # accumulation): observed error is O(1e-3); the bound has ample headroom
    # while still catching any permutation / BN-fold / GroupNorm mistake (O(1)).
    ref = jax.block_until_ready(jax.jit(reference_forward)(x, params))
    err = float(jnp.max(jnp.abs(out - ref)))
    assert jnp.allclose(out, ref, atol=1e-2, rtol=1e-2), \
        f"mismatch vs reference (max abs err {err})"
    print("KERNEL_OK")
</pallas_src>

<mosaic_0001>
module attributes {stable_mosaic.version = 11 : i64} {
  func.func @_fused_kernel(%arg0: i32, %arg1: memref<1x390x100xf32, #tpu.memory_space<vmem>>, %arg2: memref<390x3xf32, #tpu.memory_space<vmem>>, %arg3: memref<10x390xf32, #tpu.memory_space<vmem>>, %arg4: memref<390x10xf32, #tpu.memory_space<vmem>>, %arg5: memref<390x390xbf16, #tpu.memory_space<vmem>>, %arg6: memref<1x390x100xf32, #tpu.memory_space<vmem>>) attributes {dimension_semantics = [#tpu.dimension_semantics<parallel>], iteration_bounds = array<i64: 2>, scalar_prefetch = 0 : i64, scratch_operands = 0 : i64, tpu.core_type = #tpu.core_type<tc>, window_params = [{transform_indices = @transform_0, window_bounds = array<i64: 1, 390, 100>}, {pipeline_mode = #tpu.pipeline_mode<synchronous>, transform_indices = @transform_1, window_bounds = array<i64: 390, 3>}, {pipeline_mode = #tpu.pipeline_mode<synchronous>, transform_indices = @transform_2, window_bounds = array<i64: 10, 390>}, {pipeline_mode = #tpu.pipeline_mode<synchronous>, transform_indices = @transform_3, window_bounds = array<i64: 390, 10>}, {pipeline_mode = #tpu.pipeline_mode<synchronous>, transform_indices = @transform_4, window_bounds = array<i64: 390, 390>}, {transform_indices = @transform_5, window_bounds = array<i64: 1, 390, 100>}]} {
    %c0 = arith.constant 0 : index
    %c0_0 = arith.constant 0 : index
    %0 = vector.load %arg2[%c0, %c0_0] : memref<390x3xf32, #tpu.memory_space<vmem>>, vector<390x1xf32>
    %c0_1 = arith.constant 0 : index
    %c1 = arith.constant 1 : index
    %1 = vector.load %arg2[%c0_1, %c1] : memref<390x3xf32, #tpu.memory_space<vmem>>, vector<390x1xf32>
    %c0_2 = arith.constant 0 : index
    %c2 = arith.constant 2 : index
    %2 = vector.load %arg2[%c0_2, %c2] : memref<390x3xf32, #tpu.memory_space<vmem>>, vector<390x1xf32>
    %c0_3 = arith.constant 0 : index
    %c0_4 = arith.constant 0 : index
    %3 = vector.load %arg3[%c0_3, %c0_4] : memref<10x390xf32, #tpu.memory_space<vmem>>, vector<10x390xf32>
    %c0_5 = arith.constant 0 : index
    %c0_6 = arith.constant 0 : index
    %4 = vector.load %arg4[%c0_5, %c0_6] : memref<390x10xf32, #tpu.memory_space<vmem>>, vector<390x10xf32>
    %c0_7 = arith.constant 0 : index
    %c0_8 = arith.constant 0 : index
    %5 = vector.load %arg5[%c0_7, %c0_8] : memref<390x390xbf16, #tpu.memory_space<vmem>>, vector<390x390xbf16>
    %c0_9 = arith.constant 0 : index
    %c0_10 = arith.constant 0 : index
    %c0_11 = arith.constant 0 : index
    %6 = vector.load %arg1[%c0_9, %c0_10, %c0_11] : memref<1x390x100xf32, #tpu.memory_space<vmem>>, vector<1x390x100xf32>
    %7 = vector.shape_cast %6 : vector<1x390x100xf32> to vector<390x100xf32>
    %cst = arith.constant dense<0.000000e+00> : vector<10x100xf32>
    %8 = tpu.matmul %3, %7, %cst {dimension_numbers = #tpu.dot_dimension_numbers<[1], [0], [0], [1], [0, 0, 1, 1], [], []>} : vector<10x390xf32>, vector<390x100xf32>, vector<10x100xf32> -> vector<10x100xf32>
    %9 = arith.mulf %7, %7 : vector<390x100xf32>
    %cst_12 = arith.constant dense<0.000000e+00> : vector<10x100xf32>
    %10 = tpu.matmul %3, %9, %cst_12 {dimension_numbers = #tpu.dot_dimension_numbers<[1], [0], [0], [1], [0, 0, 1, 1], [], []>} : vector<10x390xf32>, vector<390x100xf32>, vector<10x100xf32> -> vector<10x100xf32>
    %cst_13 = arith.constant dense<0.000000e+00> : vector<10xf32>
    %11 = vector.multi_reduction <add>, %8, %cst_13 [1] : vector<10x100xf32> to vector<10xf32>
    %12 = vector.shape_cast %11 : vector<10xf32> to vector<10x1xf32>
    %cst_14 = arith.constant 2.56410247E-4 : f32
    %13 = vector.broadcast %cst_14 : f32 to vector<10x1xf32>
    %14 = arith.mulf %12, %13 : vector<10x1xf32>
    %cst_15 = arith.constant dense<0.000000e+00> : vector<10xf32>
    %15 = vector.multi_reduction <add>, %10, %cst_15 [1] : vector<10x100xf32> to vector<10xf32>
    %16 = vector.shape_cast %15 : vector<10xf32> to vector<10x1xf32>
    %cst_16 = arith.constant 2.56410247E-4 : f32
    %17 = vector.broadcast %cst_16 : f32 to vector<10x1xf32>
    %18 = arith.mulf %16, %17 : vector<10x1xf32>
    %19 = arith.mulf %14, %14 : vector<10x1xf32>
    %20 = arith.subf %18, %19 : vector<10x1xf32>
    %cst_17 = arith.constant 9.99999974E-6 : f32
    %21 = vector.broadcast %cst_17 : f32 to vector<10x1xf32>
    %22 = arith.addf %20, %21 : vector<10x1xf32>
    %23 = math.rsqrt %22 : vector<10x1xf32>
    %cst_18 = arith.constant dense<0.000000e+00> : vector<390x1xf32>
    %24 = tpu.matmul %4, %14, %cst_18 {dimension_numbers = #tpu.dot_dimension_numbers<[1], [0], [0], [1], [0, 0, 1, 1], [], []>} : vector<390x10xf32>, vector<10x1xf32>, vector<390x1xf32> -> vector<390x1xf32>
    %cst_19 = arith.constant dense<0.000000e+00> : vector<390x1xf32>
    %25 = tpu.matmul %4, %23, %cst_19 {dimension_numbers = #tpu.dot_dimension_numbers<[1], [0], [0], [1], [0, 0, 1, 1], [], []>} : vector<390x10xf32>, vector<10x1xf32>, vector<390x1xf32> -> vector<390x1xf32>
    %26 = arith.mulf %0, %25 : vector<390x1xf32>
    %27 = arith.mulf %24, %26 : vector<390x1xf32>
    %28 = arith.subf %1, %27 : vector<390x1xf32>
    %29 = vector.broadcast %26 : vector<390x1xf32> to vector<390x100xf32>
    %30 = arith.mulf %7, %29 : vector<390x100xf32>
    %31 = vector.broadcast %28 : vector<390x1xf32> to vector<390x100xf32>
    %32 = arith.addf %30, %31 : vector<390x100xf32>
    %33 = arith.truncf %32 : vector<390x100xf32> to vector<390x100xbf16>
    %cst_20 = arith.constant dense<0.000000e+00> : vector<390x100xf32>
    %34 = tpu.matmul %5, %33, %cst_20 {dimension_numbers = #tpu.dot_dimension_numbers<[1], [0], [0], [1], [0, 0, 1, 1], [], []>} : vector<390x390xbf16>, vector<390x100xbf16>, vector<390x100xf32> -> vector<390x100xf32>
    %35 = vector.broadcast %2 : vector<390x1xf32> to vector<390x100xf32>
    %36 = arith.addf %34, %35 : vector<390x100xf32>
    %cst_21 = arith.constant 5.000000e-01 : f32
    %37 = vector.broadcast %cst_21 : f32 to vector<390x100xf32>
    %38 = arith.mulf %37, %36 : vector<390x100xf32>
    %cst_22 = arith.constant 0.707106769 : f32
    %39 = vector.broadcast %cst_22 : f32 to vector<390x100xf32>
    %40 = arith.mulf %36, %39 : vector<390x100xf32>
    %cst_23 = arith.constant 0.000000e+00 : f32
    %41 = vector.broadcast %cst_23 : f32 to vector<390x100xf32>
    %42 = arith.cmpf oge, %40, %41 : vector<390x100xf32>
    %cst_24 = arith.constant 1.000000e+00 : f32
    %cst_25 = arith.constant -1.000000e+00 : f32
    %43 = vector.broadcast %cst_24 : f32 to vector<390x100xf32>
    %44 = vector.broadcast %cst_25 : f32 to vector<390x100xf32>
    %45 = arith.select %42, %43, %44 : vector<390x100xi1>, vector<390x100xf32>
    %46 = math.absf %40 : vector<390x100xf32>
    %cst_26 = arith.constant 0.327591091 : f32
    %47 = vector.broadcast %cst_26 : f32 to vector<390x100xf32>
    %48 = arith.mulf %47, %46 : vector<390x100xf32>
    %cst_27 = arith.constant 1.000000e+00 : f32
    %49 = vector.broadcast %cst_27 : f32 to vector<390x100xf32>
    %50 = arith.addf %49, %48 : vector<390x100xf32>
    %51 = tpu.reciprocal %50 {approx = true} : vector<390x100xf32> -> vector<390x100xf32>
    %cst_28 = arith.constant 1.06140542 : f32
    %52 = vector.broadcast %cst_28 : f32 to vector<390x100xf32>
    %53 = arith.mulf %52, %51 : vector<390x100xf32>
    %cst_29 = arith.constant -1.45315206 : f32
    %54 = vector.broadcast %cst_29 : f32 to vector<390x100xf32>
    %55 = arith.addf %53, %54 : vector<390x100xf32>
    %56 = arith.mulf %55, %51 : vector<390x100xf32>
    %cst_30 = arith.constant 1.42141378 : f32
    %57 = vector.broadcast %cst_30 : f32 to vector<390x100xf32>
    %58 = arith.addf %56, %57 : vector<390x100xf32>
    %59 = arith.mulf %58, %51 : vector<390x100xf32>
    %cst_31 = arith.constant -0.284496725 : f32
    %60 = vector.broadcast %cst_31 : f32 to vector<390x100xf32>
    %61 = arith.addf %59, %60 : vector<390x100xf32>
    %62 = arith.mulf %61, %51 : vector<390x100xf32>
    %cst_32 = arith.constant 0.254829586 : f32
    %63 = vector.broadcast %cst_32 : f32 to vector<390x100xf32>
    %64 = arith.addf %62, %63 : vector<390x100xf32>
    %65 = arith.mulf %64, %51 : vector<390x100xf32>
    %66 = arith.mulf %46, %46 : vector<390x100xf32>
    %cst_33 = arith.constant 0.000000e+00 : f32
    %67 = vector.broadcast %cst_33 : f32 to vector<390x100xf32>
    %68 = arith.subf %67, %66 : vector<390x100xf32>
    %69 = math.exp %68 : vector<390x100xf32>
    %70 = arith.mulf %65, %69 : vector<390x100xf32>
    %cst_34 = arith.constant 1.000000e+00 : f32
    %71 = vector.broadcast %cst_34 : f32 to vector<390x100xf32>
    %72 = arith.subf %71, %70 : vector<390x100xf32>
    %73 = arith.mulf %45, %72 : vector<390x100xf32>
    %cst_35 = arith.constant 1.000000e+00 : f32
    %74 = vector.broadcast %cst_35 : f32 to vector<390x100xf32>
    %75 = arith.addf %74, %73 : vector<390x100xf32>
    %76 = arith.mulf %38, %75 : vector<390x100xf32>
    %77 = arith.addf %7, %76 : vector<390x100xf32>
    %c0_36 = arith.constant 0 : index
    %c0_37 = arith.constant 0 : index
    %c0_38 = arith.constant 0 : index
    %78 = vector.load %arg6[%c0_36, %c0_37, %c0_38] : memref<1x390x100xf32, #tpu.memory_space<vmem>>, vector<1x390x100xf32>
    %79 = vector.shape_cast %78 : vector<1x390x100xf32> to vector<390x100xf32>
    %80 = vector.shape_cast %77 : vector<390x100xf32> to vector<1x390x100xf32>
    tpu.vector_store %arg6[%c0_36, %c0_37, %c0_38], %80 {strides = array<i32>} : memref<1x390x100xf32, #tpu.memory_space<vmem>>, vector<1x390x100xf32>,
    return
  }
  func.func @transform_0(%arg0: i32) -> (i32, i32, i32) {
    %c0_i32 = arith.constant 0 : i32
    %c0_i32_0 = arith.constant 0 : i32
    %c0_i32_1 = arith.constant 0 : i32
    return %arg0, %c0_i32, %c0_i32_0 : i32, i32, i32
  }
  func.func @transform_1(%arg0: i32) -> (i32, i32) {
    %c0_i32 = arith.constant 0 : i32
    %c0_i32_0 = arith.constant 0 : i32
    %c0_i32_1 = arith.constant 0 : i32
    return %c0_i32, %c0_i32_0 : i32, i32
  }
  func.func @transform_2(%arg0: i32) -> (i32, i32) {
    %c0_i32 = arith.constant 0 : i32
    %c0_i32_0 = arith.constant 0 : i32
    %c0_i32_1 = arith.constant 0 : i32
    return %c0_i32, %c0_i32_0 : i32, i32
  }
  func.func @transform_3(%arg0: i32) -> (i32, i32) {
    %c0_i32 = arith.constant 0 : i32
    %c0_i32_0 = arith.constant 0 : i32
    %c0_i32_1 = arith.constant 0 : i32
    return %c0_i32, %c0_i32_0 : i32, i32
  }
  func.func @transform_4(%arg0: i32) -> (i32, i32) {
    %c0_i32 = arith.constant 0 : i32
    %c0_i32_0 = arith.constant 0 : i32
    %c0_i32_1 = arith.constant 0 : i32
    return %c0_i32, %c0_i32_0 : i32, i32
  }
  func.func @transform_5(%arg0: i32) -> (i32, i32, i32) {
    %c0_i32 = arith.constant 0 : i32
    %c0_i32_0 = arith.constant 0 : i32
    %c0_i32_1 = arith.constant 0 : i32
    return %arg0, %c0_i32, %c0_i32_0 : i32, i32, i32
  }
}

</mosaic_0001>

<bundles_post_ra>
// kernel: temporal_spatial_mamba_block.1
= control target key start
LH: loop header
LB: loop body
LE: loop exit
PB: predicated region body
PF: predicated region fallthrough
CT: control target
= control target key end

     0   :  { %s6583_s18 = smov 0   ;;  %s10345_s0 = inlined_call_operand.vmem [shape: f32[2,390,100], index: 0, kind: input, shape index: {}]   ;;  %s10346_s1 = inlined_call_operand.vmem [shape: f32[390,3], index: 1, kind: input, shape index: {}]   ;;  %s10347_s2 = inlined_call_operand.vmem [shape: f32[10,390], index: 2, kind: input, shape index: {}]   ;;  %s10348_s3 = inlined_call_operand.vmem [shape: f32[390,10], index: 3, kind: input, shape index: {}]   ;;  %s10349_s4 = inlined_call_operand.vmem [shape: bf16[390,390], index: 4, kind: input, shape index: {}]   ;;  %s10350_s5 = inlined_call_operand.vmem [shape: f32[2,390,100], index: 5, kind: output, shape index: {}]  }
   0x1 LB: > { %s5284_s19 = sadd.s32 4294967295, %s6544_s18   ;;  %p5288_p0 = scmp.ge.s32.totalorder %s6544_s18, 1  ;;  %s6544_s18 = sphi %s6583_s18, %s15_s18  }
   0x2   : > { %p187_p1 = scmp.lt.s32.totalorder %s6544_s18, 3 }
   0x4   : > { %p188_p2 = pnand %p5288_p0, %p187_p1 }
   0x6   : > { %191 = sbr.rel (%p188_p2) target bundleno = 1760 (0x6e0), region = 40 }
   0xb   : > { %p215_p3 = scmp.lt.s32.totalorder %s5284_s19, 1  ;;  %v6594_v0 = vld [vmem:[%s10347_s2 + $0x8] sm:$0xff]  ;;  %v6599_v1 = vld [vmem:[%s10347_s2 + $0x18] sm:$0xff]  ;;  %v6546_v2 = vmov 0.0   ;;  %vm479_vm0 = vcmask 48128   ;;  %v6818_v51 = vld [vmem:[%s10347_s2] sm:$0xff] }
   0xc   : > { %565 = vmatprep.subr.mxu1 %v6546_v2  ;;  %554 = vmatprep.mubr.f32.mxu0 %v6594_v0  ;;  %v6828_v53 = vld [vmem:[%s10347_s2 + $0x10] sm:$0xff]  ;;  %vm486_vm1 = vcmask 1045504   ;;  %v6847_v58 = vld [vmem:[%s10347_s2 + $0x28] sm:$0x3]  ;;  %v6857_v60 = vld [vmem:[%s10347_s2 + $0x20] sm:$0x3] }
   0xd   : > { %s10487_s19 = smov (!%p215_p3, %s5284_s19), 1  ;;  %5292 = vmatprep.mubr.msk.f32.mxu1 %vm479_vm0, %v6599_v1  ;;  %vm846_vm2 = vcmask 812032   ;;  %vm842_vm3 = vcmask 818176   ;;  %vm6547_vm4 = vmmov 0   ;;  %vm1016_vm5 = vcmask 1041408   ;;  %s6549_s12 = smov 1  }
   0xe   : > { %s6004_s24 = smul.u32 392, %s10487_s19  ;;  %vm868_vm6 = vcmask 80896   ;;  %vm3388_vm7 = vcmask 1042432  }
  0x10   : > { %s6613_s27 = scalar_lea.vmem %s10345_s0, %s6004_s24  ;;  %s9144_s26 = scalar_lea.vmem %s10350_s5, %s6004_s24 }
  0x11   : > { %v6616_v3 = vld [vmem:[%s6613_s27 + $0xf8] sm:$0xff]  ;;  %v6627_v6 = vld [vmem:[%s6613_s27 + $0xf0] sm:$0xff]  ;;  %v6638_v9 = vld [vmem:[%s6613_s27 + $0xe8] sm:$0xff] }
  0x12   : > { %v6619_v4 = vld [vmem:[%s6613_s27 + $0x178] sm:$0xff]  ;;  %5524 = vmatprep.subr.mxu0 %v6616_v3  ;;  %v6630_v7 = vld [vmem:[%s6613_s27 + $0x170] sm:$0xff]  ;;  %v6641_v10 = vld [vmem:[%s6613_s27 + $0x168] sm:$0xff]  ;;  %v671_v54 = vmul.f32 %v6616_v3, %v6616_v3  ;;  %v670_v56 = vmul.f32 %v6627_v6, %v6627_v6  ;;  %v669_v61 = vmul.f32 %v6638_v9, %v6638_v9 }
  0x13   : > { %v6622_v5 = vld [vmem:[%s6613_s27 + $0x78] sm:$0xff]  ;;  %566 = vmatpush1.msra.mxu1 %v6619_v4  ;;  %v6633_v8 = vld [vmem:[%s6613_s27 + $0x70] sm:$0xff]  ;;  %v6646_v11 = vld [vmem:[%s6613_s27 + $0x68] sm:$0xff]  ;;  %v687_v57 = vmul.f32 %v6619_v4, %v6619_v4  ;;  %v686_v62 = vmul.f32 %v6630_v7, %v6630_v7  ;;  %v685_v4 = vmul.f32 %v6641_v10, %v6641_v10 }
  0x14   : > { %5525 = vmatpush3.msra.mxu0 %v6622_v5  ;;  %567 = vmatprep.subr.mxu1 %v6546_v2  ;;  %v6651_v12 = vld [vmem:[%s6613_s27 + $0xe0] sm:$0xff]  ;;  %v6664_v15 = vld [vmem:[%s6613_s27 + $0xd8] sm:$0xff]  ;;  %v6677_v18 = vld [vmem:[%s6613_s27 + $0xd0] sm:$0xff]  ;;  %v655_v55 = vmul.f32 %v6622_v5, %v6622_v5  ;;  %v654_v59 = vmul.f32 %v6633_v8, %v6633_v8  ;;  %v653_v63 = vmul.f32 %v6646_v11, %v6646_v11 }
  0x15   : > { %5526 = vmatprep.subr.mxu0 %v6627_v6  ;;  %568 = vmatpush1.msra.mxu1 %v6630_v7  ;;  %v6654_v13 = vld [vmem:[%s6613_s27 + $0x160] sm:$0xff]  ;;  %v6667_v16 = vld [vmem:[%s6613_s27 + $0x158] sm:$0xff]  ;;  %v6680_v19 = vld [vmem:[%s6613_s27 + $0x150] sm:$0xff]  ;;  %v668_v3 = vmul.f32 %v6651_v12, %v6651_v12 }
  0x16   : > { %5527 = vmatpush3.msra.mxu0 %v6633_v8  ;;  %569 = vmatprep.subr.mxu1 %v6546_v2  ;;  %v6659_v14 = vld [vmem:[%s6613_s27 + $0x60] sm:$0xff]  ;;  %v6672_v17 = vld [vmem:[%s6613_s27 + $0x58] sm:$0xff]  ;;  %v6685_v20 = vld [vmem:[%s6613_s27 + $0x50] sm:$0xff]  ;;  %v667_v8 = vmul.f32 %v6664_v15, %v6664_v15 }
  0x17   : > { %5528 = vmatprep.subr.mxu0 %v6638_v9  ;;  %570 = vmatpush1.msra.mxu1 %v6641_v10  ;;  %v6690_v21 = vld [vmem:[%s6613_s27 + $0xc8] sm:$0xff]  ;;  %v6703_v24 = vld [vmem:[%s6613_s27 + $0xc0] sm:$0xff]  ;;  %v6716_v27 = vld [vmem:[%s6613_s27 + $0xb8] sm:$0xff]  ;;  %v652_v6 = vmul.f32 %v6659_v14, %v6659_v14  ;;  %v684_v9 = vmul.f32 %v6654_v13, %v6654_v13  ;;  %v651_v10 = vmul.f32 %v6672_v17, %v6672_v17 }
  0x18   : > { %5529 = vmatpush3.msra.mxu0 %v6646_v11  ;;  %571 = vmatprep.subr.mxu1 %v6546_v2  ;;  %v6693_v22 = vld [vmem:[%s6613_s27 + $0x148] sm:$0xff]  ;;  %v6706_v25 = vld [vmem:[%s6613_s27 + $0x140] sm:$0xff]  ;;  %v6719_v28 = vld [vmem:[%s6613_s27 + $0x138] sm:$0xff]  ;;  %v666_v11 = vmul.f32 %v6677_v18, %v6677_v18 }
  0x19   : > { %5530 = vmatprep.subr.mxu0 %v6651_v12  ;;  %572 = vmatpush1.msra.mxu1 %v6654_v13  ;;  %v6698_v23 = vld [vmem:[%s6613_s27 + $0x48] sm:$0xff]  ;;  %v6711_v26 = vld [vmem:[%s6613_s27 + $0x40] sm:$0xff]  ;;  %v6722_v29 = vld [vmem:[%s6613_s27 + $0x38] sm:$0xff]  ;;  %v683_v12 = vmul.f32 %v6667_v16, %v6667_v16  ;;  %v650_v13 = vmul.f32 %v6685_v20, %v6685_v20 }
  0x1a   : > { %5531 = vmatpush3.msra.mxu0 %v6659_v14  ;;  %573 = vmatprep.subr.mxu1 %v6546_v2  ;;  %v6727_v30 = vld [vmem:[%s6613_s27 + $0xb0] sm:$0xff]  ;;  %v6738_v33 = vld [vmem:[%s6613_s27 + $0xa8] sm:$0xff]  ;;  %v6751_v36 = vld [vmem:[%s6613_s27 + $0xa0] sm:$0xff]  ;;  %v665_v14 = vmul.f32 %v6690_v21, %v6690_v21 }
  0x1b   : > { %5532 = vmatprep.subr.mxu0 %v6664_v15  ;;  %574 = vmatpush1.msra.mxu1 %v6667_v16  ;;  %v6730_v31 = vld [vmem:[%s6613_s27 + $0x130] sm:$0xff]  ;;  %v6741_v34 = vld [vmem:[%s6613_s27 + $0x128] sm:$0xff]  ;;  %v6754_v37 = vld [vmem:[%s6613_s27 + $0x120] sm:$0xff]  ;;  %v682_v15 = vmul.f32 %v6680_v19, %v6680_v19  ;;  %v649_v16 = vmul.f32 %v6698_v23, %v6698_v23 }
  0x1c   : > { %5533 = vmatpush3.msra.mxu0 %v6672_v17  ;;  %575 = vmatprep.subr.mxu1 %v6546_v2  ;;  %v6733_v32 = vld [vmem:[%s6613_s27 + $0x30] sm:$0xff]  ;;  %v6746_v35 = vld [vmem:[%s6613_s27 + $0x28] sm:$0xff]  ;;  %v6759_v38 = vld [vmem:[%s6613_s27 + $0x20] sm:$0xff]  ;;  %v664_v17 = vmul.f32 %v6703_v24, %v6703_v24 }
  0x1d   : > { %5534 = vmatprep.subr.mxu0 %v6677_v18  ;;  %576 = vmatpush1.msra.mxu1 %v6680_v19  ;;  %v6764_v39 = vld [vmem:[%s6613_s27 + $0x98] sm:$0xff]  ;;  %v6777_v42 = vld [vmem:[%s6613_s27 + $0x90] sm:$0xff]  ;;  %v6790_v45 = vld [vmem:[%s6613_s27 + $0x88] sm:$0xff]  ;;  %v681_v18 = vmul.f32 %v6693_v22, %v6693_v22  ;;  %v648_v19 = vmul.f32 %v6711_v26, %v6711_v26 }
  0x1e   : > { %5535 = vmatpush3.msra.mxu0 %v6685_v20  ;;  %577 = vmatprep.subr.mxu1 %v6546_v2  ;;  %v6767_v40 = vld [vmem:[%s6613_s27 + $0x118] sm:$0xff]  ;;  %v6780_v43 = vld [vmem:[%s6613_s27 + $0x110] sm:$0xff]  ;;  %v6793_v46 = vld [vmem:[%s6613_s27 + $0x108] sm:$0xff]  ;;  %v663_v20 = vmul.f32 %v6716_v27, %v6716_v27 }
  0x1f   : > { %5536 = vmatprep.subr.mxu0 %v6690_v21  ;;  %578 = vmatpush1.msra.mxu1 %v6693_v22  ;;  %v6772_v41 = vld [vmem:[%s6613_s27 + $0x18] sm:$0xff]  ;;  %v6785_v44 = vld [vmem:[%s6613_s27 + $0x10] sm:$0xff]  ;;  %v6798_v47 = vld [vmem:[%s6613_s27 + $0x8] sm:$0xff]  ;;  %v680_v21 = vmul.f32 %v6706_v25, %v6706_v25  ;;  %v647_v22 = vmul.f32 %v6722_v29, %v6722_v29 }
  0x20   : > { %5537 = vmatpush3.msra.mxu0 %v6698_v23  ;;  %579 = vmatprep.subr.mxu1 %v6546_v2  ;;  %v6803_v48 = vld [vmem:[%s6613_s27 + $0x80] sm:$0xff]  ;;  %v6875_v5 = vld [vmem:[%s10347_s2 + $0x38] sm:$0x3]  ;;  %v6884_v7 = vld [vmem:[%s10347_s2 + $0x30] sm:$0x3]  ;;  %v662_v23 = vmul.f32 %v6727_v30, %v6727_v30 }
  0x21   : > { %5538 = vmatprep.subr.mxu0 %v6703_v24  ;;  %580 = vmatpush1.msra.mxu1 %v6706_v25  ;;  %v6806_v49 = vld [vmem:[%s6613_s27 + $0x100] sm:$0xff]  ;;  %v679_v24 = vmul.f32 %v6719_v28, %v6719_v28  ;;  %v646_v25 = vmul.f32 %v6733_v32, %v6733_v32 }
  0x22   : > { %5539 = vmatpush3.msra.mxu0 %v6711_v26  ;;  %581 = vmatprep.subr.mxu1 %v6546_v2  ;;  %v6811_v50 = vld [vmem:[%s6613_s27] sm:$0xff]  ;;  %v661_v26 = vmul.f32 %v6738_v33, %v6738_v33 }
  0x23   : > { %5540 = vmatprep.subr.mxu0 %v6716_v27  ;;  %582 = vmatpush1.msra.mxu1 %v6719_v28  ;;  %v6821_v52 = vld [vmem:[%s6613_s27 + $0x180] sm:$0x3f]  ;;  %v678_v27 = vmul.f32 %v6730_v31, %v6730_v31  ;;  %v645_v28 = vmul.f32 %v6746_v35, %v6746_v35 }
  0x24   : > { %5541 = vmatpush3.msra.mxu0 %v6722_v29  ;;  %583 = vmatprep.subr.mxu1 %v6546_v2  ;;  %v660_v29 = vmul.f32 %v6751_v36, %v6751_v36 }
  0x25   : > { %5542 = vmatprep.subr.mxu0 %v6727_v30  ;;  %584 = vmatpush1.msra.mxu1 %v6730_v31  ;;  %v677_v30 = vmul.f32 %v6741_v34, %v6741_v34  ;;  %v644_v31 = vmul.f32 %v6759_v38, %v6759_v38 }
  0x26   : > { %5543 = vmatpush3.msra.mxu0 %v6733_v32  ;;  %585 = vmatprep.subr.mxu1 %v6546_v2  ;;  %v659_v32 = vmul.f32 %v6764_v39, %v6764_v39 }
  0x27   : > { %5544 = vmatprep.subr.mxu0 %v6738_v33  ;;  %586 = vmatpush1.msra.mxu1 %v6741_v34  ;;  %v676_v33 = vmul.f32 %v6754_v37, %v6754_v37  ;;  %v643_v34 = vmul.f32 %v6772_v41, %v6772_v41 }
  0x28   : > { %5545 = vmatpush3.msra.mxu0 %v6746_v35  ;;  %587 = vmatprep.subr.mxu1 %v6546_v2  ;;  %v658_v35 = vmul.f32 %v6777_v42, %v6777_v42 }
  0x29   : > { %5546 = vmatprep.subr.mxu0 %v6751_v36  ;;  %588 = vmatpush1.msra.mxu1 %v6754_v37  ;;  %v675_v36 = vmul.f32 %v6767_v40, %v6767_v40  ;;  %v642_v37 = vmul.f32 %v6785_v44, %v6785_v44 }
  0x2a   : > { %5547 = vmatpush3.msra.mxu0 %v6759_v38  ;;  %589 = vmatprep.subr.mxu1 %v6546_v2  ;;  %v657_v38 = vmul.f32 %v6790_v45, %v6790_v45 }
  0x2b   : > { %5548 = vmatprep.subr.mxu0 %v6764_v39  ;;  %590 = vmatpush1.msra.mxu1 %v6767_v40  ;;  %v674_v39 = vmul.f32 %v6780_v43, %v6780_v43  ;;  %v641_v40 = vmul.f32 %v6798_v47, %v6798_v47 }
  0x2c   : > { %5549 = vmatpush3.msra.mxu0 %v6772_v41  ;;  %591 = vmatprep.subr.mxu1 %v6546_v2  ;;  %v656_v41 = vmul.f32 %v6803_v48, %v6803_v48 }
  0x2d   : > { %5550 = vmatprep.subr.mxu0 %v6777_v42  ;;  %592 = vmatpush1.msra.mxu1 %v6780_v43  ;;  %v673_v42 = vmul.f32 %v6793_v46, %v6793_v46  ;;  %v640_v43 = vmul.f32 %v6811_v50, %v6811_v50 }
  0x2e   : > { %5551 = vmatpush3.msra.mxu0 %v6785_v44  ;;  %593 = vmatprep.subr.mxu1 %v6546_v2  ;;  %v672_v44 = vmul.f32 %v6806_v49, %v6806_v49 }
  0x2f   : > { %5552 = vmatprep.subr.mxu0 %v6790_v45  ;;  %594 = vmatpush1.msra.mxu1 %v6793_v46  ;;  %v688_v45 = vmul.f32 %v6821_v52, %v6821_v52 }
  0x30   : > { %5553 = vmatpush3.msra.mxu0 %v6798_v47  ;;  %595 = vmatprep.subr.mxu1 %v6546_v2 }
  0x31   : > { %5554 = vmatprep.subr.mxu0 %v6803_v48  ;;  %596 = vmatpush1.msra.mxu1 %v6806_v49 }
  0x32   : > { %5555 = vmatpush3.msra.mxu0 %v6811_v50  ;;  %627 = vmatprep.subr.mxu1 %v6546_v2 }
  0x33   : > { %555 = vmatmul.mubr.f32.vlgmr.msra.gmra.mxu0 %v6818_v51  ;;  %5291 = vmatpush2.msk.msra.mxu1 %vm486_vm1, %v6821_v52 }
  0x34   : > { %5562 = vmatprep.subr.mxu0 %v671_v54  ;;  %630 = vmatmul.mubr.f32.vlgmr.msra.gmra.mxu1 %v6828_v53 }
  0x35   : > { %5563 = vmatpush3.msra.mxu0 %v655_v55  ;;  %767 = vmatprep.subr.mxu1 %v6546_v2 }
  0x36   : > { %5564 = vmatprep.subr.mxu0 %v670_v56  ;;  %768 = vmatpush1.msra.mxu1 %v687_v57 }
  0x37   : > { %559 = vmatprep.mubr.f32.mxu0 %v6847_v58  ;;  %5565 = vmatpush3.msra.mxu0 %v654_v59 }
  0x38   : > { %769 = vmatprep.subr.mxu1 %v6546_v2  ;;  %560 = vmatmul.mubr.f32.gmra.mxu0 %v6857_v60 }
  0x39   : > { %5566 = vmatprep.subr.mxu0 %v669_v61  ;;  %770 = vmatpush1.msra.mxu1 %v686_v62 }
  0x3a   : > { %5567 = vmatpush3.msra.mxu0 %v653_v63  ;;  %771 = vmatprep.subr.mxu1 %v6546_v2 }
  0x3b   : > { %5568 = vmatprep.subr.mxu0 %v668_v3  ;;  %772 = vmatpush1.msra.mxu1 %v685_v4 }
  0x3c   : > { %5293 = vmatprep.mubr.msk.f32.mxu1 %vm479_vm0, %v6875_v5  ;;  %5569 = vmatpush3.msra.mxu0 %v652_v6 }
  0x3d   : > { %773 = vmatprep.subr.mxu1 %v6546_v2  ;;  %635 = vmatmul.mubr.f32.gmra.mxu1 %v6884_v7 }
  0x3e   : > { %5570 = vmatprep.subr.mxu0 %v667_v8  ;;  %774 = vmatpush1.msra.mxu1 %v684_v9 }
  0x3f   : > { %5571 = vmatpush3.msra.mxu0 %v651_v10  ;;  %775 = vmatprep.subr.mxu1 %v6546_v2 }
  0x40   : > { %5572 = vmatprep.subr.mxu0 %v666_v11  ;;  %776 = vmatpush1.msra.mxu1 %v683_v12 }
  0x41   : > { %5573 = vmatpush3.msra.mxu0 %v650_v13  ;;  %777 = vmatprep.subr.mxu1 %v6546_v2 }
  0x42   : > { %5574 = vmatprep.subr.mxu0 %v665_v14  ;;  %778 = vmatpush1.msra.mxu1 %v682_v15  ;;  %v283_v15 = vld [vmem:[%s10348_s3] sm:$0xff] }
  0x43   : > { %5575 = vmatpush3.msra.mxu0 %v649_v16  ;;  %779 = vmatprep.subr.mxu1 %v6546_v2  ;;  %v284_v16 = vld [vmem:[%s10348_s3 + $0x8] sm:$0xff] }
  0x44   : > { %5576 = vmatprep.subr.mxu0 %v664_v17  ;;  %780 = vmatpush1.msra.mxu1 %v681_v18  ;;  %v285_v17 = vld [vmem:[%s10348_s3 + $0x10] sm:$0xff]  ;;  %v286_v18 = vld [vmem:[%s10348_s3 + $0x18] sm:$0xff] }
  0x45   : > { %5577 = vmatpush3.msra.mxu0 %v648_v19  ;;  %781 = vmatprep.subr.mxu1 %v6546_v2  ;;  %v7030_v19 = vld [vmem:[%s10348_s3 + $0x20] sm:$0xff] }
  0x46   : > { %5578 = vmatprep.subr.mxu0 %v663_v20  ;;  %782 = vmatpush1.msra.mxu1 %v680_v21  ;;  %v7039_v20 = vld [vmem:[%s10348_s3 + $0x28] sm:$0xff]  ;;  %v7048_v21 = vld [vmem:[%s10348_s3 + $0x30] sm:$0xff] }
  0x47   : > { %5579 = vmatpush3.msra.mxu0 %v647_v22  ;;  %783 = vmatprep.subr.mxu1 %v6546_v2 }
  0x48   : > { %5580 = vmatprep.subr.mxu0 %v662_v23  ;;  %784 = vmatpush1.msra.mxu1 %v679_v24 }
  0x49   : > { %5581 = vmatpush3.msra.mxu0 %v646_v25  ;;  %785 = vmatprep.subr.mxu1 %v6546_v2  ;;  %v7057_v25 = vld [vmem:[%s10348_s3 + $0x38] sm:$0xff] }
  0x4a   : > { %5582 = vmatprep.subr.mxu0 %v661_v26  ;;  %786 = vmatpush1.msra.mxu1 %v678_v27 }
  0x4b   : > { %5583 = vmatpush3.msra.mxu0 %v645_v28  ;;  %787 = vmatprep.subr.mxu1 %v6546_v2 }
  0x4c   : > { %5584 = vmatprep.subr.mxu0 %v660_v29  ;;  %788 = vmatpush1.msra.mxu1 %v677_v30 }
  0x4d   : > { %5585 = vmatpush3.msra.mxu0 %v644_v31  ;;  %789 = vmatprep.subr.mxu1 %v6546_v2  ;;  %v7066_v31 = vld [vmem:[%s10348_s3 + $0x40] sm:$0xff] }
  0x4e   : > { %5586 = vmatprep.subr.mxu0 %v659_v32  ;;  %790 = vmatpush1.msra.mxu1 %v676_v33 }
  0x4f   : > { %5587 = vmatpush3.msra.mxu0 %v643_v34  ;;  %791 = vmatprep.subr.mxu1 %v6546_v2  ;;  %v7075_v34 = vld [vmem:[%s10348_s3 + $0x48] sm:$0xff] }
  0x50   : > { %5588 = vmatprep.subr.mxu0 %v658_v35  ;;  %792 = vmatpush1.msra.mxu1 %v675_v36  ;;  %v7084_v35 = vld [vmem:[%s10348_s3 + $0x50] sm:$0xff]  ;;  %v7093_v36 = vld [vmem:[%s10348_s3 + $0x58] sm:$0xff] }
  0x51   : > { %5589 = vmatpush3.msra.mxu0 %v642_v37  ;;  %793 = vmatprep.subr.mxu1 %v6546_v2 }
  0x52   : > { %5590 = vmatprep.subr.mxu0 %v657_v38  ;;  %794 = vmatpush1.msra.mxu1 %v674_v39  ;;  %v7104_v38 = vld [vmem:[%s10348_s3 + $0x60] sm:$0xff] }
  0x53   : > { %5591 = vmatpush3.msra.mxu0 %v641_v40  ;;  %795 = vmatprep.subr.mxu1 %v6546_v2  ;;  %v7114_v40 = vld [vmem:[%s10348_s3 + $0x68] sm:$0xff] }
  0x54   : > { %5592 = vmatprep.subr.mxu0 %v656_v41  ;;  %796 = vmatpush1.msra.mxu1 %v673_v42  ;;  %v7126_v41 = vld [vmem:[%s10348_s3 + $0x70] sm:$0xff]  ;;  %v7138_v42 = vld [vmem:[%s10348_s3 + $0x78] sm:$0xff] }
  0x55   : > { %5593 = vmatpush3.msra.mxu0 %v640_v43  ;;  %756 = vmatprep.mubr.f32.mxu0 %v6594_v0  ;;  %v7150_v43 = vld [vmem:[%s10348_s3 + $0x80] sm:$0xff] }
  0x56   : > { %797 = vmatprep.subr.mxu1 %v6546_v2  ;;  %757 = vmatmul.mubr.f32.vlgmr.msra.gmra.mxu0 %v6818_v51 }
  0x57   : > { %798 = vmatpush1.msra.mxu1 %v672_v44  ;;  %5295 = vmatprep.mubr.msk.f32.mxu1 %vm479_vm0, %v6599_v1  ;;  %v7163_v44 = vld [vmem:[%s10348_s3 + $0x88] sm:$0xff] }
  0x58   : > { %829 = vmatprep.subr.mxu1 %v6546_v2  ;;  %761 = vmatprep.mubr.f32.mxu0 %v6847_v58 }
  0x59   : > { %5294 = vmatpush2.msk.msra.mxu1 %vm486_vm1, %v688_v45  ;;  %5702 = vmatprep.subr.mxu0 %v6546_v2  ;;  %v7176_v45 = vld [vmem:[%s10348_s3 + $0x90] sm:$0xff] }
  0x5a   : > { %832 = vmatmul.mubr.f32.vlgmr.msra.gmra.mxu1 %v6828_v53  ;;  %762 = vmatmul.mubr.f32.gmra.mxu0 %v6857_v60 }
  0x5b   : > { %5296 = vmatprep.mubr.msk.f32.mxu1 %vm479_vm0, %v6875_v5  ;;  %5853 = vmatprep.subr.mxu1 %v6546_v2 }
  0x5c   : > { %5706 = vmatprep.mubr.msk.f32.mxu0 %vm6547_vm4, %v6546_v2 }
  0x5e   : > { %837 = vmatmul.mubr.f32.gmra.mxu1 %v6884_v7 }
  0x5f   : > { %5857 = vmatprep.mubr.msk.f32.mxu1 %vm6547_vm4, %v6546_v2 }
  0xf3   : > { %v5556_v0 = vpop.f32.mrf.mxu0 }
  0xf4   : > { %v631_v1 = vpop.f32.mrf.mxu1 }
  0xf5   : > { %v5557_v46 = vpop.f32.mrf.mxu0 }
  0xf6   : > { %v633_v47 = vpop.f32.mrf.mxu1  ;;  %v5558_v51 = vadd.f32 %v5557_v46, %v5556_v0  ;;  %v7189_v0 = vld [vmem:[%s10348_s3 + $0x98] sm:$0xff]  ;;  %v7215_v46 = vld [vmem:[%s10348_s3 + $0xa8] sm:$0xff] }
  0xf7   : > { %v7228_v47 = vld [vmem:[%s10348_s3 + $0xb0] sm:$0xff] }
  0xf8   : > { %v5559_v48 = vpop.f32.mrf.mxu0  ;;  %v632_v56 = vadd.f32 %v5558_v51, %v631_v1  ;;  %v7202_v1 = vld [vmem:[%s10348_s3 + $0xa0] sm:$0xff]  ;;  %v7280_v51 = vld [vmem:[%s10348_s3 + $0xd0] sm:$0xff] }
  0xfa   : > { %v5560_v49 = vpop.f32.mrf.mxu0  ;;  %v843_v57 = vsel %vm842_vm3, %v632_v56, 0.0  ;;  %v7334_v56 = vld [vmem:[%s10348_s3 + $0xf0] sm:$0xff] }
  0xfb   : > { %v5561_v50 = vadd.f32 %v5560_v49, %v5559_v48  ;;  %v7241_v48 = vld [vmem:[%s10348_s3 + $0xb8] sm:$0xff]  ;;  %v7254_v49 = vld [vmem:[%s10348_s3 + $0xc0] sm:$0xff] }
  0xfd   : > { %v636_v52 = vpop.f32.mrf.mxu1 }
  0xfe   : > { %v637_v53 = vadd.f32 %v5561_v50, %v636_v52  ;;  %v7267_v50 = vld [vmem:[%s10348_s3 + $0xc8] sm:$0xff]  ;;  %v7293_v52 = vld [vmem:[%s10348_s3 + $0xd8] sm:$0xff] }
  0xff   : > { %v638_v54 = vpop.f32.mrf.mxu1 }
 0x100   : > { %v847_v55 = vsel %vm846_vm2, %v637_v53, 0.0  ;;  %v7306_v53 = vld [vmem:[%s10348_s3 + $0xe0] sm:$0xff]  ;;  %v7319_v54 = vld [vmem:[%s10348_s3 + $0xe8] sm:$0xff] }
 0x101   : > { %848 = vadd.xlane.f32.xlu0 %v847_v55  ;;  %v10351_v55 = vmov 0  }
 0x102   : > { %6020 = vset.pattern.permute.xlu1 %v10351_v55  ;;  %6021 = vset.pattern.permute.xlu0 %v10351_v55 }
 0x105   : > { %844 = vadd.xlane.f32.xlu0 %v843_v57  ;;  %v7349_v57 = vld [vmem:[%s10348_s3 + $0xf8] sm:$0xff] }
 0x116   : > { %v5594_v58 = vpop.f32.mrf.mxu0 }
 0x118   : > { %v5595_v59 = vpop.f32.mrf.mxu0 }
 0x119   : > { %v5596_v3 = vadd.f32 %v5595_v59, %v5594_v58  ;;  %v7362_v58 = vld [vmem:[%s10348_s3 + $0x100] sm:$0xff]  ;;  %v7375_v59 = vld [vmem:[%s10348_s3 + $0x108] sm:$0xff] }
 0x11a   : > { %v833_v60 = vpop.f32.mrf.mxu1  ;;  %v5597_v61 = vpop.f32.mrf.mxu0 }
 0x11b   : > { %v834_v8 = vadd.f32 %v5596_v3, %v833_v60  ;;  %v7388_v60 = vld [vmem:[%s10348_s3 + $0x110] sm:$0xff] }
 0x11c   : > { %v835_v62 = vpop.f32.mrf.mxu1  ;;  %v5598_v63 = vpop.f32.mrf.mxu0  ;;  %v7440_v3 = vld [vmem:[%s10348_s3 + $0x130] sm:$0xff] }
 0x11d   : > { %v5599_v4 = vadd.f32 %v5598_v63, %v5597_v61  ;;  %v852_v10 = vsel %vm842_vm3, %v834_v8, 0.0  ;;  %v7401_v61 = vld [vmem:[%s10348_s3 + $0x118] sm:$0xff]  ;;  %v7414_v62 = vld [vmem:[%s10348_s3 + $0x120] sm:$0xff]  ;;  %v7427_v63 = vld [vmem:[%s10348_s3 + $0x128] sm:$0xff] }
 0x11e   : > { %v838_v5 = vpop.f32.mrf.mxu1  ;;  %v326_v8 = vld [vmem:[%s10348_s3 + $0x158] sm:$0xff] }
 0x11f   : > { %v839_v6 = vadd.f32 %v5599_v4, %v838_v5  ;;  %v322_v4 = vld [vmem:[%s10348_s3 + $0x138] sm:$0xff]  ;;  %v323_v5 = vld [vmem:[%s10348_s3 + $0x140] sm:$0xff] }
 0x120   : > { %v840_v7 = vpop.f32.mrf.mxu1 }
 0x121   : > { %v855_v9 = vsel %vm846_vm2, %v839_v6, 0.0  ;;  %v324_v6 = vld [vmem:[%s10348_s3 + $0x148] sm:$0xff]  ;;  %v325_v7 = vld [vmem:[%s10348_s3 + $0x150] sm:$0xff] }
 0x122   : > { %856 = vadd.xlane.f32.xlu1 %v855_v9  ;;  %v327_v9 = vld [vmem:[%s10348_s3 + $0x160] sm:$0xff] }
 0x126   : > { %853 = vadd.xlane.f32.xlu1 %v852_v10  ;;  %v328_v10 = vld [vmem:[%s10348_s3 + $0x168] sm:$0xff] }
 0x18a   : > { %v849_v11 = vpop.xlane.xlu0 %848 }
 0x18b   : > { %v851_v12 = vmul.f32 0.00025641025, %v849_v11  ;;  %v329_v11 = vld [vmem:[%s10348_s3 + $0x170] sm:$0xff] }
 0x18d   : > { %5703 = vmatpush3.msk.msra.mxu0 %vm1016_vm5, %v851_v12  ;;  %v861_v23 = vmul.f32 %v851_v12, %v851_v12  ;;  %v330_v12 = vld [vmem:[%s10348_s3 + $0x178] sm:$0xff] }
 0x18e   : > { %v845_v13 = vpop.xlane.xlu0 %844  ;;  %5704 = vmatprep.subr.mxu0 %v6546_v2 }
 0x18f   : > { %v850_v14 = vmul.f32 0.00025641025, %v845_v13  ;;  %v331_v13 = vld [vmem:[%s10348_s3 + $0x180] sm:$0x3f] }
 0x191   : > { %5705 = vmatpush3.msra.mxu0 %v850_v14  ;;  %v860_v28 = vmul.f32 %v850_v14, %v850_v14 }
 0x192   : > { %5707 = vmatmul.mubr.msk.f32.vlgmr.msra.gmra.mxu0 %vm868_vm6, %v283_v15  ;;  %3392 = vmatprep.subr.bf16.mxu0 %v10351_v55 }
 0x193   : > { %5709 = vmatprep.mubr.msk.f32.mxu0 %vm6547_vm4, %v6546_v2 }
 0x196   : > { %5710 = vmatmul.mubr.msk.f32.gmra.mxu0 %vm868_vm6, %v284_v16 }
 0x197   : > { %5712 = vmatprep.mubr.msk.f32.mxu0 %vm6547_vm4, %v6546_v2 }
 0x19a   : > { %5713 = vmatmul.mubr.msk.f32.gmra.mxu0 %vm868_vm6, %v285_v17 }
 0x19b   : > { %5715 = vmatprep.mubr.msk.f32.mxu0 %vm6547_vm4, %v6546_v2 }
 0x19e   : > { %5716 = vmatmul.mubr.msk.f32.gmra.mxu0 %vm868_vm6, %v286_v18 }
 0x19f   : > { %5718 = vmatprep.mubr.msk.f32.mxu0 %vm6547_vm4, %v6546_v2 }
 0x1a2   : > { %5719 = vmatmul.mubr.msk.f32.gmra.mxu0 %vm868_vm6, %v7030_v19 }
 0x1a3   : > { %5721 = vmatprep.mubr.msk.f32.mxu0 %vm6547_vm4, %v6546_v2 }
 0x1a6   : > { %5722 = vmatmul.mubr.msk.f32.gmra.mxu0 %vm868_vm6, %v7039_v20 }
 0x1a7   : > { %5724 = vmatprep.mubr.msk.f32.mxu0 %vm6547_vm4, %v6546_v2 }
 0x1aa   : > { %5725 = vmatmul.mubr.msk.f32.gmra.mxu0 %vm868_vm6, %v7048_v21 }
 0x1ab   : > { %v857_v22 = vpop.xlane.xlu1 %856  ;;  %5727 = vmatprep.mubr.msk.f32.mxu0 %vm6547_vm4, %v6546_v2 }
 0x1ac   : > { %v859_v24 = vmul.f32 0.00025641025, %v857_v22 }
 0x1ae   : > { %v863_v26 = vsub.f32 %v859_v24, %v861_v23  ;;  %5728 = vmatmul.mubr.msk.f32.gmra.mxu0 %vm868_vm6, %v7057_v25 }
 0x1af   : > { %v854_v27 = vpop.xlane.xlu1 %853  ;;  %5730 = vmatprep.mubr.msk.f32.mxu0 %vm6547_vm4, %v6546_v2 }
 0x1b0   : > { %v865_v29 = vadd.f32 1e-05, %v863_v26  ;;  %v858_v30 = vmul.f32 0.00025641025, %v854_v27 }
 0x1b2   : > { %6194 = vrsqrt.f32 %v865_v29  ;;  %v862_v32 = vsub.f32 %v858_v30, %v860_v28  ;;  %5731 = vmatmul.mubr.msk.f32.gmra.mxu0 %vm868_vm6, %v7066_v31 }
 0x1b3   : > { %5733 = vmatprep.mubr.msk.f32.mxu0 %vm6547_vm4, %v6546_v2 }
 0x1b4   : > { %v864_v33 = vadd.f32 1e-05, %v862_v32 }
 0x1b6   : > { %6196 = vrsqrt.f32 %v864_v33  ;;  %5734 = vmatmul.mubr.msk.f32.gmra.mxu0 %vm868_vm6, %v7075_v34 }
 0x1b7   : > { %5736 = vmatprep.mubr.msk.f32.mxu0 %vm6547_vm4, %v6546_v2 }
 0x1ba   : > { %5737 = vmatmul.mubr.msk.f32.gmra.mxu0 %vm868_vm6, %v7084_v35 }
 0x1bb   : > { %5739 = vmatprep.mubr.msk.f32.mxu0 %vm6547_vm4, %v6546_v2 }
 0x1be   : > { %5740 = vmatmul.mubr.msk.f32.gmra.mxu0 %vm868_vm6, %v7093_v36 }
 0x1bf   : > { %v6195_v37 = vpop.eup %6194  ;;  %5742 = vmatprep.mubr.msk.f32.mxu0 %vm6547_vm4, %v6546_v2 }
 0x1c0   : > { %5854 = vmatpush3.msk.msra.mxu1 %vm1016_vm5, %v6195_v37 }
 0x1c1   : > { %5855 = vmatprep.subr.mxu1 %v6546_v2 }
 0x1c2   : > { %5743 = vmatmul.mubr.msk.f32.gmra.mxu0 %vm868_vm6, %v7104_v38 }
 0x1c3   : > { %v6197_v39 = vpop.eup %6196  ;;  %5745 = vmatprep.mubr.msk.f32.mxu0 %vm6547_vm4, %v6546_v2 }
 0x1c4   : > { %5856 = vmatpush3.msra.mxu1 %v6197_v39  ;;  %v7612_v39 = vld [vmem:[%s10346_s1] sm:$0xff] }
 0x1c5   : > { %5858 = vmatmul.mubr.msk.f32.vlgmr.msra.gmra.mxu1 %vm868_vm6, %v283_v15  ;;  %3624 = vmatprep.subr.bf16.mxu1 %v10351_v55 }
 0x1c6   : > { %5860 = vmatprep.mubr.msk.f32.mxu1 %vm6547_vm4, %v6546_v2  ;;  %5746 = vmatmul.mubr.msk.f32.gmra.mxu0 %vm868_vm6, %v7114_v40 }
 0x1c7   : > { %5748 = vmatprep.mubr.msk.f32.mxu0 %vm6547_vm4, %v6546_v2 }
 0x1c9   : > { %5861 = vmatmul.mubr.msk.f32.gmra.mxu1 %vm868_vm6, %v284_v16 }
 0x1ca   : > { %5863 = vmatprep.mubr.msk.f32.mxu1 %vm6547_vm4, %v6546_v2  ;;  %5749 = vmatmul.mubr.msk.f32.gmra.mxu0 %vm868_vm6, %v7126_v41 }
 0x1cb   : > { %5751 = vmatprep.mubr.msk.f32.mxu0 %vm6547_vm4, %v6546_v2 }
 0x1cd   : > { %5864 = vmatmul.mubr.msk.f32.gmra.mxu1 %vm868_vm6, %v285_v17 }
 0x1ce   : > { %5866 = vmatprep.mubr.msk.f32.mxu1 %vm6547_vm4, %v6546_v2  ;;  %5752 = vmatmul.mubr.msk.f32.gmra.mxu0 %vm868_vm6, %v7138_v42 }
 0x1cf   : > { %5754 = vmatprep.mubr.msk.f32.mxu0 %vm6547_vm4, %v6546_v2 }
 0x1d1   : > { %5867 = vmatmul.mubr.msk.f32.gmra.mxu1 %vm868_vm6, %v286_v18 }
 0x1d2   : > { %5869 = vmatprep.mubr.msk.f32.mxu1 %vm6547_vm4, %v6546_v2  ;;  %5755 = vmatmul.mubr.msk.f32.gmra.mxu0 %vm868_vm6, %v7150_v43 }
 0x1d3   : > { %5757 = vmatprep.mubr.msk.f32.mxu0 %vm6547_vm4, %v6546_v2 }
 0x1d5   : > { %5870 = vmatmul.mubr.msk.f32.gmra.mxu1 %vm868_vm6, %v7030_v19 }
 0x1d6   : > { %5872 = vmatprep.mubr.msk.f32.mxu1 %vm6547_vm4, %v6546_v2  ;;  %5758 = vmatmul.mubr.msk.f32.gmra.mxu0 %vm868_vm6, %v7163_v44 }
 0x1d7   : > { %5760 = vmatprep.mubr.msk.f32.mxu0 %vm6547_vm4, %v6546_v2 }
 0x1d9   : > { %5873 = vmatmul.mubr.msk.f32.gmra.mxu1 %vm868_vm6, %v7039_v20 }
 0x1da   : > { %5875 = vmatprep.mubr.msk.f32.mxu1 %vm6547_vm4, %v6546_v2  ;;  %5761 = vmatmul.mubr.msk.f32.gmra.mxu0 %vm868_vm6, %v7176_v45 }
 0x1db   : > { %5763 = vmatprep.mubr.msk.f32.mxu0 %vm6547_vm4, %v6546_v2 }
 0x1dd   : > { %5876 = vmatmul.mubr.msk.f32.gmra.mxu1 %vm868_vm6, %v7048_v21 }
 0x1de   : > { %5878 = vmatprep.mubr.msk.f32.mxu1 %vm6547_vm4, %v6546_v2  ;;  %5764 = vmatmul.mubr.msk.f32.gmra.mxu0 %vm868_vm6, %v7189_v0 }
 0x1df   : > { %5766 = vmatprep.mubr.msk.f32.mxu0 %vm6547_vm4, %v6546_v2 }
 0x1e1   : > { %5879 = vmatmul.mubr.msk.f32.gmra.mxu1 %vm868_vm6, %v7057_v25 }
 0x1e2   : > { %5881 = vmatprep.mubr.msk.f32.mxu1 %vm6547_vm4, %v6546_v2  ;;  %5767 = vmatmul.mubr.msk.f32.gmra.mxu0 %vm868_vm6, %v7202_v1 }
 0x1e3   : > { %5769 = vmatprep.mubr.msk.f32.mxu0 %vm6547_vm4, %v6546_v2 }
 0x1e5   : > { %5882 = vmatmul.mubr.msk.f32.gmra.mxu1 %vm868_vm6, %v7066_v31 }
 0x1e6   : > { %5884 = vmatprep.mubr.msk.f32.mxu1 %vm6547_vm4, %v6546_v2  ;;  %5770 = vmatmul.mubr.msk.f32.gmra.mxu0 %vm868_vm6, %v7215_v46 }
 0x1e7   : > { %5772 = vmatprep.mubr.msk.f32.mxu0 %vm6547_vm4, %v6546_v2 }
 0x1e9   : > { %5885 = vmatmul.mubr.msk.f32.gmra.mxu1 %vm868_vm6, %v7075_v34 }
 0x1ea   : > { %5887 = vmatprep.mubr.msk.f32.mxu1 %vm6547_vm4, %v6546_v2  ;;  %5773 = vmatmul.mubr.msk.f32.gmra.mxu0 %vm868_vm6, %v7228_v47 }
 0x1eb   : > { %5775 = vmatprep.mubr.msk.f32.mxu0 %vm6547_vm4, %v6546_v2 }
 0x1ed   : > { %5888 = vmatmul.mubr.msk.f32.gmra.mxu1 %vm868_vm6, %v7084_v35 }
 0x1ee   : > { %5890 = vmatprep.mubr.msk.f32.mxu1 %vm6547_vm4, %v6546_v2  ;;  %5776 = vmatmul.mubr.msk.f32.gmra.mxu0 %vm868_vm6, %v7241_v48 }
 0x1ef   : > { %5778 = vmatprep.mubr.msk.f32.mxu0 %vm6547_vm4, %v6546_v2 }
 0x1f1   : > { %5891 = vmatmul.mubr.msk.f32.gmra.mxu1 %vm868_vm6, %v7093_v36 }
 0x1f2   : > { %5893 = vmatprep.mubr.msk.f32.mxu1 %vm6547_vm4, %v6546_v2  ;;  %5779 = vmatmul.mubr.msk.f32.gmra.mxu0 %vm868_vm6, %v7254_v49 }
 0x1f3   : > { %5781 = vmatprep.mubr.msk.f32.mxu0 %vm6547_vm4, %v6546_v2 }
 0x1f5   : > { %5894 = vmatmul.mubr.msk.f32.gmra.mxu1 %vm868_vm6, %v7104_v38 }
 0x1f6   : > { %5896 = vmatprep.mubr.msk.f32.mxu1 %vm6547_vm4, %v6546_v2  ;;  %5782 = vmatmul.mubr.msk.f32.gmra.mxu0 %vm868_vm6, %v7267_v50 }
 0x1f7   : > { %5784 = vmatprep.mubr.msk.f32.mxu0 %vm6547_vm4, %v6546_v2 }
 0x1f9   : > { %5897 = vmatmul.mubr.msk.f32.gmra.mxu1 %vm868_vm6, %v7114_v40 }
 0x1fa   : > { %5899 = vmatprep.mubr.msk.f32.mxu1 %vm6547_vm4, %v6546_v2  ;;  %5785 = vmatmul.mubr.msk.f32.gmra.mxu0 %vm868_vm6, %v7280_v51 }
 0x1fb   : > { %5787 = vmatprep.mubr.msk.f32.mxu0 %vm6547_vm4, %v6546_v2 }
 0x1fd   : > { %5900 = vmatmul.mubr.msk.f32.gmra.mxu1 %vm868_vm6, %v7126_v41 }
 0x1fe   : > { %5902 = vmatprep.mubr.msk.f32.mxu1 %vm6547_vm4, %v6546_v2  ;;  %5788 = vmatmul.mubr.msk.f32.gmra.mxu0 %vm868_vm6, %v7293_v52 }
 0x1ff   : > { %5790 = vmatprep.mubr.msk.f32.mxu0 %vm6547_vm4, %v6546_v2 }
 0x201   : > { %5903 = vmatmul.mubr.msk.f32.gmra.mxu1 %vm868_vm6, %v7138_v42 }
 0x202   : > { %5905 = vmatprep.mubr.msk.f32.mxu1 %vm6547_vm4, %v6546_v2  ;;  %5791 = vmatmul.mubr.msk.f32.gmra.mxu0 %vm868_vm6, %v7306_v53 }
 0x203   : > { %5793 = vmatprep.mubr.msk.f32.mxu0 %vm6547_vm4, %v6546_v2 }
 0x205   : > { %5906 = vmatmul.mubr.msk.f32.gmra.mxu1 %vm868_vm6, %v7150_v43 }
 0x206   : > { %5908 = vmatprep.mubr.msk.f32.mxu1 %vm6547_vm4, %v6546_v2  ;;  %5794 = vmatmul.mubr.msk.f32.gmra.mxu0 %vm868_vm6, %v7319_v54 }
 0x207   : > { %5796 = vmatprep.mubr.msk.f32.mxu0 %vm6547_vm4, %v6546_v2 }
 0x209   : > { %5909 = vmatmul.mubr.msk.f32.gmra.mxu1 %vm868_vm6, %v7163_v44 }
 0x20a   : > { %5911 = vmatprep.mubr.msk.f32.mxu1 %vm6547_vm4, %v6546_v2  ;;  %5797 = vmatmul.mubr.msk.f32.gmra.mxu0 %vm868_vm6, %v7334_v56 }
 0x20b   : > { %5799 = vmatprep.mubr.msk.f32.mxu0 %vm6547_vm4, %v6546_v2 }
 0x20d   : > { %5912 = vmatmul.mubr.msk.f32.gmra.mxu1 %vm868_vm6, %v7176_v45 }
 0x20e   : > { %5914 = vmatprep.mubr.msk.f32.mxu1 %vm6547_vm4, %v6546_v2  ;;  %5800 = vmatmul.mubr.msk.f32.gmra.mxu0 %vm868_vm6, %v7349_v57 }
 0x20f   : > { %5802 = vmatprep.mubr.msk.f32.mxu0 %vm6547_vm4, %v6546_v2 }
 0x211   : > { %5915 = vmatmul.mubr.msk.f32.gmra.mxu1 %vm868_vm6, %v7189_v0 }
 0x212   : > { %5917 = vmatprep.mubr.msk.f32.mxu1 %vm6547_vm4, %v6546_v2  ;;  %5803 = vmatmul.mubr.msk.f32.gmra.mxu0 %vm868_vm6, %v7362_v58 }
 0x213   : > { %5805 = vmatprep.mubr.msk.f32.mxu0 %vm6547_vm4, %v6546_v2 }
 0x215   : > { %5918 = vmatmul.mubr.msk.f32.gmra.mxu1 %vm868_vm6, %v7202_v1 }
 0x216   : > { %5920 = vmatprep.mubr.msk.f32.mxu1 %vm6547_vm4, %v6546_v2  ;;  %5806 = vmatmul.mubr.msk.f32.gmra.mxu0 %vm868_vm6, %v7375_v59 }
 0x217   : > { %5808 = vmatprep.mubr.msk.f32.mxu0 %vm6547_vm4, %v6546_v2 }
 0x219   : > { %5921 = vmatmul.mubr.msk.f32.gmra.mxu1 %vm868_vm6, %v7215_v46 }
 0x21a   : > { %5923 = vmatprep.mubr.msk.f32.mxu1 %vm6547_vm4, %v6546_v2  ;;  %5809 = vmatmul.mubr.msk.f32.gmra.mxu0 %vm868_vm6, %v7388_v60 }
 0x21b   : > { %5811 = vmatprep.mubr.msk.f32.mxu0 %vm6547_vm4, %v6546_v2 }
 0x21d   : > { %5924 = vmatmul.mubr.msk.f32.gmra.mxu1 %vm868_vm6, %v7228_v47 }
 0x21e   : > { %5926 = vmatprep.mubr.msk.f32.mxu1 %vm6547_vm4, %v6546_v2  ;;  %5812 = vmatmul.mubr.msk.f32.gmra.mxu0 %vm868_vm6, %v7401_v61 }
 0x21f   : > { %5814 = vmatprep.mubr.msk.f32.mxu0 %vm6547_vm4, %v6546_v2 }
 0x221   : > { %5927 = vmatmul.mubr.msk.f32.gmra.mxu1 %vm868_vm6, %v7241_v48 }
 0x222   : > { %5929 = vmatprep.mubr.msk.f32.mxu1 %vm6547_vm4, %v6546_v2  ;;  %5815 = vmatmul.mubr.msk.f32.gmra.mxu0 %vm868_vm6, %v7414_v62 }
 0x223   : > { %5817 = vmatprep.mubr.msk.f32.mxu0 %vm6547_vm4, %v6546_v2 }
 0x225   : > { %5930 = vmatmul.mubr.msk.f32.gmra.mxu1 %vm868_vm6, %v7254_v49  ;;  %v7630_v49 = vld [vmem:[%s10346_s1 + $0x10] sm:$0xff] }
 0x226   : > { %5932 = vmatprep.mubr.msk.f32.mxu1 %vm6547_vm4, %v6546_v2  ;;  %5818 = vmatmul.mubr.msk.f32.gmra.mxu0 %vm868_vm6, %v7427_v63 }
 0x227   : > { %5820 = vmatprep.mubr.msk.f32.mxu0 %vm6547_vm4, %v6546_v2 }
 0x229   : > { %5933 = vmatmul.mubr.msk.f32.gmra.mxu1 %vm868_vm6, %v7267_v50 }
 0x22a   : > { %5935 = vmatprep.mubr.msk.f32.mxu1 %vm6547_vm4, %v6546_v2  ;;  %5821 = vmatmul.mubr.msk.f32.gmra.mxu0 %vm868_vm6, %v7440_v3 }
 0x22b   : > { %5823 = vmatprep.mubr.msk.f32.mxu0 %vm6547_vm4, %v6546_v2 }
 0x22d   : > { %5936 = vmatmul.mubr.msk.f32.gmra.mxu1 %vm868_vm6, %v7280_v51 }
 0x22e   : > { %5938 = vmatprep.mubr.msk.f32.mxu1 %vm6547_vm4, %v6546_v2  ;;  %5824 = vmatmul.mubr.msk.f32.gmra.mxu0 %vm868_vm6, %v322_v4 }
 0x22f   : > { %5826 = vmatprep.mubr.msk.f32.mxu0 %vm6547_vm4, %v6546_v2 }
 0x231   : > { %5939 = vmatmul.mubr.msk.f32.gmra.mxu1 %vm868_vm6, %v7293_v52 }
 0x232   : > { %5941 = vmatprep.mubr.msk.f32.mxu1 %vm6547_vm4, %v6546_v2  ;;  %5827 = vmatmul.mubr.msk.f32.gmra.mxu0 %vm868_vm6, %v323_v5 }
 0x233   : > { %5829 = vmatprep.mubr.msk.f32.mxu0 %vm6547_vm4, %v6546_v2 }
 0x235   : > { %5942 = vmatmul.mubr.msk.f32.gmra.mxu1 %vm868_vm6, %v7306_v53 }
 0x236   : > { %5944 = vmatprep.mubr.msk.f32.mxu1 %vm6547_vm4, %v6546_v2  ;;  %5830 = vmatmul.mubr.msk.f32.gmra.mxu0 %vm868_vm6, %v324_v6 }
 0x237   : > { %5832 = vmatprep.mubr.msk.f32.mxu0 %vm6547_vm4, %v6546_v2 }
 0x239   : > { %5945 = vmatmul.mubr.msk.f32.gmra.mxu1 %vm868_vm6, %v7319_v54 }
 0x23a   : > { %5947 = vmatprep.mubr.msk.f32.mxu1 %vm6547_vm4, %v6546_v2  ;;  %5833 = vmatmul.mubr.msk.f32.gmra.mxu0 %vm868_vm6, %v325_v7 }
 0x23b   : > { %5835 = vmatprep.mubr.msk.f32.mxu0 %vm6547_vm4, %v6546_v2 }
 0x23d   : > { %5948 = vmatmul.mubr.msk.f32.gmra.mxu1 %vm868_vm6, %v7334_v56 }
 0x23e   : > { %5950 = vmatprep.mubr.msk.f32.mxu1 %vm6547_vm4, %v6546_v2  ;;  %5836 = vmatmul.mubr.msk.f32.gmra.mxu0 %vm868_vm6, %v326_v8 }
 0x23f   : > { %5838 = vmatprep.mubr.msk.f32.mxu0 %vm6547_vm4, %v6546_v2 }
 0x241   : > { %5951 = vmatmul.mubr.msk.f32.gmra.mxu1 %vm868_vm6, %v7349_v57 }
 0x242   : > { %5953 = vmatprep.mubr.msk.f32.mxu1 %vm6547_vm4, %v6546_v2  ;;  %5839 = vmatmul.mubr.msk.f32.gmra.mxu0 %vm868_vm6, %v327_v9 }
 0x243   : > { %5841 = vmatprep.mubr.msk.f32.mxu0 %vm6547_vm4, %v6546_v2 }
 0x245   : > { %5954 = vmatmul.mubr.msk.f32.gmra.mxu1 %vm868_vm6, %v7362_v58 }
 0x246   : > { %5956 = vmatprep.mubr.msk.f32.mxu1 %vm6547_vm4, %v6546_v2  ;;  %5842 = vmatmul.mubr.msk.f32.gmra.mxu0 %vm868_vm6, %v328_v10 }
 0x247   : > { %5844 = vmatprep.mubr.msk.f32.mxu0 %vm6547_vm4, %v6546_v2 }
 0x249   : > { %5957 = vmatmul.mubr.msk.f32.gmra.mxu1 %vm868_vm6, %v7375_v59 }
 0x24a   : > { %5959 = vmatprep.mubr.msk.f32.mxu1 %vm6547_vm4, %v6546_v2  ;;  %5845 = vmatmul.mubr.msk.f32.gmra.mxu0 %vm868_vm6, %v329_v11 }
 0x24b   : > { %5847 = vmatprep.mubr.msk.f32.mxu0 %vm6547_vm4, %v6546_v2 }
 0x24d   : > { %5960 = vmatmul.mubr.msk.f32.gmra.mxu1 %vm868_vm6, %v7388_v60  ;;  %v7642_v60 = vld [vmem:[%s10346_s1 + $0x18] sm:$0xff] }
 0x24e   : > { %5962 = vmatprep.mubr.msk.f32.mxu1 %vm6547_vm4, %v6546_v2  ;;  %5848 = vmatmul.mubr.msk.f32.gmra.mxu0 %vm868_vm6, %v330_v12 }
 0x24f   : > { %5850 = vmatprep.mubr.msk.f32.mxu0 %vm6547_vm4, %v6546_v2 }
 0x251   : > { %5963 = vmatmul.mubr.msk.f32.gmra.mxu1 %vm868_vm6, %v7401_v61 }
 0x252   : > { %5965 = vmatprep.mubr.msk.f32.mxu1 %vm6547_vm4, %v6546_v2  ;;  %v1086_v14 = vpop.f32.mrf.mxu0  ;;  %5851 = vmatmul.mubr.msk.f32.gmra.mxu0 %vm868_vm6, %v331_v13 }
 0x254   : > { %v5708_v15 = vpop.f32.mrf.mxu0 }
 0x255   : > { %5966 = vmatmul.mubr.msk.f32.gmra.mxu1 %vm868_vm6, %v7414_v62  ;;  %v7647_v62 = vld [vmem:[%s10346_s1 + $0x20] sm:$0xff] }
 0x256   : > { %5968 = vmatprep.mubr.msk.f32.mxu1 %vm6547_vm4, %v6546_v2  ;;  %v7550_v16 = vpop.f32.mrf.mxu0 }
 0x258   : > { %v5711_v17 = vpop.f32.mrf.mxu0 }
 0x259   : > { %5969 = vmatmul.mubr.msk.f32.gmra.mxu1 %vm868_vm6, %v7427_v63 }
 0x25a   : > { %5971 = vmatprep.mubr.msk.f32.mxu1 %vm6547_vm4, %v6546_v2  ;;  %v7556_v18 = vpop.f32.mrf.mxu0 }
 0x25c   : > { %v5714_v19 = vpop.f32.mrf.mxu0 }
 0x25d   : > { %5972 = vmatmul.mubr.msk.f32.gmra.mxu1 %vm868_vm6, %v7440_v3 }
 0x25e   : > { %5974 = vmatprep.mubr.msk.f32.mxu1 %vm6547_vm4, %v6546_v2  ;;  %v7562_v20 = vpop.f32.mrf.mxu0 }
 0x260   : > { %v5717_v21 = vpop.f32.mrf.mxu0 }
 0x261   : > { %5975 = vmatmul.mubr.msk.f32.gmra.mxu1 %vm868_vm6, %v322_v4 }
 0x262   : > { %5977 = vmatprep.mubr.msk.f32.mxu1 %vm6547_vm4, %v6546_v2  ;;  %v7567_v22 = vpop.f32.mrf.mxu0 }
 0x264   : > { %v5720_v23 = vpop.f32.mrf.mxu0 }
 0x265   : > { %5978 = vmatmul.mubr.msk.f32.gmra.mxu1 %vm868_vm6, %v323_v5 }
 0x266   : > { %5980 = vmatprep.mubr.msk.f32.mxu1 %vm6547_vm4, %v6546_v2  ;;  %v7572_v24 = vpop.f32.mrf.mxu0 }
 0x268   : > { %v5723_v25 = vpop.f32.mrf.mxu0 }
 0x269   : > { %5981 = vmatmul.mubr.msk.f32.gmra.mxu1 %vm868_vm6, %v324_v6 }
 0x26a   : > { %5983 = vmatprep.mubr.msk.f32.mxu1 %vm6547_vm4, %v6546_v2  ;;  %v7577_v26 = vpop.f32.mrf.mxu0 }
 0x26c   : > { %v5726_v27 = vpop.f32.mrf.mxu0 }
 0x26d   : > { %5984 = vmatmul.mubr.msk.f32.gmra.mxu1 %vm868_vm6, %v325_v7 }
 0x26e   : > { %5986 = vmatprep.mubr.msk.f32.mxu1 %vm6547_vm4, %v6546_v2  ;;  %v7582_v28 = vpop.f32.mrf.mxu0 }
 0x270   : > { %v5729_v29 = vpop.f32.mrf.mxu0 }
 0x271   : > { %5987 = vmatmul.mubr.msk.f32.gmra.mxu1 %vm868_vm6, %v326_v8 }
 0x272   : > { %5989 = vmatprep.mubr.msk.f32.mxu1 %vm6547_vm4, %v6546_v2  ;;  %v7587_v30 = vpop.f32.mrf.mxu0 }
 0x274   : > { %v5732_v31 = vpop.f32.mrf.mxu0 }
 0x275   : > { %5990 = vmatmul.mubr.msk.f32.gmra.mxu1 %vm868_vm6, %v327_v9  ;;  %v7658_v9 = vld [vmem:[%s10346_s1 + $0x28] sm:$0xff] }
 0x276   : > { %5992 = vmatprep.mubr.msk.f32.mxu1 %vm6547_vm4, %v6546_v2  ;;  %v7592_v32 = vpop.f32.mrf.mxu0 }
 0x278   : > { %v5735_v33 = vpop.f32.mrf.mxu0 }
 0x279   : > { %5993 = vmatmul.mubr.msk.f32.gmra.mxu1 %vm868_vm6, %v328_v10 }
 0x27a   : > { %5995 = vmatprep.mubr.msk.f32.mxu1 %vm6547_vm4, %v6546_v2  ;;  %v7597_v34 = vpop.f32.mrf.mxu0 }
 0x27c   : > { %v5738_v35 = vpop.f32.mrf.mxu0 }
 0x27d   : > { %5996 = vmatmul.mubr.msk.f32.gmra.mxu1 %vm868_vm6, %v329_v11 }
 0x27e   : > { %5998 = vmatprep.mubr.msk.f32.mxu1 %vm6547_vm4, %v6546_v2  ;;  %v7602_v36 = vpop.f32.mrf.mxu0 }
 0x280   : > { %v5741_v37 = vpop.f32.mrf.mxu0 }
 0x281   : > { %5999 = vmatmul.mubr.msk.f32.gmra.mxu1 %vm868_vm6, %v330_v12  ;;  %v7687_v37 = vld [vmem:[%s10346_s1 + $0x40] sm:$0xff] }
 0x282   : > { %6001 = vmatprep.mubr.msk.f32.mxu1 %vm6547_vm4, %v6546_v2  ;;  %v7607_v38 = vpop.f32.mrf.mxu0  ;;  %v7621_v2 = vld [vmem:[%s10346_s1 + $0x8] sm:$0xff] }
 0x284   : > { %v5744_v40 = vpop.f32.mrf.mxu0 }
 0x285   : > { %v1399_v41 = vpop.f32.mrf.mxu1  ;;  %6002 = vmatmul.mubr.msk.f32.gmra.mxu1 %vm868_vm6, %v331_v13 }
 0x286   : > { %v1643_v42 = vmul.f32 %v1399_v41, %v7612_v39  ;;  %v7616_v43 = vpop.f32.mrf.mxu0 }
 0x287   : > { %v5859_v44 = vpop.f32.mrf.mxu1 }
 0x288   : > { %v1692_v45 = vmul.f32 %v1643_v42, %v1086_v14  ;;  %1988 = vperm.xlu1 %6020, %v1643_v42   ;;  %v5747_v0 = vpop.f32.mrf.mxu0 }
 0x289   : > { %v1404_v1 = vpop.f32.mrf.mxu1 }
 0x28a   : > { %v1644_v46 = vmul.f32 %v1404_v1, %v7621_v2  ;;  %1790 = vrot.lane.b32.xlu0 %v1692_v45, %s6549_s12  ;;  %v7625_v47 = vpop.f32.mrf.mxu0  ;;  %v7698_v45 = vld [vmem:[%s10346_s1 + $0x48] sm:$0xff] }
 0x28b   : > { %v5862_v48 = vpop.f32.mrf.mxu1 }
 0x28c   : > { %v1693_v50 = vmul.f32 %v1644_v46, %v7550_v16  ;;  %v5750_v51 = vpop.f32.mrf.mxu0  ;;  %v7668_v16 = vld [vmem:[%s10346_s1 + $0x30] sm:$0xff] }
 0x28d   : > { %v1409_v52 = vpop.f32.mrf.mxu1 }
 0x28e   : > { %v1645_v53 = vmul.f32 %v1409_v52, %v7630_v49  ;;  %1993 = vperm.xlu0 %6021, %v1644_v46   ;;  %1792 = vrot.lane.b32.xlu1 %v1693_v50, %s6549_s12  ;;  %v7635_v54 = vpop.f32.mrf.mxu0 }
 0x28f   : > { %v5865_v56 = vpop.f32.mrf.mxu1 }
 0x290   : > { %v5753_v57 = vpop.f32.mrf.mxu0  ;;  %v1694_v63 = vmul.f32 %v1645_v53, %v7556_v18 }
 0x291   : > { %v1414_v58 = vpop.f32.mrf.mxu1 }
 0x292   : > { %1998 = vperm.xlu1 %6020, %v1645_v53   ;;  %v7637_v59 = vpop.f32.mrf.mxu0  ;;  %v1646_v5 = vmul.f32 %v1414_v58, %v7642_v60  ;;  %v7709_v53 = vld [vmem:[%s10346_s1 + $0x50] sm:$0xff] }
 0x293   : > { %v5868_v61 = vpop.f32.mrf.mxu1 }
 0x294   : > { %v5756_v3 = vpop.f32.mrf.mxu0  ;;  %v1695_v17 = vmul.f32 %v1646_v5, %v7562_v20  ;;  %v7682_v20 = vld [vmem:[%s10346_s1 + $0x38] sm:$0xff] }
 0x295   : > { %v1419_v4 = vpop.f32.mrf.mxu1 }
 0x296   : > { %v1647_v6 = vmul.f32 %v1419_v4, %v7647_v62  ;;  %1794 = vrot.lane.b32.xlu1 %v1694_v63, %s6549_s12  ;;  %v7653_v7 = vpop.f32.mrf.mxu0 }
 0x297   : > { %v5871_v8 = vpop.f32.mrf.mxu1 }
 0x298   : > { %v1696_v10 = vmul.f32 %v1647_v6, %v7567_v22  ;;  %v5759_v11 = vpop.f32.mrf.mxu0 }
 0x299   : > { %v1424_v12 = vpop.f32.mrf.mxu1 }
 0x29a   : > { %v1648_v13 = vmul.f32 %v1424_v12, %v7658_v9  ;;  %2003 = vperm.xlu1 %6020, %v1646_v5   ;;  %1798 = vrot.lane.b32.xlu0 %v1696_v10, %s6549_s12  ;;  %v7663_v14 = vpop.f32.mrf.mxu0  ;;  %v7727_v10 = vld [vmem:[%s10346_s1 + $0x60] sm:$0xff] }
 0x29b   : > { %v5874_v15 = vpop.f32.mrf.mxu1 }
 0x29c   : > { %v5762_v18 = vpop.f32.mrf.mxu0  ;;  %v1697_v29 = vmul.f32 %v1648_v13, %v7572_v24 }
 0x29d   : > { %v1429_v19 = vpop.f32.mrf.mxu1 }
 0x29e   : > { %v1649_v21 = vmul.f32 %v1429_v19, %v7668_v16  ;;  %1796 = vrot.lane.b32.xlu1 %v1695_v17, %s6549_s12  ;;  %2013 = vperm.xlu0 %6021, %v1648_v13   ;;  %v7673_v22 = vpop.f32.mrf.mxu0  ;;  %v7738_v17 = vld [vmem:[%s10346_s1 + $0x68] sm:$0xff] }
 0x29f   : > { %v5877_v23 = vpop.f32.mrf.mxu1 }
 0x2a0   : > { %v5765_v25 = vpop.f32.mrf.mxu0  ;;  %v1698_v31 = vmul.f32 %v1649_v21, %v7577_v26 }
 0x2a1   : > { %v1434_v27 = vpop.f32.mrf.mxu1 }
 0x2a2   : > { %2008 = vperm.xlu1 %6020, %v1647_v6   ;;  %2018 = vperm.xlu0 %6021, %v1649_v21   ;;  %v7677_v33 = vpop.f32.mrf.mxu0  ;;  %v1650_v24 = vmul.f32 %v1434_v27, %v7682_v20  ;;  %v7722_v6 = vld [vmem:[%s10346_s1 + $0x58] sm:$0xff] }
 0x2a3   : > { %v5880_v35 = vpop.f32.mrf.mxu1 }
 0x2a4   : > { %v5768_v40 = vpop.f32.mrf.mxu0  ;;  %v1699_v48 = vmul.f32 %v1650_v24, %v7582_v28 }
 0x2a5   : > { %v1439_v41 = vpop.f32.mrf.mxu1 }
 0x2a6   : > { %v1651_v26 = vmul.f32 %v1439_v41, %v7687_v37  ;;  %1800 = vrot.lane.b32.xlu1 %v1697_v29, %s6549_s12  ;;  %1802 = vrot.lane.b32.xlu0 %v1698_v31, %s6549_s12  ;;  %v7693_v42 = vpop.f32.mrf.mxu0  ;;  %v7749_v31 = vld [vmem:[%s10346_s1 + $0x70] sm:$0xff] }
 0x2a7   : > { %v5883_v44 = vpop.f32.mrf.mxu1 }
 0x2a8   : > { %v1700_v0 = vmul.f32 %v1651_v26, %v7587_v30  ;;  %v5771_v1 = vpop.f32.mrf.mxu0 }
 0x2a9   : > { %v1444_v46 = vpop.f32.mrf.mxu1 }
 0x2aa   : > { %v1652_v50 = vmul.f32 %v1444_v46, %v7698_v45  ;;  %2023 = vperm.xlu1 %6020, %v1650_v24   ;;  %1806 = vrot.lane.b32.xlu0 %v1700_v0, %s6549_s12  ;;  %v7704_v51 = vpop.f32.mrf.mxu0  ;;  %v7762_v46 = vld [vmem:[%s10346_s1 + $0x78] sm:$0xff] }
 0x2ab   : > { %v5886_v52 = vpop.f32.mrf.mxu1 }
 0x2ac   : > { %v5774_v56 = vpop.f32.mrf.mxu0  ;;  %v1701_v3 = vmul.f32 %v1652_v50, %v7592_v32 }
 0x2ad   : > { %v1449_v57 = vpop.f32.mrf.mxu1 }
 0x2ae   : > { %v1653_v30 = vmul.f32 %v1449_v57, %v7709_v53  ;;  %1804 = vrot.lane.b32.xlu1 %v1699_v48, %s6549_s12  ;;  %2033 = vperm.xlu0 %6021, %v1652_v50   ;;  %v7713_v28 = vpop.f32.mrf.mxu0  ;;  %v242_v50 = vld [vmem:[%s10346_s1 + $0x80] sm:$0xff] }
 0x2af   : > { %v5889_v58 = vpop.f32.mrf.mxu1 }
 0x2b0   : > { %v5777_v61 = vpop.f32.mrf.mxu0  ;;  %v1702_v4 = vmul.f32 %v1653_v30, %v7597_v34  ;;  %v243_v58 = vld [vmem:[%s10346_s1 + $0x88] sm:$0xff] }
 0x2b1   : > { %v1454_v63 = vpop.f32.mrf.mxu1 }
 0x2b2   : > { %2028 = vperm.xlu1 %6020, %v1651_v26   ;;  %2038 = vperm.xlu0 %6021, %v1653_v30   ;;  %v7717_v5 = vpop.f32.mrf.mxu0  ;;  %v1654_v32 = vmul.f32 %v1454_v63, %v7722_v6 }
 0x2b3   : > { %v5892_v8 = vpop.f32.mrf.mxu1 }
 0x2b4   : > { %v5780_v11 = vpop.f32.mrf.mxu0  ;;  %v1703_v23 = vmul.f32 %v1654_v32, %v7602_v36 }
 0x2b5   : > { %v1459_v12 = vpop.f32.mrf.mxu1 }
 0x2b6   : > { %v1655_v34 = vmul.f32 %v1459_v12, %v7727_v10  ;;  %1808 = vrot.lane.b32.xlu1 %v1701_v3, %s6549_s12  ;;  %1810 = vrot.lane.b32.xlu0 %v1702_v4, %s6549_s12  ;;  %v7733_v13 = vpop.f32.mrf.mxu0 }
 0x2b7   : > { %v5895_v15 = vpop.f32.mrf.mxu1 }
 0x2b8   : > { %v1704_v18 = vmul.f32 %v1655_v34, %v7607_v38  ;;  %v5783_v19 = vpop.f32.mrf.mxu0 }
 0x2b9   : > { %v1464_v21 = vpop.f32.mrf.mxu1 }
 0x2ba   : > { %v1656_v25 = vmul.f32 %v1464_v21, %v7738_v17  ;;  %2043 = vperm.xlu1 %6020, %v1654_v32   ;;  %1814 = vrot.lane.b32.xlu0 %v1704_v18, %s6549_s12  ;;  %v7744_v27 = vpop.f32.mrf.mxu0  ;;  %v7788_v32 = vld [vmem:[%s10346_s1 + $0x90] sm:$0xff]  ;;  %v7801_v21 = vld [vmem:[%s10346_s1 + $0x98] sm:$0xff] }
 0x2bb   : > { %v5898_v29 = vpop.f32.mrf.mxu1  ;;  %10376 = vst [vmem:[#allocation3_spill] sm:$0xff] %v7788_v32  ;;  %10377 = vst [vmem:[#allocation4_spill] sm:$0xff] %v7801_v21 }
 0x2bc   : > { %v5786_v35 = vpop.f32.mrf.mxu0  ;;  %v1705_v44 = vmul.f32 %v1656_v25, %v7616_v43 }
 0x2bd   : > { %v1469_v40 = vpop.f32.mrf.mxu1 }
 0x2be   : > { %v1657_v38 = vmul.f32 %v1469_v40, %v7749_v31  ;;  %1812 = vrot.lane.b32.xlu1 %v1703_v23, %s6549_s12  ;;  %2053 = vperm.xlu0 %6021, %v1656_v25   ;;  %v7753_v36 = vpop.f32.mrf.mxu0 }
 0x2bf   : > { %v5901_v41 = vpop.f32.mrf.mxu1 }
 0x2c0   : > { %v5789_v24 = vpop.f32.mrf.mxu0  ;;  %v1706_v0 = vmul.f32 %v1657_v38, %v7625_v47 }
 0x2c1   : > { %v1474_v26 = vpop.f32.mrf.mxu1 }
 0x2c2   : > { %2048 = vperm.xlu1 %6020, %v1655_v34   ;;  %2058 = vperm.xlu0 %6021, %v1657_v38   ;;  %v7757_v1 = vpop.f32.mrf.mxu0  ;;  %v1658_v43 = vmul.f32 %v1474_v26, %v7762_v46  ;;  %v7815_v38 = vld [vmem:[%s10346_s1 + $0xa0] sm:$0xff] }
 0x2c3   : > { %v5904_v48 = vpop.f32.mrf.mxu1 }
 0x2c4   : > { %v5792_v52 = vpop.f32.mrf.mxu0  ;;  %v1707_v4 = vmul.f32 %v1658_v43, %v7635_v54  ;;  %v7828_v48 = vld [vmem:[%s10346_s1 + $0xa8] sm:$0xff] }
 0x2c5   : > { %v1479_v56 = vpop.f32.mrf.mxu1 }
 0x2c6   : > { %v7768_v57 = vmul.f32 %v1479_v56, %v242_v50  ;;  %1816 = vrot.lane.b32.xlu1 %v1705_v44, %s6549_s12  ;;  %1818 = vrot.lane.b32.xlu0 %v1706_v0, %s6549_s12  ;;  %v7772_v47 = vpop.f32.mrf.mxu0 }
 0x2c7   : > { %v5907_v30 = vpop.f32.mrf.mxu1 }
 0x2c8   : > { %v1708_v61 = vmul.f32 %v7768_v57, %v7637_v59  ;;  %v5795_v63 = vpop.f32.mrf.mxu0 }
 0x2c9   : > { %v1484_v3 = vpop.f32.mrf.mxu1 }
 0x2ca   : > { %v7780_v8 = vmul.f32 %v1484_v3, %v243_v58  ;;  %2063 = vperm.xlu1 %6020, %v1658_v43   ;;  %1822 = vrot.lane.b32.xlu0 %v1708_v61, %s6549_s12  ;;  %v7783_v11 = vpop.f32.mrf.mxu0  ;;  %v7841_v58 = vld [vmem:[%s10346_s1 + $0xb0] sm:$0xff] }
 0x2cb   : > { %v5910_v12 = vpop.f32.mrf.mxu1 }
 0x2cc   : > { %10375 = vst [vmem:[#allocation2_spill] sm:$0xff] %v7780_v8  ;;  %v5798_v34 = vpop.f32.mrf.mxu0  ;;  %v1709_v59 = vmul.f32 %v7780_v8, %v7653_v7  ;;  %v10354_v8 = vmov 1  }
 0x2cd   : > { %v1489_v15 = vpop.f32.mrf.mxu1  ;;  %v7854_v34 = vld [vmem:[%s10346_s1 + $0xb8] sm:$0xff] }
 0x2ce   : > { %v7793_v54 = vmul.f32 %v1489_v15, %v7788_v32  ;;  %1820 = vrot.lane.b32.xlu1 %v1707_v4, %s6549_s12  ;;  %v7796_v18 = vpop.f32.mrf.mxu0 }
 0x2cf   : > { %v5913_v19 = vpop.f32.mrf.mxu1 }
 0x2d0   : > { %v1710_v23 = vmul.f32 %v7793_v54, %v7663_v14  ;;  %v5801_v25 = vpop.f32.mrf.mxu0 }
 0x2d1   : > { %v1494_v29 = vpop.f32.mrf.mxu1 }
 0x2d2   : > { %v7806_v7 = vmul.f32 %v1494_v29, %v7801_v21  ;;  %1824 = vrot.lane.b32.xlu1 %v1709_v59, %s6549_s12  ;;  %1826 = vrot.lane.b32.xlu0 %v1710_v23, %s6549_s12  ;;  %v7810_v35 = vpop.f32.mrf.mxu0  ;;  %v7867_v29 = vld [vmem:[%s10346_s1 + $0xc0] sm:$0xff]  ;;  %v10390_v21 = vmov 0  }
 0x2d3   : > { %v5916_v40 = vpop.f32.mrf.mxu1 }
 0x2d4   : > { %v1711_v14 = vmul.f32 %v7806_v7, %v7673_v22  ;;  %v5804_v41 = vpop.f32.mrf.mxu0 }
 0x2d5   : > { %v1499_v24 = vpop.f32.mrf.mxu1 }
 0x2d6   : > { %v7820_v26 = vmul.f32 %v1499_v24, %v7815_v38  ;;  %1828 = vrot.lane.b32.xlu1 %v1711_v14, %s6549_s12  ;;  %v7823_v44 = vpop.f32.mrf.mxu0 }
 0x2d7   : > { %v5919_v0 = vpop.f32.mrf.mxu1 }
 0x2d8   : > { %v1712_v50 = vmul.f32 %v7820_v26, %v7677_v33  ;;  %v5807_v52 = vpop.f32.mrf.mxu0 }
 0x2d9   : > { %v1504_v22 = vpop.f32.mrf.mxu1 }
 0x2da   : > { %v7833_v56 = vmul.f32 %v1504_v22, %v7828_v48  ;;  %1830 = vrot.lane.b32.xlu0 %v1712_v50, %s6549_s12  ;;  %v7836_v43 = vpop.f32.mrf.mxu0  ;;  %v7880_v50 = vld [vmem:[%s10346_s1 + $0xc8] sm:$0xff] }
 0x2db   : > { %v5922_v30 = vpop.f32.mrf.mxu1  ;;  %10378 = vst [vmem:[#allocation5_spill] sm:$0xff] %v7880_v50 }
 0x2dc   : > { %v1713_v61 = vmul.f32 %v7833_v56, %v7693_v42  ;;  %v5810_v63 = vpop.f32.mrf.mxu0 }
 0x2dd   : > { %v1509_v33 = vpop.f32.mrf.mxu1 }
 0x2de   : > { %v7846_v3 = vmul.f32 %v1509_v33, %v7841_v58  ;;  %1832 = vrot.lane.b32.xlu1 %v1713_v61, %s6549_s12  ;;  %v7849_v4 = vpop.f32.mrf.mxu0  ;;  %v7893_v33 = vld [vmem:[%s10346_s1 + $0xd0] sm:$0xff] }
 0x2df   : > { %v5925_v12 = vpop.f32.mrf.mxu1  ;;  %10379 = vst [vmem:[#allocation6_spill] sm:$0xff] %v7893_v33 }
 0x2e0   : > { %v1714_v15 = vmul.f32 %v7846_v3, %v7704_v51  ;;  %v5813_v59 = vpop.f32.mrf.mxu0 }
 0x2e1   : > { %v1514_v42 = vpop.f32.mrf.mxu1 }
 0x2e2   : > { %v7859_v19 = vmul.f32 %v1514_v42, %v7854_v34  ;;  %1834 = vrot.lane.b32.xlu0 %v1714_v15, %s6549_s12  ;;  %v7862_v23 = vpop.f32.mrf.mxu0 }
 0x2e3   : > { %v5928_v25 = vpop.f32.mrf.mxu1 }
 0x2e4   : > { %v1715_v40 = vmul.f32 %v7859_v19, %v7713_v28  ;;  %v5816_v14 = vpop.f32.mrf.mxu0 }
 0x2e5   : > { %v1519_v51 = vpop.f32.mrf.mxu1 }
 0x2e6   : > { %v7872_v41 = vmul.f32 %v1519_v51, %v7867_v29  ;;  %1836 = vrot.lane.b32.xlu1 %v1715_v40, %s6549_s12  ;;  %v7875_v24 = vpop.f32.mrf.mxu0  ;;  %v7904_v40 = vld [vmem:[%s10346_s1 + $0xd8] sm:$0xff] }
 0x2e7   : > { %v5931_v0 = vpop.f32.mrf.mxu1  ;;  %10380 = vst [vmem:[#allocation7_spill] sm:$0xff] %v7904_v40 }
 0x2e8   : > { %v1716_v52 = vmul.f32 %v7872_v41, %v7717_v5  ;;  %v5819_v22 = vpop.f32.mrf.mxu0 }
 0x2e9   : > { %v1524_v28 = vpop.f32.mrf.mxu1 }
 0x2ea   : > { %v7885_v30 = vmul.f32 %v1524_v28, %v7880_v50  ;;  %1838 = vrot.lane.b32.xlu0 %v1716_v52, %s6549_s12  ;;  %v7888_v61 = vpop.f32.mrf.mxu0  ;;  %v7913_v28 = vld [vmem:[%s10346_s1 + $0xe0] sm:$0xff] }
 0x2eb   : > { %v5934_v63 = vpop.f32.mrf.mxu1  ;;  %10381 = vst [vmem:[#allocation8_spill] sm:$0xff] %v7913_v28 }
 0x2ec   : > { %v1717_v12 = vmul.f32 %v7885_v30, %v7733_v13  ;;  %v5822_v15 = vpop.f32.mrf.mxu0 }
 0x2ed   : > { %v1529_v5 = vpop.f32.mrf.mxu1 }
 0x2ee   : > { %v1669_v59 = vmul.f32 %v1529_v5, %v7893_v33  ;;  %1840 = vrot.lane.b32.xlu1 %v1717_v12, %s6549_s12  ;;  %v7899_v42 = vpop.f32.mrf.mxu0 }
 0x2ef   : > { %v5937_v25 = vpop.f32.mrf.mxu1 }
 0x2f0   : > { %2118 = vperm.xlu0 %6021, %v1669_v59   ;;  %v1718_v14 = vmul.f32 %v1669_v59, %v7744_v27  ;;  %v5825_v51 = vpop.f32.mrf.mxu0  ;;  %v7923_v25 = vld [vmem:[%s10346_s1 + $0xe8] sm:$0xff] }
 0x2f1   : > { %v1534_v0 = vpop.f32.mrf.mxu1  ;;  %10382 = vst [vmem:[#allocation9_spill] sm:$0xff] %v7923_v25 }
 0x2f2   : > { %v1670_v13 = vmul.f32 %v1534_v0, %v7904_v40  ;;  %v7908_v52 = vpop.f32.mrf.mxu0 }
 0x2f3   : > { %v5940_v22 = vpop.f32.mrf.mxu1 }
 0x2f4   : > { %1842 = vrot.lane.b32.xlu0 %v1718_v14, %s6549_s12  ;;  %2123 = vperm.xlu1 %6020, %v1670_v13   ;;  %v1719_v63 = vmul.f32 %v1670_v13, %v7753_v36  ;;  %v5828_v12 = vpop.f32.mrf.mxu0 }
 0x2f5   : > { %v1539_v15 = vpop.f32.mrf.mxu1  ;;  %v7933_v12 = vld [vmem:[%s10346_s1 + $0xf0] sm:$0xff] }
 0x2f6   : > { %v1671_v27 = vmul.f32 %v1539_v15, %v7913_v28  ;;  %v7918_v5 = vpop.f32.mrf.mxu0  ;;  %10383 = vst [vmem:[#allocation10_spill] sm:$0xff] %v7933_v12 }
 0x2f7   : > { %v5943_v59 = vpop.f32.mrf.mxu1 }
 0x2f8   : > { %1844 = vrot.lane.b32.xlu1 %v1719_v63, %s6549_s12  ;;  %2128 = vperm.xlu0 %6021, %v1671_v27   ;;  %v1720_v14 = vmul.f32 %v1671_v27, %v7757_v1  ;;  %v5831_v51 = vpop.f32.mrf.mxu0 }
 0x2f9   : > { %v1544_v0 = vpop.f32.mrf.mxu1 }
 0x2fa   : > { %v1672_v36 = vmul.f32 %v1544_v0, %v7923_v25  ;;  %v7928_v13 = vpop.f32.mrf.mxu0 }
 0x2fb   : > { %v5946_v22 = vpop.f32.mrf.mxu1 }
 0x2fc   : > { %1846 = vrot.lane.b32.xlu0 %v1720_v14, %s6549_s12  ;;  %2133 = vperm.xlu1 %6020, %v1672_v36   ;;  %v1721_v63 = vmul.f32 %v1672_v36, %v7772_v47  ;;  %v5834_v15 = vpop.f32.mrf.mxu0  ;;  %v1791_v51 = vpop.permute.xlu0 %1790 }
 0x2fd   : > { %v1549_v59 = vpop.f32.mrf.mxu1  ;;  %v1937_v47 = vsub.f32 %v7612_v39, %v1791_v51 }
 0x2fe   : > { %v1673_v1 = vmul.f32 %v1549_v59, %v7933_v12  ;;  %v7938_v27 = vpop.f32.mrf.mxu0 }
 0x2ff   : > { %v5949_v0 = vpop.f32.mrf.mxu1 }
 0x300   : > { %1848 = vrot.lane.b32.xlu1 %v1721_v63, %s6549_s12  ;;  %2138 = vperm.xlu0 %6021, %v1673_v1   ;;  %v1722_v22 = vmul.f32 %v1673_v1, %v7783_v11  ;;  %v5837_v55 = vpop.f32.mrf.mxu0  ;;  %v7951_v0 = vld [vmem:[%s10346_s1 + $0x100] sm:$0xff] }
 0x301   : > { %6022 = vset.pattern.permute.xlu1 %v10354_v8  ;;  %v1554_v14 = vpop.f32.mrf.mxu1  ;;  %10385 = vst [vmem:[#allocation12_spill] sm:$0xff] %v7951_v0 }
 0x302   : > { %v7944_v36 = vpop.f32.mrf.mxu0 }
 0x303   : > { %v7946_v15 = vpop.permute.xlu1 %1988  ;;  %v5952_v59 = vpop.f32.mrf.mxu1 }
 0x304   : > { %10384 = vst [vmem:[#allocation11_spill] sm:$0xff] %v7946_v15  ;;  %2282 = vperm.xlu1 %6022, %v1937_v47   ;;  %1850 = vrot.lane.b32.xlu0 %v1722_v22, %s6549_s12  ;;  %v5840_v55 = vpop.f32.mrf.mxu0  ;;  %v7964_v15 = vld [vmem:[%s10346_s1 + $0xf8] sm:$0xff] }
 0x305   : > { %v1559_v11 = vpop.f32.mrf.mxu1  ;;  %6025 = vset.pattern.permute.xlu0 %v10354_v8  ;;  %10387 = vst [vmem:[#allocation14_spill] sm:$0xff] %v7964_v15  ;;  %v1674_v8 = vmul.f32 %v1554_v14, %v7964_v15 }
 0x306   : > { %v7956_v63 = vmul.f32 %v1559_v11, %v7951_v0  ;;  %v7958_v39 = vpop.f32.mrf.mxu0 }
 0x307   : > { %v1793_v1 = vpop.permute.xlu1 %1792  ;;  %v5955_v51 = vpop.f32.mrf.mxu1 }
 0x308   : > { %10386 = vst [vmem:[#allocation13_spill] sm:$0xff] %v7956_v63  ;;  %v1938_v59 = vsub.f32 %v7621_v2, %v1793_v1  ;;  %v1724_v22 = vmul.f32 %v7956_v63, %v7810_v35  ;;  %v5843_v47 = vpop.f32.mrf.mxu0  ;;  %v7975_v2 = vld [vmem:[%s10346_s1 + $0x110] sm:$0xff] }
 0x309   : > { %v1564_v55 = vpop.f32.mrf.mxu1  ;;  %10388 = vst [vmem:[#allocation15_spill] sm:$0xff] %v7975_v2  ;;  %v7986_v32 = vpop.permute.xlu0 %1993 }
 0x30a   : > { %2287 = vperm.xlu1 %6022, %v1938_v59   ;;  %1854 = vrot.lane.b32.xlu0 %v1724_v22, %s6549_s12  ;;  %v7969_v11 = vpop.f32.mrf.mxu0  ;;  %v1723_v59 = vmul.f32 %v1674_v8, %v7796_v18  ;;  %10391 = vst [vmem:[#allocation17_spill] sm:$0xff] %v7986_v32 }
 0x30b   : > { %v5958_v51 = vpop.f32.mrf.mxu1 }
 0x30c   : > { %v5846_v1 = vpop.f32.mrf.mxu0 }
 0x30d   : > { %v7977_v0 = vpop.permute.xlu1 %1998  ;;  %v1569_v35 = vpop.f32.mrf.mxu1 }
 0x30e   : > { %10389 = vst [vmem:[#allocation16_spill] sm:$0xff] %v7977_v0  ;;  %6023 = vset.pattern.permute.xlu1 %v10390_v21  ;;  %v7980_v47 = vpop.f32.mrf.mxu0  ;;  %v7984_v22 = vmul.f32 %v1569_v35, %v7975_v2 }
 0x30f   : > { %2143 = vperm.xlu1 %6023, %v1674_v8   ;;  %v5961_v14 = vpop.f32.mrf.mxu1  ;;  %v10392_v8 = vmov 1  }
 0x310   : > { %v5849_v51 = vpop.f32.mrf.mxu0  ;;  %v1726_v1 = vmul.f32 %v7984_v22, %v7836_v43  ;;  %v1799_v14 = vpop.permute.xlu0 %1798 }
 0x311   : > { %v7988_v63 = vpop.permute.xlu1 %1794  ;;  %v1574_v0 = vpop.f32.mrf.mxu1  ;;  %v8000_v51 = vld [vmem:[%s10346_s1 + $0x108] sm:$0xff] }
 0x312   : > { %v7992_v15 = vpop.f32.mrf.mxu0  ;;  %1858 = vrot.lane.b32.xlu0 %v1726_v1, %s6549_s12  ;;  %10393 = vst [vmem:[#allocation18_spill] sm:$0xff] %v8000_v51  ;;  %v8005_v32 = vmul.f32 %v1564_v55, %v8000_v51  ;;  %v8019_v55 = vld [vmem:[%s10346_s1 + $0x120] sm:$0xff]  ;;  %v1941_v51 = vsub.f32 %v7647_v62, %v1799_v14 }
 0x313   : > { %1852 = vrot.lane.b32.xlu1 %v1723_v59, %s6549_s12  ;;  %v5964_v18 = vpop.f32.mrf.mxu1  ;;  %10398 = vst [vmem:[#allocation23_spill] sm:$0xff] %v8019_v55 }
 0x314   : > { %6024 = vset.pattern.permute.xlu1 %v10392_v8  ;;  %v5852_v35 = vpop.f32.mrf.mxu0 }
 0x315   : > { %v8002_v2 = vpop.permute.xlu1 %2003  ;;  %v1579_v43 = vpop.f32.mrf.mxu1  ;;  %v1725_v35 = vmul.f32 %v8005_v32, %v7823_v44  ;;  %v8028_v44 = vld [vmem:[%s10346_s1 + $0x118] sm:$0xff] }
 0x316   : > { %10394 = vst [vmem:[#allocation19_spill] sm:$0xff] %v8002_v2  ;;  %v8022_v2 = vmul.f32 %v1579_v43, %v8019_v55 }
 0x317   : > { %v5967_v12 = vpop.f32.mrf.mxu1 }
 0x319   : > { %v1797_v59 = vpop.permute.xlu1 %1796  ;;  %v8007_v25 = vpop.permute.xlu0 %2013 }
 0x31a   : > { %10395 = vst [vmem:[#allocation20_spill] sm:$0xff] %v8007_v25  ;;  %v1940_v1 = vsub.f32 %v7642_v60, %v1797_v59  ;;  %v1584_v18 = vpop.f32.mrf.mxu1 }
 0x31c   : > { %2297 = vperm.xlu1 %6024, %v1940_v1   ;;  %v5970_v28 = vpop.f32.mrf.mxu1  ;;  %v8033_v1 = vld [vmem:[%s10346_s1 + $0x130] sm:$0xff] }
 0x31d   : > { %v8012_v40 = vpop.permute.xlu1 %2008  ;;  %v8014_v33 = vpop.permute.xlu0 %2018  ;;  %10399 = vst [vmem:[#allocation24_spill] sm:$0xff] %v8033_v1 }
 0x31e   : > { %10396 = vst [vmem:[#allocation21_spill] sm:$0xff] %v8012_v40  ;;  %10397 = vst [vmem:[#allocation22_spill] sm:$0xff] %v8014_v33  ;;  %v1589_v12 = vpop.f32.mrf.mxu1 }
 0x31f   : > { %v8043_v40 = vmul.f32 %v1589_v12, %v8033_v1  ;;  %v8081_v1 = vld [vmem:[%s10346_s1 + $0x150] sm:$0xff] }
 0x320   : > { %1856 = vrot.lane.b32.xlu1 %v1725_v35, %s6549_s12  ;;  %v5973_v60 = vpop.f32.mrf.mxu1  ;;  %v8038_v35 = vmul.f32 %v1574_v0, %v8028_v44  ;;  %10405 = vst [vmem:[#allocation30_spill] sm:$0xff] %v8081_v1 }
 0x321   : > { %v1801_v28 = vpop.permute.xlu1 %1800  ;;  %v1803_v59 = vpop.permute.xlu0 %1802  ;;  %v1728_v60 = vmul.f32 %v8022_v2, %v7862_v23  ;;  %v1730_v0 = vmul.f32 %v8043_v40, %v7888_v61 }
 0x322   : > { %v1943_v43 = vsub.f32 %v7668_v16, %v1803_v59  ;;  %v1594_v55 = vpop.f32.mrf.mxu1  ;;  %v1942_v62 = vsub.f32 %v7658_v9, %v1801_v28  ;;  %v1727_v16 = vmul.f32 %v8038_v35, %v7849_v4 }
 0x324   : > { %2302 = vperm.xlu1 %6024, %v1941_v51   ;;  %2312 = vperm.xlu0 %6025, %v1943_v43   ;;  %v5976_v25 = vpop.f32.mrf.mxu1  ;;  %v8072_v43 = vld [vmem:[%s10346_s1 + $0x140] sm:$0xff] }
 0x325   : > { %v8045_v33 = vpop.permute.xlu1 %2023  ;;  %v1807_v50 = vpop.permute.xlu0 %1806  ;;  %v8056_v25 = vld [vmem:[%s10346_s1 + $0x128] sm:$0xff]  ;;  %10404 = vst [vmem:[#allocation29_spill] sm:$0xff] %v8072_v43 }
 0x326   : > { %10400 = vst [vmem:[#allocation25_spill] sm:$0xff] %v8045_v33  ;;  %v1599_v14 = vpop.f32.mrf.mxu1  ;;  %v8061_v28 = vmul.f32 %v1584_v18, %v8056_v25 }
 0x328   : > { %2307 = vperm.xlu1 %6024, %v1942_v62   ;;  %1862 = vrot.lane.b32.xlu0 %v1728_v60, %s6549_s12  ;;  %v5979_v23 = vpop.f32.mrf.mxu1  ;;  %v1729_v18 = vmul.f32 %v8061_v28, %v7875_v24 }
 0x329   : > { %v1805_v51 = vpop.permute.xlu1 %1804  ;;  %v8058_v12 = vpop.permute.xlu0 %2033 }
 0x32a   : > { %10401 = vst [vmem:[#allocation26_spill] sm:$0xff] %v8058_v12  ;;  %v1604_v9 = vpop.f32.mrf.mxu1  ;;  %v1944_v60 = vsub.f32 %v7682_v20, %v1805_v51  ;;  %v8090_v51 = vld [vmem:[%s10346_s1 + $0x138] sm:$0xff] }
 0x32c   : > { %1860 = vrot.lane.b32.xlu1 %v1727_v16, %s6549_s12  ;;  %1866 = vrot.lane.b32.xlu0 %v1730_v0, %s6549_s12  ;;  %v5982_v4 = vpop.f32.mrf.mxu1  ;;  %v1683_v16 = vmul.f32 %v1599_v14, %v8072_v43  ;;  %v1945_v43 = vsub.f32 %v7687_v37, %v1807_v50 }
 0x32d   : > { %v8065_v61 = vpop.permute.xlu1 %2028  ;;  %v8067_v59 = vpop.permute.xlu0 %2038 }
 0x32e   : > { %10402 = vst [vmem:[#allocation27_spill] sm:$0xff] %v8065_v61  ;;  %10403 = vst [vmem:[#allocation28_spill] sm:$0xff] %v8067_v59  ;;  %v1609_v62 = vpop.f32.mrf.mxu1  ;;  %v1732_v20 = vmul.f32 %v1683_v16, %v7908_v52  ;;  %v8098_v52 = vmul.f32 %v1594_v55, %v8090_v51 }
 0x32f   : > { %v1685_v24 = vmul.f32 %v1609_v62, %v8081_v1 }
 0x330   : > { %2317 = vperm.xlu1 %6024, %v1944_v60   ;;  %v5985_v0 = vpop.f32.mrf.mxu1 }
 0x331   : > { %v1809_v23 = vpop.permute.xlu1 %1808  ;;  %v1811_v4 = vpop.permute.xlu0 %1810 }
 0x332   : > { %v1947_v33 = vsub.f32 %v7709_v53, %v1811_v4  ;;  %v1614_v61 = vpop.f32.mrf.mxu1  ;;  %v8107_v4 = vld [vmem:[%s10346_s1 + $0x158] sm:$0xff]  ;;  %v1946_v37 = vsub.f32 %v7698_v45, %v1809_v23 }
 0x334   : > { %1864 = vrot.lane.b32.xlu1 %v1729_v18, %s6549_s12  ;;  %2332 = vperm.xlu0 %6025, %v1947_v33   ;;  %v5988_v14 = vpop.f32.mrf.mxu1  ;;  %v1734_v33 = vmul.f32 %v1685_v24, %v7928_v13  ;;  %v1686_v13 = vmul.f32 %v1614_v61, %v8107_v4 }
 0x335   : > { %v8092_v60 = vpop.permute.xlu1 %2043  ;;  %v1815_v0 = vpop.permute.xlu0 %1814 }
 0x336   : > { %10406 = vst [vmem:[#allocation31_spill] sm:$0xff] %v8092_v60  ;;  %v8095_v53 = vpop.f32.mrf.mxu1 }
 0x338   : > { %2322 = vperm.xlu1 %6024, %v1945_v43   ;;  %1870 = vrot.lane.b32.xlu0 %v1732_v20, %s6549_s12  ;;  %v5991_v62 = vpop.f32.mrf.mxu1  ;;  %v1731_v43 = vmul.f32 %v8098_v52, %v7899_v42  ;;  %v8126_v42 = vld [vmem:[%s10346_s1 + $0x148] sm:$0xff] }
 0x339   : > { %v8102_v18 = vpop.permute.xlu0 %2053  ;;  %6030 = vset.pattern.permute.xlu0 %v10390_v21  ;;  %v1813_v55 = vpop.permute.xlu1 %1812 }
 0x33a   : > { %v1624_v50 = vpop.f32.mrf.mxu1  ;;  %v1948_v59 = vsub.f32 %v7722_v6, %v1813_v55 }
 0x33c   : > { %2327 = vperm.xlu1 %6024, %v1946_v37   ;;  %1874 = vrot.lane.b32.xlu0 %v1734_v33, %s6549_s12  ;;  %v5994_v20 = vpop.f32.mrf.mxu1  ;;  %v8132_v37 = vld [vmem:[%s10346_s1 + $0x168] sm:$0xff] }
 0x33d   : > { %v8115_v14 = vpop.permute.xlu0 %2058  ;;  %v8120_v45 = vpop.permute.xlu1 %2048  ;;  %v1688_v20 = vmul.f32 %v1624_v50, %v8132_v37 }
 0x33e   : > { %v8117_v62 = vpop.f32.mrf.mxu1 }
 0x340   : > { %1868 = vrot.lane.b32.xlu1 %v1731_v43, %s6549_s12  ;;  %2203 = vperm.xlu0 %6030, %v1686_v13   ;;  %v5997_v1 = vpop.f32.mrf.mxu1  ;;  %v1684_v43 = vmul.f32 %v1604_v9, %v8126_v42  ;;  %v8145_v9 = vld [vmem:[%s10346_s1 + $0x178] sm:$0xff] }
 0x341   : > { %v1819_v23 = vpop.permute.xlu0 %1818  ;;  %6026 = vset.pattern.permute.xlu1 %v10390_v21  ;;  %v1817_v60 = vpop.permute.xlu1 %1816 }
 0x342   : > { %v1951_v61 = vsub.f32 %v7749_v31, %v1819_v23  ;;  %v1634_v33 = vpop.f32.mrf.mxu1  ;;  %v1733_v23 = vmul.f32 %v1684_v43, %v7918_v5  ;;  %v1949_v5 = vsub.f32 %v7727_v10, %v1815_v0  ;;  %v1950_v55 = vsub.f32 %v7738_v17, %v1817_v60 }
 0x343   : > { %v1690_v6 = vmul.f32 %v1634_v33, %v8145_v9  ;;  %v1735_v10 = vmul.f32 %v1686_v13, %v7938_v27 }
 0x344   : > { %2188 = vperm.xlu1 %6026, %v1683_v16   ;;  %6031 = vset.pattern.permute.xlu0 %v10392_v8  ;;  %v6000_v1 = vpop.f32.mrf.mxu1  ;;  %v1737_v16 = vmul.f32 %v1688_v20, %v7958_v39 }
 0x345   : > { %2352 = vperm.xlu0 %6031, %v1951_v61   ;;  %v8147_v50 = vpop.permute.xlu1 %2063  ;;  %v8173_v60 = vpop.permute.xlu0 %1822 }
 0x346   : > { %v1639_v12 = vpop.f32.mrf.mxu1 }
 0x348   : > { %6027 = vset.pattern.permute.xlu1 %v10392_v8  ;;  %v6003_v31 = vpop.f32.mrf.mxu1 }
 0x349   : > { %2337 = vperm.xlu1 %6027, %v1948_v59   ;;  %6034 = vset.pattern.permute.xlu0 %v10390_v21  ;;  %v1739_v59 = vmul.f32 %v1690_v6, %v7980_v47  ;;  %v1821_v39 = vpop.permute.xlu1 %1820  ;;  %v8164_v47 = vld [vmem:[%s10346_s1 + $0x160] sm:$0xff]  ;;  %v8177_v13 = vpop.permute.xlu0 %1826 }
 0x34a   : > { %2213 = vperm.xlu0 %6034, %v1688_v20   ;;  %v1687_v17 = vmul.f32 %v8095_v53, %v8164_v47  ;;  %v1952_v53 = vsub.f32 %v7762_v46, %v1821_v39 }
 0x34c   : > { %v1736_v0 = vmul.f32 %v1687_v17, %v7944_v36 }
 0x34d   : > { %1872 = vrot.lane.b32.xlu1 %v1733_v23, %s6549_s12  ;;  %v8157_v61 = vpop.permute.xlu1 %1824  ;;  %v1831_v33 = vpop.permute.xlu0 %1830 }
 0x34e   : > { %1880 = vrot.lane.b32.xlu0 %v1737_v16, %s6549_s12 }
 0x351   : > { %2342 = vperm.xlu1 %6027, %v1949_v5  }
 0x352   : > { %2223 = vperm.xlu0 %6034, %v1690_v6  }
 0x354   : > { %v1835_v1 = vpop.permute.xlu0 %1834 }
 0x355   : > { %6028 = vset.pattern.permute.xlu1 %v10390_v21  ;;  %v1959_v5 = vsub.f32 %v7841_v58, %v1835_v1  ;;  %v10407_v58 = vld [vmem:[#allocation5_spill] sm:$0xff] }
 0x356   : > { %2198 = vperm.xlu1 %6028, %v1685_v24   ;;  %1884 = vrot.lane.b32.xlu0 %v1739_v59, %s6549_s12  ;;  %v8167_v24 = vpop.permute.xlu1 %1828 }
 0x35a   : > { %6029 = vset.pattern.permute.xlu1 %v10392_v8  ;;  %2193 = vperm.xlu0 %6034, %v1684_v43   ;;  %v1833_v27 = vpop.permute.xlu1 %1832 }
 0x35b   : > { %2347 = vperm.xlu1 %6029, %v1950_v55   ;;  %v1958_v6 = vsub.f32 %v7828_v48, %v1833_v27 }
 0x35c   : > { %v1839_v20 = vpop.permute.xlu0 %1838 }
 0x35d   : > { %v1961_v48 = vsub.f32 %v7867_v29, %v1839_v20  ;;  %v10410_v20 = vld [vmem:[#allocation8_spill] sm:$0xff] }
 0x35e   : > { %2108 = vperm.xlu0 %6034, %v7872_v41   ;;  %v8180_v41 = vpop.permute.xlu1 %1836 }
 0x35f   : > { %1876 = vrot.lane.b32.xlu1 %v1735_v10, %s6549_s12 }
 0x360   : > { %6032 = vset.pattern.permute.xlu1 %v10390_v21 }
 0x362   : > { %2183 = vperm.xlu0 %6034, %v8098_v52   ;;  %v8189_v52 = vld [vmem:[%s10346_s1 + $0x170] sm:$0xff]  ;;  %v8191_v36 = vpop.permute.xlu1 %1840 }
 0x363   : > { %2208 = vperm.xlu1 %6032, %v1687_v17   ;;  %v1689_v46 = vmul.f32 %v8117_v62, %v8189_v52  ;;  %v1962_v17 = vsub.f32 %v10407_v58, %v8191_v36  ;;  %v10414_v58 = vld [vmem:[#allocation14_spill] sm:$0xff] }
 0x365   : > { %v1738_v31 = vmul.f32 %v1689_v46, %v7969_v11 }
 0x366   : > { %2098 = vperm.xlu0 %6034, %v7846_v3   ;;  %v8196_v3 = vld [vmem:[%s10346_s1 + $0x180] sm:$0x3f] }
 0x367   : > { %1878 = vrot.lane.b32.xlu1 %v1736_v0, %s6549_s12 }
 0x368   : > { %6033 = vset.pattern.permute.xlu1 %v10392_v8 }
 0x36a   : > { %2173 = vperm.xlu0 %6034, %v8061_v28   ;;  %v8202_v28 = vmul.f32 %v1639_v12, %v8196_v3 }
 0x36b   : > { %2357 = vperm.xlu1 %6033, %v1952_v53  }
 0x36c   : > { %v1740_v23 = vmul.f32 %v8202_v28, %v7992_v15 }
 0x36e   : > { %2088 = vperm.xlu0 %6034, %v7820_v26   ;;  %v8212_v26 = vpop.permute.xlu0 %2118 }
 0x36f   : > { %v8204_v43 = vpop.permute.xlu1 %2123  ;;  %6035 = vset.pattern.permute.xlu1 %v10390_v21 }
 0x370   : > { %2218 = vperm.xlu1 %6035, %v1689_v46  }
 0x372   : > { %2163 = vperm.xlu0 %6034, %v8038_v35   ;;  %v1843_v62 = vpop.permute.xlu0 %1842 }
 0x373   : > { %v1845_v16 = vpop.permute.xlu1 %1844 }
 0x374   : > { %1882 = vrot.lane.b32.xlu1 %v1738_v31, %s6549_s12 }
 0x376   : > { %1886 = vrot.lane.b32.xlu0 %v1740_v23, %s6549_s12  ;;  %v8222_v15 = vpop.permute.xlu0 %2128 }
 0x377   : > { %v8215_v12 = vpop.permute.xlu1 %2133 }
 0x378   : > { %2113 = vperm.xlu1 %6035, %v7885_v30   ;;  %v1939_v30 = vsub.f32 %v7630_v49, %v7988_v63 }
 0x37a   : > { %2078 = vperm.xlu0 %6034, %v7793_v54   ;;  %v1847_v54 = vpop.permute.xlu0 %1846 }
 0x37b   : > { %v1849_v11 = vpop.permute.xlu1 %1848  ;;  %v1965_v31 = vsub.f32 %v10410_v20, %v1847_v54 }
 0x37c   : > { %2178 = vperm.xlu1 %6035, %v8043_v40  }
 0x37e   : > { %2153 = vperm.xlu0 %6034, %v8005_v32   ;;  %v8235_v32 = vpop.permute.xlu0 %2138 }
 0x37f   : > { %v8225_v35 = vpop.permute.xlu1 %2282 }
 0x380   : > { %2103 = vperm.xlu1 %6035, %v7859_v19  }
 0x382   : > { %2068 = vperm.xlu0 %6034, %v7768_v57   ;;  %v1851_v19 = vpop.permute.xlu0 %1850 }
 0x384   : > { %2168 = vperm.xlu1 %6035, %v8022_v2   ;;  %v1957_v2 = vsub.f32 %v7815_v38, %v1831_v33  ;;  %v10409_v33 = vld [vmem:[#allocation7_spill] sm:$0xff] }
 0x385   : > { %v8231_v40 = vpop.permute.xlu1 %2287  ;;  %v1964_v29 = vsub.f32 %v10409_v33, %v1845_v16 }
 0x386   : > { %6039 = vset.pattern.permute.xlu0 %v10392_v8  ;;  %v8242_v63 = vpop.permute.xlu0 %1854 }
 0x387   : > { %2292 = vperm.xlu0 %6039, %v1939_v30   ;;  %v10411_v30 = vld [vmem:[#allocation9_spill] sm:$0xff] }
 0x388   : > { %2093 = vperm.xlu1 %6035, %v7833_v56  }
 0x38a   : > { %v8237_v57 = vpop.permute.xlu1 %2143 }
 0x38c   : > { %2158 = vperm.xlu1 %6035, %v7984_v22   ;;  %v8247_v22 = vpop.permute.xlu0 %1858 }
 0x38e   : > { %v1853_v49 = vpop.permute.xlu1 %1852 }
 0x38f   : > { %v1968_v54 = vsub.f32 %v10414_v58, %v1853_v49 }
 0x390   : > { %2083 = vperm.xlu1 %6035, %v7806_v7   ;;  %v1960_v7 = vsub.f32 %v7854_v34, %v8180_v41  ;;  %v10408_v34 = vld [vmem:[#allocation6_spill] sm:$0xff] }
 0x391   : > { %v1963_v41 = vsub.f32 %v10408_v34, %v1843_v62 }
 0x394   : > { %6036 = vset.pattern.permute.xlu1 %v10392_v8 }
 0x395   : > { %2382 = vperm.xlu1 %6036, %v1957_v2   ;;  %v1966_v2 = vsub.f32 %v10411_v30, %v1849_v11 }
 0x397   : > { %v8245_v56 = vpop.permute.xlu1 %2297 }
 0x399   : > { %2387 = vperm.xlu1 %6036, %v1958_v6  }
 0x39b   : > { %v8250_v59 = vpop.permute.xlu1 %1856 }
 0x39d   : > { %2392 = vperm.xlu1 %6036, %v1959_v5   ;;  %v10412_v5 = vld [vmem:[#allocation10_spill] sm:$0xff] }
 0x39e   : > { %v1967_v16 = vsub.f32 %v10412_v5, %v1851_v19 }
 0x39f   : > { %v8254_v38 = vpop.permute.xlu1 %2302  ;;  %v8256_v39 = vpop.permute.xlu0 %2312 }
 0x3a1   : > { %2397 = vperm.xlu1 %6036, %v1960_v7  }
 0x3a3   : > { %v8259_v55 = vpop.permute.xlu1 %2307  ;;  %v8261_v10 = vpop.permute.xlu0 %1862 }
 0x3a5   : > { %2402 = vperm.xlu1 %6036, %v1961_v48  }
 0x3a7   : > { %v8265_v27 = vpop.permute.xlu1 %1860  ;;  %v8267_v0 = vpop.permute.xlu0 %1866 }
 0x3a9   : > { %2407 = vperm.xlu1 %6036, %v1962_v17  }
 0x3ab   : > { %v8270_v53 = vpop.permute.xlu1 %2317 }
 0x3ad   : > { %2412 = vperm.xlu1 %6036, %v1963_v41  }
 0x3af   : > { %v1865_v1 = vpop.permute.xlu1 %1864  ;;  %v8273_v46 = vpop.permute.xlu0 %2332 }
 0x3b0   : > { %v1974_v41 = vsub.f32 %v8056_v25, %v1865_v1 }
 0x3b1   : > { %2417 = vperm.xlu1 %6036, %v1964_v29  }
 0x3b3   : > { %v8276_v23 = vpop.permute.xlu1 %2322  ;;  %v8278_v36 = vpop.permute.xlu0 %1870 }
 0x3b5   : > { %2422 = vperm.xlu1 %6036, %v1965_v31  }
 0x3b7   : > { %v8281_v6 = vpop.permute.xlu1 %2327  ;;  %v8283_v62 = vpop.permute.xlu0 %1874 }
 0x3b9   : > { %2427 = vperm.xlu1 %6036, %v1966_v2  }
 0x3bb   : > { %v1869_v7 = vpop.permute.xlu1 %1868  ;;  %v8286_v48 = vpop.permute.xlu0 %2203 }
 0x3bc   : > { %10413 = vst [vmem:[#allocation5_spill] sm:$0xff] %v8286_v48  ;;  %v1976_v29 = vsub.f32 %v8090_v51, %v1869_v7 }
 0x3bd   : > { %2432 = vperm.xlu1 %6036, %v1967_v16  }
 0x3bf   : > { %v8289_v17 = vpop.permute.xlu1 %2188 }
 0x3c0   : > { %10415 = vst [vmem:[#allocation6_spill] sm:$0xff] %v8289_v17  ;;  %v2353_v34 = vpop.permute.xlu0 %2352  ;;  %v6395_v17 = vld [vmem:[%s6613_s27 + $0x78] sm:$0xff] }
 0x3c1   : > { %2437 = vperm.xlu1 %6036, %v1968_v54  }
 0x3c4   : > { %v2338_v11 = vpop.permute.xlu1 %2337 }
 0x3c5   : > { %v8292_v33 = vpop.permute.xlu0 %2213  ;;  %2467 = vperm.xlu1 %6036, %v1974_v41  }
 0x3c8   : > { %v1873_v20 = vpop.permute.xlu1 %1872 }
 0x3c9   : > { %v1881_v19 = vpop.permute.xlu0 %1880  ;;  %2477 = vperm.xlu1 %6036, %v1976_v29   ;;  %v1978_v31 = vsub.f32 %v8126_v42, %v1873_v20 }
 0x3ca   : > { %v1982_v54 = vsub.f32 %v8132_v37, %v1881_v19 }
 0x3cc   : > { %v2343_v30 = vpop.permute.xlu1 %2342 }
 0x3cd   : > { %2487 = vperm.xlu1 %6036, %v1978_v31   ;;  %v8296_v49 = vpop.permute.xlu0 %2223  ;;  %v6394_v31 = vld [vmem:[%s6613_s27 + $0x70] sm:$0xff] }
 0x3d1   : > { %v8298_v2 = vpop.permute.xlu1 %2198  ;;  %v1885_v5 = vpop.permute.xlu0 %1884 }
 0x3d2   : > { %10416 = vst [vmem:[#allocation7_spill] sm:$0xff] %v8298_v2  ;;  %v1984_v41 = vsub.f32 %v8145_v9, %v1885_v5  ;;  %v1972_v9 = vsub.f32 %v8028_v44, %v8265_v27  ;;  %v6399_v44 = vld [vmem:[%s6613_s27 + $0x50] sm:$0xff] }
 0x3d3   : > { %v10421_v27 = vld [vmem:[#allocation28_spill] sm:$0xff] }
 0x3d5   : > { %v8300_v25 = vpop.permute.xlu0 %2193 }
 0x3d6   : > { %10417 = vst [vmem:[#allocation8_spill] sm:$0xff] %v8300_v25  ;;  %v2348_v1 = vpop.permute.xlu1 %2347  ;;  %v2245_v25 = vmul.f32 %v6394_v31, %v8115_v14 }
 0x3d8   : > { %v2539_v19 = vadd.f32 %v2353_v34, %v2245_v25  ;;  %v2241_v34 = vmul.f32 %v6399_v44, %v10421_v27 }
 0x3d9   : > { %v8302_v16 = vpop.permute.xlu0 %2108 }
 0x3da   : > { %v1877_v51 = vpop.permute.xlu1 %1876 }
 0x3db   : > { %v1980_v7 = vsub.f32 %v8107_v4, %v1877_v51  ;;  %v2246_v4 = vmul.f32 %v6395_v17, %v8147_v50  ;;  %v6398_v17 = vld [vmem:[%s6613_s27 + $0x58] sm:$0xff] }
 0x3dd   : > { %2497 = vperm.xlu1 %6036, %v1980_v7   ;;  %v8305_v42 = vpop.permute.xlu0 %2183 }
 0x3de   : > { %10418 = vst [vmem:[#allocation9_spill] sm:$0xff] %v8305_v42  ;;  %v8307_v58 = vpop.permute.xlu1 %2208  ;;  %v6396_v42 = vld [vmem:[%s6613_s27 + $0x68] sm:$0xff] }
 0x3df   : > { %v2244_v37 = vmul.f32 %v6396_v42, %v8102_v18  ;;  %v10422_v42 = vld [vmem:[#allocation13_spill] sm:$0xff] }
 0x3e1   : > { %2507 = vperm.xlu1 %6036, %v1982_v54   ;;  %v8311_v29 = vpop.permute.xlu0 %2098  ;;  %v6397_v54 = vld [vmem:[%s6613_s27 + $0x60] sm:$0xff]  ;;  %v2538_v31 = vadd.f32 %v2348_v1, %v2244_v37 }
 0x3e2   : > { %v1879_v20 = vpop.permute.xlu1 %1878  ;;  %v2243_v14 = vmul.f32 %v6397_v54, %v8120_v45 }
 0x3e4   : > { %v2537_v48 = vadd.f32 %v2343_v30, %v2243_v14  ;;  %v10423_v30 = vld [vmem:[#allocation26_spill] sm:$0xff] }
 0x3e5   : > { %2517 = vperm.xlu1 %6036, %v1984_v41   ;;  %v8317_v51 = vpop.permute.xlu0 %2173  ;;  %v10420_v41 = vld [vmem:[#allocation31_spill] sm:$0xff] }
 0x3e6   : > { %10419 = vst [vmem:[#allocation10_spill] sm:$0xff] %v8317_v51  ;;  %v2358_v7 = vpop.permute.xlu1 %2357  ;;  %v2242_v51 = vmul.f32 %v6398_v17, %v10420_v41  ;;  %v2580_v25 = vpack.c.bf16 %v2538_v31, %v2537_v48  ;;  %v10424_v48 = vld [vmem:[#allocation27_spill] sm:$0xff]  ;;  %v10426_v17 = vld [vmem:[#allocation25_spill] sm:$0xff] }
 0x3e7   : > { %v2540_v5 = vadd.f32 %v2358_v7, %v2246_v4  ;;  %v6400_v4 = vld [vmem:[%s6613_s27 + $0x48] sm:$0xff]  ;;  %v2535_v7 = vadd.f32 %v8273_v46, %v2241_v34  ;;  %v6402_v46 = vld [vmem:[%s6613_s27 + $0x38] sm:$0xff]  ;;  %v10427_v34 = vld [vmem:[#allocation22_spill] sm:$0xff] }
 0x3e8   : > { %v2536_v45 = vadd.f32 %v2338_v11, %v2242_v51  ;;  %v6401_v11 = vld [vmem:[%s6613_s27 + $0x40] sm:$0xff]  ;;  %v2238_v41 = vmul.f32 %v6402_v46, %v10426_v17 }
 0x3e9   : > { %v2581_v2 = vpack.c.bf16 %v2540_v5, %v2539_v19  ;;  %2457 = vperm.xlu1 %6036, %v1972_v9   ;;  %v8325_v50 = vpop.permute.xlu0 %2088  ;;  %v2239_v51 = vmul.f32 %v6401_v11, %v10424_v48  ;;  %v10425_v19 = vld [vmem:[#allocation3_spill] sm:$0xff]  ;;  %v10430_v11 = vld [vmem:[#allocation30_spill] sm:$0xff] }
 0x3ea   : > { %v1955_v5 = vsub.f32 %v10425_v19, %v8177_v13  ;;  %v2579_v14 = vpack.c.bf16 %v2536_v45, %v2535_v7  ;;  %v1981_v13 = vsub.f32 %v8164_v47, %v1879_v20  ;;  %v10429_v7 = vld [vmem:[#allocation20_spill] sm:$0xff]  ;;  %v1979_v48 = vsub.f32 %v10430_v11, %v8283_v62  ;;  %v10432_v62 = vld [vmem:[#allocation29_spill] sm:$0xff]  ;;  %v10433_v17 = vld [vmem:[#allocation2_spill] sm:$0xff] }
 0x3eb   : > { %3393 = vmatpush1.bf16.msra.mxu0 %v2581_v2  ;;  %v8329_v18 = vpop.permute.xlu1 %2218  ;;  %v2240_v2 = vmul.f32 %v6400_v4, %v10423_v30  ;;  %v2533_v44 = vadd.f32 %v8276_v23, %v2239_v51  ;;  %v2532_v4 = vadd.f32 %v8270_v53, %v2238_v41  ;;  %v6404_v23 = vld [vmem:[%s6613_s27 + $0x28] sm:$0xff]  ;;  %v10431_v53 = vld [vmem:[#allocation21_spill] sm:$0xff]  ;;  %v1977_v46 = vsub.f32 %v10432_v62, %v8278_v36  ;;  %v6406_v36 = vld [vmem:[%s6613_s27 + $0x10] sm:$0xff] }
 0x3ec   : > { %3394 = vmatprep.subr.bf16.mxu0 %v10390_v21 }
 0x3ed   : > { %6037 = vset.pattern.permute.xlu1 %v10390_v21  ;;  %v8335_v1 = vpop.permute.xlu0 %2163  ;;  %v2534_v54 = vadd.f32 %v8281_v6, %v2240_v2  ;;  %v6403_v6 = vld [vmem:[%s6613_s27 + $0x30] sm:$0xff] }
 0x3ee   : > { %2148 = vperm.xlu1 %6037, %v10422_v42   ;;  %v2237_v45 = vmul.f32 %v6403_v6, %v10427_v34  ;;  %v10435_v6 = vld [vmem:[#allocation24_spill] sm:$0xff] }
 0x3ef   : > { %3395 = vmatpush1.bf16.msra.mxu0 %v2580_v25  ;;  %v1883_v37 = vpop.permute.xlu1 %1882  ;;  %v10428_v25 = vld [vmem:[#allocation4_spill] sm:$0xff]  ;;  %v2578_v30 = vpack.c.bf16 %v2534_v54, %v2533_v44  ;;  %v1975_v34 = vsub.f32 %v10435_v6, %v8267_v0 }
 0x3f0   : > { %v1983_v9 = vsub.f32 %v8189_v52, %v1883_v37  ;;  %3396 = vmatprep.subr.bf16.mxu0 %v10390_v21  ;;  %v1956_v42 = vsub.f32 %v10428_v25, %v8167_v24  ;;  %v2236_v37 = vmul.f32 %v6404_v23, %v10429_v7  ;;  %v2531_v20 = vadd.f32 %v8256_v39, %v2237_v45  ;;  %v6405_v24 = vld [vmem:[%s6613_s27 + $0x20] sm:$0xff]  ;;  %v10436_v45 = vld [vmem:[#allocation16_spill] sm:$0xff]  ;;  %v6408_v23 = vld [vmem:[%s6613_s27 + $0x8] sm:$0xff] }
 0x3f1   : > { %v8348_v31 = vpop.permute.xlu0 %1886  ;;  %v2235_v51 = vmul.f32 %v6405_v24, %v10431_v53  ;;  %v2233_v25 = vmul.f32 %v6406_v36, %v10436_v45  ;;  %v10438_v7 = vld [vmem:[#allocation17_spill] sm:$0xff]  ;;  %v6409_v53 = vld [vmem:[%s6613_s27] sm:$0xff] }
 0x3f2   : > { %6038 = vset.pattern.permute.xlu1 %v10392_v8  ;;  %2512 = vperm.xlu0 %6039, %v1983_v9   ;;  %v2530_v19 = vadd.f32 %v8259_v55, %v2236_v37  ;;  %v2232_v37 = vmul.f32 %v6408_v23, %v10438_v7  ;;  %v6412_v23 = vld [vmem:[%s6613_s27 + $0xf0] sm:$0xff] }
 0x3f3   : > { %3397 = vmatpush1.bf16.msra.mxu0 %v2579_v14  ;;  %v8354_v27 = vpop.permute.xlu1 %2113  ;;  %2372 = vperm.xlu1 %6038, %v1955_v5   ;;  %v2577_v5 = vpack.c.bf16 %v2532_v4, %v2531_v20  ;;  %v2529_v39 = vadd.f32 %v8254_v38, %v2235_v51  ;;  %v10434_v38 = vld [vmem:[#allocation18_spill] sm:$0xff]  ;;  %v10437_v4 = vld [vmem:[#allocation19_spill] sm:$0xff]  ;;  %v2261_v7 = vmul.f32 %v6412_v23, %v8235_v32 }
 0x3f4   : > { %3398 = vmatprep.subr.bf16.mxu0 %v10390_v21  ;;  %v1970_v44 = vsub.f32 %v10434_v38, %v8250_v59  ;;  %v10440_v51 = vld [vmem:[#allocation11_spill] sm:$0xff]  ;;  %v8434_v38 = vld [vmem:[%s10346_s1 + $0x80] sm:$0xff] }
 0x3f5   : > { %v8363_v2 = vpop.permute.xlu0 %2078  ;;  %v2576_v55 = vpack.c.bf16 %v2530_v19, %v2529_v39  ;;  %v2231_v19 = vmul.f32 %v6409_v53, %v10440_v51  ;;  %v6422_v23 = vld [vmem:[%s6613_s27 + $0xa8] sm:$0xff] }
 0x3f6   : > { %2502 = vperm.xlu0 %6039, %v1981_v13  }
 0x3f7   : > { %3399 = vmatpush1.bf16.msra.mxu0 %v2578_v30  ;;  %v8368_v9 = vpop.permute.xlu1 %2178  ;;  %2377 = vperm.xlu1 %6038, %v1956_v42   ;;  %v6407_v42 = vld [vmem:[%s6613_s27 + $0x18] sm:$0xff]  ;;  %v2525_v62 = vadd.f32 %v8225_v35, %v2231_v19  ;;  %v6415_v19 = vld [vmem:[%s6613_s27 + $0xe0] sm:$0xff] }
 0x3f8   : > { %3400 = vmatprep.subr.bf16.mxu0 %v10390_v21  ;;  %v2234_v30 = vmul.f32 %v6407_v42, %v10437_v4 }
 0x3f9   : > { %v8376_v54 = vpop.permute.xlu0 %2153 }
 0x3fa   : > { %2492 = vperm.xlu0 %6039, %v1979_v48   ;;  %v2528_v20 = vadd.f32 %v8245_v56, %v2234_v30  ;;  %v10439_v48 = vld [vmem:[#allocation23_spill] sm:$0xff] }
 0x3fb   : > { %3401 = vmatpush1.bf16.msra.mxu0 %v2577_v5  ;;  %v8379_v14 = vpop.permute.xlu1 %2103  ;;  %6040 = vset.pattern.permute.xlu1 %v10390_v21  ;;  %v1973_v24 = vsub.f32 %v10439_v48, %v8261_v10  ;;  %v2526_v5 = vadd.f32 %v8231_v40, %v2232_v37  ;;  %v8421_v40 = vld [vmem:[%s10346_s1 + $0x88] sm:$0xff]  ;;  %v6413_v37 = vld [vmem:[%s6613_s27 + $0xf8] sm:$0xff] }
 0x3fc   : > { %2073 = vperm.xlu1 %6040, %v10433_v17   ;;  %3402 = vmatprep.subr.bf16.mxu0 %v10390_v21  ;;  %v1954_v10 = vsub.f32 %v8421_v40, %v8157_v61  ;;  %v1953_v61 = vsub.f32 %v8434_v38, %v8173_v60  ;;  %v6051_v60 = vld [vmem:[%s10349_s4 + $0xc] ss:$16 sps:$4 sm:$0xff]  }
 0x3fd   : > { %v8386_v41 = vpop.permute.xlu0 %2068  ;;  %5497 = vmatprep.mubr.msk.bf16.mxu1 %vm479_vm0, %v6051_v60  ;;  %v6414_v48 = vld [vmem:[%s6613_s27 + $0xe8] sm:$0xff] }
 0x3fe   : > { %2482 = vperm.xlu0 %6039, %v1977_v46   ;;  %v10441_v46 = vld [vmem:[#allocation15_spill] sm:$0xff] }
 0x3ff   : > { %3403 = vmatpush1.bf16.msra.mxu0 %v2576_v55  ;;  %v8390_v13 = vpop.permute.xlu1 %2168  ;;  %v1971_v17 = vsub.f32 %v10441_v46, %v8247_v22  ;;  %v10442_v22 = vld [vmem:[#allocation12_spill] sm:$0xff]  ;;  %v6416_v46 = vld [vmem:[%s6613_s27 + $0xd8] sm:$0xff] }
 0x400   : > { %6041 = vset.pattern.permute.xlu1 %v10392_v8  ;;  %3404 = vmatprep.subr.bf16.mxu0 %v10390_v21  ;;  %v1969_v55 = vsub.f32 %v10442_v22, %v8242_v63  ;;  %v6048_v63 = vld [vmem:[%s10349_s4 + $0x4] ss:$16 sps:$4 sm:$0xff]   ;;  %v2258_v32 = vmul.f32 %v6416_v46, %v8204_v43  ;;  %v6418_v22 = vld [vmem:[%s6613_s27 + $0xc8] sm:$0xff] }
 0x401   : > { %2447 = vperm.xlu1 %6041, %v1970_v44   ;;  %v1985_v44 = vsub.f32 %v8196_v3, %v8348_v31  ;;  %3424 = vmatprep.mubr.bf16.mxu0 %v6048_v63  ;;  %v6419_v43 = vld [vmem:[%s6613_s27 + $0xc0] sm:$0xff] }
 0x402   : > { %2472 = vperm.xlu0 %6039, %v1975_v34   ;;  %v2293_v59 = vpop.permute.xlu0 %2292  ;;  %v6431_v46 = vld [vmem:[%s10346_s1 + $0x40] sm:$0xff] }
 0x403   : > { %v2527_v0 = vadd.f32 %v2293_v59, %v2233_v25  ;;  %v8403_v11 = vpop.permute.xlu1 %2093 }
 0x405   : > { %v2575_v39 = vpack.c.bf16 %v2528_v20, %v2527_v0  ;;  %6042 = vset.pattern.permute.xlu1 %v10390_v21  ;;  %v2262_v20 = vmul.f32 %v6413_v37, %v8237_v57  ;;  %v6417_v57 = vld [vmem:[%s6613_s27 + $0xd0] sm:$0xff]  ;;  %v6423_v37 = vld [vmem:[%s6613_s27 + $0xa0] sm:$0xff] }
 0x406   : > { %2228 = vperm.xlu1 %6042, %v8202_v28   ;;  %2462 = vperm.xlu0 %6039, %v1973_v24   ;;  %v2574_v28 = vpack.c.bf16 %v2526_v5, %v2525_v62  ;;  %v2260_v24 = vmul.f32 %v6414_v48, %v8215_v12  ;;  %v2259_v5 = vmul.f32 %v6415_v19, %v8222_v15  ;;  %v6551_v48 = vmov 2   ;;  %v6428_v19 = vld [vmem:[%s10346_s1 + $0x18] sm:$0xff] }
 0x407   : > { %v8413_v56 = vpop.permute.xlu1 %2158  ;;  %3405 = vmatpush1.bf16.msra.mxu0 %v2575_v39  ;;  %v2257_v12 = vmul.f32 %v6417_v57, %v8212_v26  ;;  %v2256_v15 = vmul.f32 %v6418_v22, %v8354_v27  ;;  %v6420_v26 = vld [vmem:[%s6613_s27 + $0xb8] sm:$0xff]  ;;  %v6421_v27 = vld [vmem:[%s6613_s27 + $0xb0] sm:$0xff] }
 0x408   : > { %3406 = vmatprep.subr.bf16.mxu0 %v10390_v21  ;;  %v6433_v57 = vld [vmem:[%s6613_s27 + $0x170] sm:$0xff] }
 0x40a   : > { %6043 = vset.pattern.permute.xlu1 %v10392_v8  ;;  %2452 = vperm.xlu0 %6039, %v1971_v17  }
 0x40b   : > { %v8426_v35 = vpop.permute.xlu1 %2083  ;;  %2367 = vperm.xlu1 %6043, %v1954_v10   ;;  %3407 = vmatpush1.bf16.msra.mxu0 %v2574_v28 }
 0x40c   : > { %3408 = vmatprep.subr.bf16.mxu0 %v10390_v21 }
 0x40e   : > { %2442 = vperm.xlu0 %6039, %v1969_v55  }
 0x40f   : > { %6044 = vset.pattern.permute.xlu1 %v6551_v48 }
 0x410   : > { %v8438_v8 = vpop.permute.xlu1 %2382 }
 0x412   : > { %2362 = vperm.xlu0 %6039, %v1953_v61   ;;  %v2255_v61 = vmul.f32 %v6419_v43, %v8302_v16  ;;  %v2252_v16 = vmul.f32 %v6422_v23, %v8403_v11  ;;  %v6435_v43 = vld [vmem:[%s10346_s1 + $0x50] sm:$0xff] }
 0x414   : > { %v8445_v6 = vpop.permute.xlu1 %2387 }
 0x416   : > { %2522 = vperm.xlu0 %6039, %v1985_v44  }
 0x418   : > { %v2393_v34 = vpop.permute.xlu1 %2392 }
 0x41a   : > { %6045 = vset.pattern.permute.xlu0 %v6551_v48 }
 0x41c   : > { %v2398_v31 = vpop.permute.xlu1 %2397 }
 0x420   : > { %v2403_v36 = vpop.permute.xlu1 %2402 }
 0x424   : > { %v2408_v45 = vpop.permute.xlu1 %2407 }
 0x425   : > { %v2550_v44 = vadd.f32 %v2408_v45, %v2256_v15 }
 0x428   : > { %v2413_v25 = vpop.permute.xlu1 %2412 }
 0x429   : > { %v2551_v55 = vadd.f32 %v2413_v25, %v2257_v12  ;;  %v2253_v25 = vmul.f32 %v6421_v27, %v8311_v29  ;;  %v2277_v12 = vmul.f32 %v6433_v57, %v8329_v18 }
 0x42b   : > { %v2547_v45 = vadd.f32 %v2393_v34, %v2253_v25 }
 0x42c   : > { %v2418_v42 = vpop.permute.xlu1 %2417 }
 0x42d   : > { %v2552_v10 = vadd.f32 %v2418_v42, %v2258_v32  ;;  %v2254_v42 = vmul.f32 %v6420_v26, %v8379_v14  ;;  %v2251_v14 = vmul.f32 %v6423_v37, %v8325_v50  ;;  %v6424_v50 = vld [vmem:[%s10346_s1] sm:$0xff]  ;;  %v6432_v32 = vld [vmem:[%s6613_s27 + $0x178] sm:$0xff]  ;;  %v6438_v26 = vld [vmem:[%s6613_s27 + $0x90] sm:$0xff] }
 0x42e   : > { %2601 = vperm.xlu1 %6044, %v6424_v50  }
 0x42f   : > { %v2587_v63 = vpack.c.bf16 %v2552_v10, %v2551_v55  ;;  %v6434_v55 = vld [vmem:[%s10346_s1 + $0x38] sm:$0xff] }
 0x430   : > { %v2423_v4 = vpop.permute.xlu1 %2422 }
 0x431   : > { %v2553_v17 = vadd.f32 %v2423_v4, %v2259_v5  ;;  %v2549_v4 = vadd.f32 %v2403_v36, %v2255_v61  ;;  %v2546_v36 = vadd.f32 %v8445_v6, %v2252_v16  ;;  %v6429_v5 = vld [vmem:[%s10346_s1 + $0x30] sm:$0xff] }
 0x434   : > { %v2428_v30 = vpop.permute.xlu1 %2427 }
 0x435   : > { %v2554_v39 = vadd.f32 %v2428_v30, %v2260_v24  ;;  %v2548_v30 = vadd.f32 %v2398_v31, %v2254_v42  ;;  %v6426_v24 = vld [vmem:[%s10346_s1 + $0x10] sm:$0xff]  ;;  %v2249_v42 = vmul.f32 %v6438_v26, %v8363_v2  ;;  %v6441_v2 = vld [vmem:[%s10346_s1 + $0x60] sm:$0xff]  ;;  %v6452_v26 = vld [vmem:[%s6613_s27 + $0x128] sm:$0xff] }
 0x436   : > { %2611 = vperm.xlu1 %6044, %v6426_v24   ;;  %v10445_v24 = vld [vmem:[#allocation6_spill] sm:$0xff] }
 0x437   : > { %v2588_v28 = vpack.c.bf16 %v2554_v39, %v2553_v17  ;;  %v2278_v17 = vmul.f32 %v6432_v32, %v8296_v49  ;;  %v6436_v49 = vld [vmem:[%s6613_s27 + $0x168] sm:$0xff] }
 0x438   : > { %v2433_v59 = vpop.permute.xlu1 %2432  ;;  %v2276_v61 = vmul.f32 %v6436_v49, %v8292_v33  ;;  %v6440_v33 = vld [vmem:[%s10346_s1 + $0x48] sm:$0xff] }
 0x439   : > { %v2555_v53 = vadd.f32 %v2433_v59, %v2261_v7  ;;  %v2586_v59 = vpack.c.bf16 %v2550_v44, %v2549_v4  ;;  %v6437_v44 = vld [vmem:[%s6613_s27 + $0x160] sm:$0xff]  ;;  %v6439_v4 = vld [vmem:[%s6613_s27 + $0x98] sm:$0xff] }
 0x43a   : > { %2616 = vperm.xlu1 %6044, %v6428_v19   ;;  %v2275_v18 = vmul.f32 %v6437_v44, %v8307_v58  ;;  %v2250_v27 = vmul.f32 %v6439_v4, %v8426_v35  ;;  %v6442_v35 = vld [vmem:[%s6613_s27 + $0x158] sm:$0xff]  ;;  %v6446_v19 = vld [vmem:[%s6613_s27 + $0x148] sm:$0xff]  ;;  %v6453_v4 = vld [vmem:[%s6613_s27 + $0x120] sm:$0xff] }
 0x43c   : > { %v2438_v0 = vpop.permute.xlu1 %2437 }
 0x43d   : > { %v2556_v51 = vadd.f32 %v2438_v0, %v2262_v20  ;;  %v2585_v20 = vpack.c.bf16 %v2548_v30, %v2547_v45  ;;  %v2545_v0 = vadd.f32 %v8438_v8, %v2251_v14  ;;  %v6425_v8 = vld [vmem:[%s10346_s1 + $0x8] sm:$0xff]  ;;  %v10443_v45 = vld [vmem:[#allocation5_spill] sm:$0xff]  ;;  %v6443_v14 = vld [vmem:[%s6613_s27 + $0x150] sm:$0xff] }
 0x43e   : > { %2606 = vperm.xlu0 %6045, %v6425_v8   ;;  %v2274_v37 = vmul.f32 %v6442_v35, %v10443_v45  ;;  %v6444_v8 = vld [vmem:[%s10346_s1 + $0x58] sm:$0xff] }
 0x43f   : > { %v2589_v62 = vpack.c.bf16 %v2556_v51, %v2555_v53  ;;  %v2584_v29 = vpack.c.bf16 %v2546_v36, %v2545_v0  ;;  %v6427_v53 = vld [vmem:[%s10346_s1 + $0x20] sm:$0xff]  ;;  %v10444_v36 = vld [vmem:[#allocation7_spill] sm:$0xff] }
 0x440   : > { %v8469_v60 = vpop.permute.xlu1 %2467 }
 0x441   : > { %3409 = vmatpush2.bf16.msra.mxu0 %v2589_v62  ;;  %v6430_v62 = vld [vmem:[%s10346_s1 + $0x28] sm:$0xff] }
 0x442   : > { %3410 = vmatprep.subr.bf16.mxu0 %v10390_v21  ;;  %2621 = vperm.xlu0 %6045, %v6427_v53  }
 0x443   : > { %2626 = vperm.xlu1 %6044, %v6430_v62  }
 0x444   : > { %v8478_v7 = vpop.permute.xlu1 %2477 }
 0x445   : > { %3411 = vmatpush2.bf16.msra.mxu0 %v2588_v28 }
 0x446   : > { %3412 = vmatprep.subr.bf16.mxu0 %v10390_v21  ;;  %2631 = vperm.xlu0 %6045, %v6429_v5   ;;  %v10446_v5 = vld [vmem:[#allocation8_spill] sm:$0xff] }
 0x447   : > { %2636 = vperm.xlu1 %6044, %v6434_v55   ;;  %v2272_v62 = vmul.f32 %v6446_v19, %v10446_v5  ;;  %v6450_v55 = vld [vmem:[%s6613_s27 + $0x130] sm:$0xff] }
 0x448   : > { %v8486_v31 = vpop.permute.xlu1 %2487 }
 0x449   : > { %3413 = vmatpush2.bf16.msra.mxu0 %v2587_v63  ;;  %v2566_v57 = vadd.f32 %v8486_v31, %v2272_v62 }
 0x44a   : > { %3414 = vmatprep.subr.bf16.mxu0 %v10390_v21  ;;  %2641 = vperm.xlu0 %6045, %v6431_v46  }
 0x44b   : > { %2646 = vperm.xlu1 %6044, %v6440_v33  }
 0x44d   : > { %3415 = vmatpush2.bf16.msra.mxu0 %v2586_v59 }
 0x44e   : > { %3416 = vmatprep.subr.bf16.mxu0 %v10390_v21  ;;  %2651 = vperm.xlu0 %6045, %v6435_v43   ;;  %v2269_v43 = vmul.f32 %v6450_v55, %v8368_v9  ;;  %v10448_v9 = vld [vmem:[#allocation10_spill] sm:$0xff] }
 0x44f   : > { %2656 = vperm.xlu1 %6044, %v6444_v8   ;;  %v6464_v8 = vld [vmem:[%s6613_s27 + $0x88] sm:$0xff] }
 0x451   : > { %3417 = vmatpush2.bf16.msra.mxu0 %v2585_v20  ;;  %v2273_v20 = vmul.f32 %v6443_v14, %v10444_v36  ;;  %v6460_v14 = vld [vmem:[%s6613_s27 + $0x100] sm:$0xff] }
 0x452   : > { %3418 = vmatprep.subr.bf16.mxu0 %v10390_v21  ;;  %2661 = vperm.xlu0 %6045, %v6441_v2   ;;  %v6457_v2 = vld [vmem:[%s10346_s1 + $0xa0] sm:$0xff] }
 0x455   : > { %3419 = vmatpush2.bf16.msra.mxu0 %v2584_v29 }
 0x456   : > { %3420 = vmatprep.subr.bf16.mxu0 %v10390_v21 }
 0x458   : > { %v8489_v11 = vpop.permute.xlu1 %2497 }
 0x459   : > { %v2568_v48 = vadd.f32 %v8489_v11, %v2274_v37  ;;  %v6447_v11 = vld [vmem:[%s10346_s1 + $0x70] sm:$0xff] }
 0x45a   : > { %2671 = vperm.xlu0 %6045, %v6447_v11  }
 0x45c   : > { %v2508_v34 = vpop.permute.xlu1 %2507 }
 0x45d   : > { %v2570_v30 = vadd.f32 %v2508_v34, %v2276_v61 }
 0x45e   : > { %2681 = vperm.xlu0 %6045, %v8434_v38   ;;  %v2267_v38 = vmul.f32 %v6453_v4, %v8390_v13  ;;  %v6456_v13 = vld [vmem:[%s6613_s27 + $0x110] sm:$0xff]  ;;  %v6061_v4 = vld [vmem:[%s10349_s4 + $0x4c] ss:$16 sps:$4 sm:$0xff]  }
 0x460   : > { %v2518_v6 = vpop.permute.xlu1 %2517 }
 0x461   : > { %v2572_v28 = vadd.f32 %v2518_v6, %v2278_v17  ;;  %v6445_v6 = vld [vmem:[%s6613_s27 + $0x140] sm:$0xff] }
 0x462   : > { %v2271_v53 = vmul.f32 %v6445_v6, %v10445_v24 }
 0x464   : > { %v8503_v51 = vpop.permute.xlu1 %2457 }
 0x469   : > { %v8511_v39 = vpop.permute.xlu1 %2148 }
 0x46a   : > { %v2263_v36 = vmul.f32 %v6460_v14, %v8511_v39  ;;  %v6463_v39 = vld [vmem:[%s6613_s27 + $0x80] sm:$0xff]  ;;  %v6485_v14 = vld [vmem:[%s10346_s1 + $0x148] sm:$0xff] }
 0x46d   : > { %v2513_v10 = vpop.permute.xlu0 %2512 }
 0x46e   : > { %v2571_v22 = vadd.f32 %v2513_v10, %v2277_v12  ;;  %v2373_v15 = vpop.permute.xlu1 %2372  ;;  %v6448_v10 = vld [vmem:[%s10346_s1 + $0x68] sm:$0xff] }
 0x46f   : > { %v2543_v58 = vadd.f32 %v2373_v15, %v2249_v42  ;;  %2666 = vperm.xlu1 %6044, %v6448_v10   ;;  %v2268_v42 = vmul.f32 %v6452_v26, %v10448_v9  ;;  %v6474_v26 = vld [vmem:[%s10346_s1 + $0x100] sm:$0xff]  ;;  %v6057_v9 = vld [vmem:[%s10349_s4 + $0x28] ss:$16 sps:$4 sm:$0xff]  }
 0x470   : > { %v2597_v63 = vpack.c.bf16 %v2572_v28, %v2571_v22  ;;  %v6449_v28 = vld [vmem:[%s6613_s27 + $0x138] sm:$0xff] }
 0x471   : > { %v2503_v25 = vpop.permute.xlu0 %2502  ;;  %v10447_v22 = vld [vmem:[#allocation9_spill] sm:$0xff] }
 0x472   : > { %v2569_v59 = vadd.f32 %v2503_v25, %v2275_v18  ;;  %v2378_v23 = vpop.permute.xlu1 %2377  ;;  %3625 = vmatpush1.bf16.msra.mxu1 %v2597_v63  ;;  %v2270_v15 = vmul.f32 %v6449_v28, %v10447_v22  ;;  %v6451_v18 = vld [vmem:[%s10346_s1 + $0x78] sm:$0xff]  ;;  %v6054_v28 = vld [vmem:[%s10349_s4 + $0x24] ss:$16 sps:$4 sm:$0xff]  }
 0x473   : > { %v2544_v16 = vadd.f32 %v2378_v23, %v2250_v27  ;;  %3626 = vmatprep.subr.bf16.mxu1 %v10390_v21  ;;  %2676 = vperm.xlu1 %6044, %v6451_v18   ;;  %v6455_v23 = vld [vmem:[%s6613_s27 + $0x118] sm:$0xff]  ;;  %v6060_v18 = vld [vmem:[%s10349_s4 + $0x44] ss:$16 sps:$4 sm:$0xff]  }
 0x474   : > { %v2596_v0 = vpack.c.bf16 %v2570_v30, %v2569_v59  ;;  %v2564_v61 = vadd.f32 %v8478_v7, %v2270_v15  ;;  %v6454_v7 = vld [vmem:[%s10346_s1 + $0x90] sm:$0xff]  ;;  %v2562_v30 = vadd.f32 %v8469_v60, %v2268_v42  ;;  %v2266_v33 = vmul.f32 %v6455_v23, %v8335_v1  ;;  %v6458_v1 = vld [vmem:[%s10346_s1 + $0x98] sm:$0xff]  ;;  %v6470_v15 = vld [vmem:[%s10346_s1 + $0xe0] sm:$0xff] }
 0x475   : > { %v2583_v29 = vpack.c.bf16 %v2544_v16, %v2543_v58  ;;  %v2493_v34 = vpop.permute.xlu0 %2492  ;;  %2691 = vperm.xlu0 %6045, %v6454_v7   ;;  %v2265_v58 = vmul.f32 %v6456_v13, %v8413_v56  ;;  %v6459_v56 = vld [vmem:[%s6613_s27 + $0x108] sm:$0xff]  ;;  %v6475_v42 = vld [vmem:[%s10346_s1 + $0xf8] sm:$0xff]  ;;  %v6066_v7 = vld [vmem:[%s10349_s4 + $0x64] ss:$16 sps:$4 sm:$0xff]  }
 0x476   : > { %v2567_v50 = vadd.f32 %v2493_v34, %v2273_v20  ;;  %3627 = vmatpush1.bf16.msra.mxu1 %v2596_v0  ;;  %v2264_v37 = vmul.f32 %v6459_v56, %v8376_v54  ;;  %v6479_v23 = vld [vmem:[%s10346_s1 + $0x118] sm:$0xff]  ;;  %v6480_v13 = vld [vmem:[%s10346_s1 + $0x130] sm:$0xff] }
 0x477   : > { %3421 = vmatpush2.bf16.msra.mxu0 %v2583_v29  ;;  %3628 = vmatprep.subr.bf16.mxu1 %v10390_v21  ;;  %v8561_v32 = vpop.permute.xlu1 %2073  ;;  %v6070_v56 = vld [vmem:[%s10349_s4 + $0x80] ss:$16 sps:$4 sm:$0xff]  }
 0x478   : > { %v2595_v46 = vpack.c.bf16 %v2568_v48, %v2567_v50  ;;  %3422 = vmatprep.subr.bf16.mxu0 %v10390_v21  ;;  %2686 = vperm.xlu1 %6044, %v8421_v40   ;;  %v2560_v40 = vadd.f32 %v8503_v51, %v2266_v33  ;;  %v6461_v51 = vld [vmem:[%s10346_s1 + $0xb0] sm:$0xff]  ;;  %v6462_v48 = vld [vmem:[%s10346_s1 + $0xa8] sm:$0xff]  ;;  %v2247_v50 = vmul.f32 %v6463_v39, %v8386_v41  ;;  %v6467_v41 = vld [vmem:[%s6613_s27 + $0x180] sm:$0x3f] }
 0x479   : > { %v2483_v17 = vpop.permute.xlu0 %2482  ;;  %2701 = vperm.xlu0 %6045, %v6457_v2   ;;  %v2248_v6 = vmul.f32 %v6464_v8, %v8561_v32  ;;  %v6067_v33 = vld [vmem:[%s10349_s4 + $0x6c] ss:$16 sps:$4 sm:$0xff]   ;;  %v6087_v39 = vld [vmem:[%s10349_s4 + $0xc8] ss:$16 sps:$4 sm:$0xff]   ;;  %v6088_v8 = vld [vmem:[%s10349_s4 + $0xe0] ss:$16 sps:$4 sm:$0xff]  }
 0x47a   : > { %v2565_v12 = vadd.f32 %v2483_v17, %v2271_v53  ;;  %3629 = vmatpush1.bf16.msra.mxu1 %v2595_v46  ;;  %v6465_v53 = vld [vmem:[%s10346_s1 + $0xc0] sm:$0xff]  ;;  %v6466_v46 = vld [vmem:[%s10346_s1 + $0xb8] sm:$0xff]  ;;  %v6468_v17 = vld [vmem:[%s10346_s1 + $0xd0] sm:$0xff] }
 0x47b   : > { %3630 = vmatprep.subr.bf16.mxu1 %v10390_v21  ;;  %v6481_v2 = vld [vmem:[%s10346_s1 + $0x128] sm:$0xff] }
 0x47c   : > { %v2594_v49 = vpack.c.bf16 %v2566_v57, %v2565_v12  ;;  %v2448_v63 = vpop.permute.xlu1 %2447  ;;  %2696 = vperm.xlu1 %6044, %v6458_v1   ;;  %v6046_v12 = vld [vmem:[%s10349_s4] ss:$16 sps:$4 sm:$0xff]  }
 0x47d   : > { %v2473_v31 = vpop.permute.xlu0 %2472  ;;  %2711 = vperm.xlu0 %6045, %v6461_v51   ;;  %v2558_v29 = vadd.f32 %v2448_v63, %v2264_v37  ;;  %v6473_v63 = vld [vmem:[%s10346_s1 + $0xe8] sm:$0xff]  ;;  %v6484_v1 = vld [vmem:[%s10346_s1 + $0x150] sm:$0xff] }
 0x47e   : > { %v2563_v44 = vadd.f32 %v2473_v31, %v2269_v43  ;;  %3631 = vmatpush1.bf16.msra.mxu1 %v2594_v49  ;;  %v6049_v43 = vld [vmem:[%s10349_s4 + $0x8] ss:$16 sps:$4 sm:$0xff]   ;;  %v6055_v31 = vld [vmem:[%s10349_s4 + $0x2c] ss:$16 sps:$4 sm:$0xff]   ;;  %v6078_v37 = vld [vmem:[%s10349_s4 + $0xa4] ss:$16 sps:$4 sm:$0xff]  }
 0x47f   : > { %3632 = vmatprep.subr.bf16.mxu1 %v10390_v21  ;;  %v6471_v49 = vld [vmem:[%s10346_s1 + $0xd8] sm:$0xff] }
 0x480   : > { %v2593_v27 = vpack.c.bf16 %v2564_v61, %v2563_v44  ;;  %2706 = vperm.xlu1 %6044, %v6462_v48   ;;  %v6472_v61 = vld [vmem:[%s10346_s1 + $0xf0] sm:$0xff]  ;;  %v6079_v51 = vld [vmem:[%s10349_s4 + $0xac] ss:$16 sps:$4 sm:$0xff]  }
 0x481   : > { %v2463_v25 = vpop.permute.xlu0 %2462  ;;  %v2229_v60 = vpop.permute.xlu1 %2228  ;;  %2721 = vperm.xlu0 %6045, %v6465_v53   ;;  %v6052_v44 = vld [vmem:[%s10349_s4 + $0x20] ss:$16 sps:$4 sm:$0xff]   ;;  %v6085_v48 = vld [vmem:[%s10349_s4 + $0xcc] ss:$16 sps:$4 sm:$0xff]  }
 0x482   : > { %v2561_v59 = vadd.f32 %v2463_v25, %v2267_v38  ;;  %3633 = vmatpush1.bf16.msra.mxu1 %v2593_v27  ;;  %v2279_v11 = vmul.f32 %v6467_v41, %v2229_v60  ;;  %v6476_v38 = vld [vmem:[%s10346_s1 + $0x110] sm:$0xff]  ;;  %v6477_v25 = vld [vmem:[%s10346_s1 + $0x108] sm:$0xff]  ;;  %v6482_v60 = vld [vmem:[%s10346_s1 + $0x140] sm:$0xff] }
 0x483   : > { %3634 = vmatprep.subr.bf16.mxu1 %v10390_v21  ;;  %v6058_v27 = vld [vmem:[%s10349_s4 + $0x40] ss:$16 sps:$4 sm:$0xff]   ;;  %v6097_v53 = vld [vmem:[%s10349_s4 + $0x10c] ss:$16 sps:$4 sm:$0xff]  }
 0x484   : > { %v2592_v16 = vpack.c.bf16 %v2562_v30, %v2561_v59  ;;  %2716 = vperm.xlu1 %6044, %v6466_v46   ;;  %v6478_v30 = vld [vmem:[%s10346_s1 + $0x120] sm:$0xff]  ;;  %v6063_v59 = vld [vmem:[%s10349_s4 + $0x48] ss:$16 sps:$4 sm:$0xff]   ;;  %v6103_v46 = vld [vmem:[%s10349_s4 + $0x12c] ss:$16 sps:$4 sm:$0xff]  }
 0x485   : > { %v2453_v35 = vpop.permute.xlu0 %2452  ;;  %2731 = vperm.xlu0 %6045, %v6468_v17   ;;  %v6100_v41 = vld [vmem:[%s10349_s4 + $0x120] ss:$16 sps:$4 sm:$0xff]   ;;  %v6109_v17 = vld [vmem:[%s10349_s4 + $0x14c] ss:$16 sps:$4 sm:$0xff]  }
 0x486   : > { %v2559_v45 = vadd.f32 %v2453_v35, %v2265_v58  ;;  %3635 = vmatpush1.bf16.msra.mxu1 %v2592_v16  ;;  %v2368_v54 = vpop.permute.xlu1 %2367  ;;  %v6064_v58 = vld [vmem:[%s10349_s4 + $0x60] ss:$16 sps:$4 sm:$0xff]   ;;  %v6072_v16 = vld [vmem:[%s10349_s4 + $0x84] ss:$16 sps:$4 sm:$0xff]   ;;  %v6069_v35 = vld [vmem:[%s10349_s4 + $0x68] ss:$16 sps:$4 sm:$0xff]  }
 0x487   : > { %3636 = vmatprep.subr.bf16.mxu1 %v10390_v21  ;;  %v2542_v5 = vadd.f32 %v2368_v54, %v2248_v6  ;;  %v6082_v54 = vld [vmem:[%s10349_s4 + $0xc0] ss:$16 sps:$4 sm:$0xff]   ;;  %v6096_v6 = vld [vmem:[%s10349_s4 + $0x104] ss:$16 sps:$4 sm:$0xff]  }
 0x488   : > { %v2591_v20 = vpack.c.bf16 %v2560_v40, %v2559_v45  ;;  %v6483_v40 = vld [vmem:[%s10346_s1 + $0x138] sm:$0xff] }
 0x489   : > { %v2443_v0 = vpop.permute.xlu0 %2442  ;;  %2741 = vperm.xlu0 %6045, %v6470_v15   ;;  %v6073_v45 = vld [vmem:[%s10349_s4 + $0x8c] ss:$16 sps:$4 sm:$0xff]   ;;  %v6117_v15 = vld [vmem:[%s10349_s4 + $0x168] ss:$16 sps:$4 sm:$0xff]  }
 0x48a   : > { %v2557_v34 = vadd.f32 %v2443_v0, %v2263_v36  ;;  %3637 = vmatpush1.bf16.msra.mxu1 %v2591_v20  ;;  %v6075_v36 = vld [vmem:[%s10349_s4 + $0x88] ss:$16 sps:$4 sm:$0xff]   ;;  %v6084_v0 = vld [vmem:[%s10349_s4 + $0xc4] ss:$16 sps:$4 sm:$0xff]  }
 0x48b   : > { %3638 = vmatprep.subr.bf16.mxu1 %v10390_v21  ;;  %v6486_v20 = vld [vmem:[%s10346_s1 + $0x158] sm:$0xff] }
 0x48c   : > { %v2590_v24 = vpack.c.bf16 %v2558_v29, %v2557_v34  ;;  %v6487_v29 = vld [vmem:[%s10346_s1 + $0x168] sm:$0xff]  ;;  %v6488_v34 = vld [vmem:[%s10346_s1 + $0x178] sm:$0xff] }
 0x48d   : > { %v2363_v19 = vpop.permute.xlu0 %2362  ;;  %2751 = vperm.xlu0 %6045, %v6472_v61   ;;  %v6127_v61 = vld [vmem:[%s10349_s4 + $0x1ac] ss:$16 sps:$4 sm:$0xff]  }
 0x48e   : > { %v2541_v62 = vadd.f32 %v2363_v19, %v2247_v50  ;;  %3639 = vmatpush1.bf16.msra.mxu1 %v2590_v24  ;;  %v6091_v50 = vld [vmem:[%s10349_s4 + $0xec] ss:$16 sps:$4 sm:$0xff]   ;;  %v6093_v24 = vld [vmem:[%s10349_s4 + $0xe8] ss:$16 sps:$4 sm:$0xff]   ;;  %v6094_v19 = vld [vmem:[%s10349_s4 + $0x100] ss:$16 sps:$4 sm:$0xff]  }
 0x48f   : > { %3654 = vmatprep.subr.bf16.mxu1 %v10390_v21  ;;  %v6469_v21 = vld [vmem:[%s10346_s1 + $0xc8] sm:$0xff] }
 0x490   : > { %v2582_v32 = vpack.c.bf16 %v2542_v5, %v2541_v62  ;;  %2726 = vperm.xlu1 %6044, %v6469_v21   ;;  %v6102_v5 = vld [vmem:[%s10349_s4 + $0x124] ss:$16 sps:$4 sm:$0xff]   ;;  %v6099_v62 = vld [vmem:[%s10349_s4 + $0x108] ss:$16 sps:$4 sm:$0xff]   ;;  %v6112_v21 = vld [vmem:[%s10349_s4 + $0x160] ss:$16 sps:$4 sm:$0xff]  }
 0x491   : > { %v2523_v57 = vpop.permute.xlu0 %2522  ;;  %2761 = vperm.xlu0 %6045, %v6474_v26   ;;  %v6133_v26 = vld [vmem:[%s10349_s4 + $0x1cc] ss:$16 sps:$4 sm:$0xff]  }
 0x492   : > { %v2573_v10 = vadd.f32 %v2523_v57, %v2279_v11  ;;  %3423 = vmatpush2.bf16.msra.mxu0 %v2582_v32  ;;  %v6108_v11 = vld [vmem:[%s10349_s4 + $0x144] ss:$16 sps:$4 sm:$0xff]   ;;  %v6105_v32 = vld [vmem:[%s10349_s4 + $0x128] ss:$16 sps:$4 sm:$0xff]   ;;  %v6106_v57 = vld [vmem:[%s10349_s4 + $0x140] ss:$16 sps:$4 sm:$0xff]  }
 0x494   : > { %v2598_v22 = vpack.c.bf16 %v2573_v10, %v2573_v10  ;;  %2736 = vperm.xlu1 %6044, %v6471_v49   ;;  %v6111_v10 = vld [vmem:[%s10349_s4 + $0x148] ss:$16 sps:$4 sm:$0xff]   ;;  %v6126_v49 = vld [vmem:[%s10349_s4 + $0x1a4] ss:$16 sps:$4 sm:$0xff]  }
 0x495   : > { %3425 = vmatmul.mubr.bf16.vlgmr.msra.gmra.mxu0 %v6046_v12  ;;  %2771 = vperm.xlu0 %6045, %v6476_v38   ;;  %v6114_v12 = vld [vmem:[%s10349_s4 + $0x164] ss:$16 sps:$4 sm:$0xff]   ;;  %v6139_v38 = vld [vmem:[%s10349_s4 + $0x1ec] ss:$16 sps:$4 sm:$0xff]  }
 0x496   : > { %v3390_v55 = vsel %vm3388_vm7, %v2598_v22, 0  ;;  %3432 = vmatprep.mubr.bf16.mxu0 %v6054_v28  ;;  %v6115_v28 = vld [vmem:[%s10349_s4 + $0x16c] ss:$16 sps:$4 sm:$0xff]   ;;  %v6120_v22 = vld [vmem:[%s10349_s4 + $0x184] ss:$16 sps:$4 sm:$0xff]  }
 0x497   : > { %3655 = vmatpush2.bf16.msra.mxu1 %v3390_v55  ;;  %v6121_v55 = vld [vmem:[%s10349_s4 + $0x18c] ss:$16 sps:$4 sm:$0xff]  }
 0x498   : > { %2746 = vperm.xlu1 %6044, %v6473_v63   ;;  %v6129_v63 = vld [vmem:[%s10349_s4 + $0x1a8] ss:$16 sps:$4 sm:$0xff]  }
 0x499   : > { %2781 = vperm.xlu0 %6045, %v6478_v30   ;;  %v6145_v30 = vld [vmem:[%s10349_s4 + $0x20c] ss:$16 sps:$4 sm:$0xff]  }
 0x49a   : > { %3657 = vmatmul.mubr.bf16.vlgmr.msra.gmra.mxu1 %v6049_v43  ;;  %v6118_v43 = vld [vmem:[%s10349_s4 + $0x180] ss:$16 sps:$4 sm:$0xff]  }
 0x49b   : > { %5498 = vmatprep.mubr.msk.bf16.mxu1 %vm479_vm0, %v6055_v31  ;;  %v6123_v31 = vld [vmem:[%s10349_s4 + $0x188] ss:$16 sps:$4 sm:$0xff]  }
 0x49c   : > { %2756 = vperm.xlu1 %6044, %v6475_v42   ;;  %v6138_v42 = vld [vmem:[%s10349_s4 + $0x1e4] ss:$16 sps:$4 sm:$0xff]  }
 0x49d   : > { %3433 = vmatmul.mubr.bf16.gmra.mxu0 %v6052_v44  ;;  %2791 = vperm.xlu0 %6045, %v6480_v13   ;;  %v6124_v44 = vld [vmem:[%s10349_s4 + $0x1a0] ss:$16 sps:$4 sm:$0xff]   ;;  %v6151_v13 = vld [vmem:[%s10349_s4 + $0x22c] ss:$16 sps:$4 sm:$0xff]  }
 0x49e   : > { %3440 = vmatprep.mubr.bf16.mxu0 %v6060_v18  ;;  %v6132_v18 = vld [vmem:[%s10349_s4 + $0x1c4] ss:$16 sps:$4 sm:$0xff]  }
 0x4a0   : > { %2766 = vperm.xlu1 %6044, %v6477_v25   ;;  %v6141_v25 = vld [vmem:[%s10349_s4 + $0x1e8] ss:$16 sps:$4 sm:$0xff]  }
 0x4a1   : > { %2801 = vperm.xlu0 %6045, %v6482_v60   ;;  %v6157_v60 = vld [vmem:[%s10349_s4 + $0x24c] ss:$16 sps:$4 sm:$0xff]  }
 0x4a2   : > { %3665 = vmatmul.mubr.bf16.gmra.mxu1 %v6057_v9  ;;  %v6130_v9 = vld [vmem:[%s10349_s4 + $0x1c0] ss:$16 sps:$4 sm:$0xff]  }
 0x4a3   : > { %5499 = vmatprep.mubr.msk.bf16.mxu1 %vm479_vm0, %v6061_v4  ;;  %v6135_v4 = vld [vmem:[%s10349_s4 + $0x1c8] ss:$16 sps:$4 sm:$0xff]  }
 0x4a4   : > { %2776 = vperm.xlu1 %6044, %v6479_v23   ;;  %v6150_v23 = vld [vmem:[%s10349_s4 + $0x224] ss:$16 sps:$4 sm:$0xff]  }
 0x4a5   : > { %3441 = vmatmul.mubr.bf16.gmra.mxu0 %v6058_v27  ;;  %2811 = vperm.xlu0 %6045, %v6484_v1   ;;  %v6136_v27 = vld [vmem:[%s10349_s4 + $0x1e0] ss:$16 sps:$4 sm:$0xff]   ;;  %v6163_v1 = vld [vmem:[%s10349_s4 + $0x26c] ss:$16 sps:$4 sm:$0xff]  }
 0x4a6   : > { %3448 = vmatprep.mubr.bf16.mxu0 %v6066_v7  ;;  %v6144_v7 = vld [vmem:[%s10349_s4 + $0x204] ss:$16 sps:$4 sm:$0xff]  }
 0x4a8   : > { %2786 = vperm.xlu1 %6044, %v6481_v2   ;;  %v6153_v2 = vld [vmem:[%s10349_s4 + $0x228] ss:$16 sps:$4 sm:$0xff]  }
 0x4a9   : > { %2821 = vperm.xlu0 %6045, %v8164_v47   ;;  %v6076_v47 = vld [vmem:[%s10349_s4 + $0xa0] ss:$16 sps:$4 sm:$0xff]  }
 0x4aa   : > { %3673 = vmatmul.mubr.bf16.gmra.mxu1 %v6063_v59  ;;  %v6142_v59 = vld [vmem:[%s10349_s4 + $0x200] ss:$16 sps:$4 sm:$0xff]  }
 0x4ab   : > { %5500 = vmatprep.mubr.msk.bf16.mxu1 %vm479_vm0, %v6067_v33  ;;  %v6147_v33 = vld [vmem:[%s10349_s4 + $0x208] ss:$16 sps:$4 sm:$0xff]  }
 0x4ac   : > { %2796 = vperm.xlu1 %6044, %v6483_v40   ;;  %v6162_v40 = vld [vmem:[%s10349_s4 + $0x264] ss:$16 sps:$4 sm:$0xff]  }
 0x4ad   : > { %3449 = vmatmul.mubr.bf16.gmra.mxu0 %v6064_v58  ;;  %2831 = vperm.xlu0 %6045, %v8189_v52   ;;  %v6081_v52 = vld [vmem:[%s10349_s4 + $0xa8] ss:$16 sps:$4 sm:$0xff]   ;;  %v6148_v58 = vld [vmem:[%s10349_s4 + $0x220] ss:$16 sps:$4 sm:$0xff]  }
 0x4ae   : > { %3456 = vmatprep.mubr.bf16.mxu0 %v6072_v16  ;;  %v6156_v16 = vld [vmem:[%s10349_s4 + $0x244] ss:$16 sps:$4 sm:$0xff]  }
 0x4b0   : > { %2806 = vperm.xlu1 %6044, %v6485_v14   ;;  %v6165_v14 = vld [vmem:[%s10349_s4 + $0x268] ss:$16 sps:$4 sm:$0xff]  }
 0x4b1   : > { %2841 = vperm.xlu0 %6045, %v8196_v3   ;;  %v6090_v3 = vld [vmem:[%s10349_s4 + $0xe4] ss:$16 sps:$4 sm:$0xff]  }
 0x4b2   : > { %3681 = vmatmul.mubr.bf16.gmra.mxu1 %v6069_v35  ;;  %v6154_v35 = vld [vmem:[%s10349_s4 + $0x240] ss:$16 sps:$4 sm:$0xff]  }
 0x4b3   : > { %5501 = vmatprep.mubr.msk.bf16.mxu1 %vm479_vm0, %v6073_v45  ;;  %v6159_v45 = vld [vmem:[%s10349_s4 + $0x248] ss:$16 sps:$4 sm:$0xff]  }
 0x4b4   : > { %2816 = vperm.xlu1 %6044, %v6486_v20   ;;  %v6166_v20 = vld [vmem:[%s10349_s4 + $0x280] ss:$16 sps:$4 sm:$0xff]  }
 0x4b5   : > { %3457 = vmatmul.mubr.bf16.gmra.mxu0 %v6070_v56  ;;  %v6160_v56 = vld [vmem:[%s10349_s4 + $0x260] ss:$16 sps:$4 sm:$0xff]  }
 0x4b6   : > { %3464 = vmatprep.mubr.bf16.mxu0 %v6078_v37  ;;  %v6168_v37 = vld [vmem:[%s10349_s4 + $0x284] ss:$16 sps:$4 sm:$0xff]  }
 0x4b8   : > { %2826 = vperm.xlu1 %6044, %v6487_v29   ;;  %v6172_v29 = vld [vmem:[%s10349_s4 + $0x2a0] ss:$16 sps:$4 sm:$0xff]  }
 0x4ba   : > { %3689 = vmatmul.mubr.bf16.gmra.mxu1 %v6075_v36  ;;  %v6169_v36 = vld [vmem:[%s10349_s4 + $0x28c] ss:$16 sps:$4 sm:$0xff]  }
 0x4bb   : > { %5502 = vmatprep.mubr.msk.bf16.mxu1 %vm479_vm0, %v6079_v51  ;;  %v6174_v51 = vld [vmem:[%s10349_s4 + $0x2a4] ss:$16 sps:$4 sm:$0xff]  }
 0x4bc   : > { %2836 = vperm.xlu1 %6044, %v6488_v34   ;;  %v6177_v34 = vld [vmem:[%s10349_s4 + $0x2a8] ss:$16 sps:$4 sm:$0xff]  }
 0x4bd   : > { %3465 = vmatmul.mubr.bf16.gmra.mxu0 %v6076_v47  ;;  %v6171_v47 = vld [vmem:[%s10349_s4 + $0x288] ss:$16 sps:$4 sm:$0xff]  }
 0x4be   : > { %3472 = vmatprep.mubr.bf16.mxu0 %v6084_v0  ;;  %v6175_v0 = vld [vmem:[%s10349_s4 + $0x2ac] ss:$16 sps:$4 sm:$0xff]  }
 0x4c2   : > { %3697 = vmatmul.mubr.bf16.gmra.mxu1 %v6081_v52  ;;  %v6180_v52 = vld [vmem:[%s10349_s4 + $0x2c4] ss:$16 sps:$4 sm:$0xff]  }
 0x4c3   : > { %5503 = vmatprep.mubr.msk.bf16.mxu1 %vm479_vm0, %v6085_v48  ;;  %v6181_v48 = vld [vmem:[%s10349_s4 + $0x2cc] ss:$16 sps:$4 sm:$0xff]  }
 0x4c5   : > { %3473 = vmatmul.mubr.bf16.gmra.mxu0 %v6082_v54  ;;  %v6178_v54 = vld [vmem:[%s10349_s4 + $0x2c0] ss:$16 sps:$4 sm:$0xff]  }
 0x4c6   : > { %3480 = vmatprep.mubr.bf16.mxu0 %v6090_v3  ;;  %v6186_v3 = vld [vmem:[%s10349_s4 + $0x2e4] ss:$16 sps:$4 sm:$0xff]  }
 0x4ca   : > { %3705 = vmatmul.mubr.bf16.gmra.mxu1 %v6087_v39  ;;  %v6183_v39 = vld [vmem:[%s10349_s4 + $0x2c8] ss:$16 sps:$4 sm:$0xff]  }
 0x4cb   : > { %5504 = vmatprep.mubr.msk.bf16.mxu1 %vm479_vm0, %v6091_v50  ;;  %v6187_v50 = vld [vmem:[%s10349_s4 + $0x2ec] ss:$16 sps:$4 sm:$0xff]  }
 0x4cd   : > { %3481 = vmatmul.mubr.bf16.gmra.mxu0 %v6088_v8  ;;  %v428_v8 = vld [vmem:[%s10349_s4 + $0x300] sm:$0x77] }
 0x4ce   : > { %3488 = vmatprep.mubr.bf16.mxu0 %v6096_v6  ;;  %v6184_v6 = vld [vmem:[%s10349_s4 + $0x2e0] ss:$16 sps:$4 sm:$0xff]  }
 0x4d2   : > { %3713 = vmatmul.mubr.bf16.gmra.mxu1 %v6093_v24  ;;  %v5494_v24 = vcombine.high %v428_v8, %v428_v8 }
 0x4d3   : > { %5505 = vmatprep.mubr.msk.bf16.mxu1 %vm479_vm0, %v6097_v53  ;;  %v429_v53 = vld [vmem:[%s10349_s4 + $0x308] sm:$0x77] }
 0x4d5   : > { %3489 = vmatmul.mubr.bf16.gmra.mxu0 %v6094_v19  ;;  %v6189_v19 = vld [vmem:[%s10349_s4 + $0x2e8] ss:$16 sps:$4 sm:$0xff]  }
 0x4d6   : > { %3496 = vmatprep.mubr.bf16.mxu0 %v6102_v5  ;;  %v5496_v5 = vcombine.high %v429_v53, %v429_v53 }
 0x4da   : > { %3721 = vmatmul.mubr.bf16.gmra.mxu1 %v6099_v62  ;;  %v5493_v62 = vcombine.low %v428_v8, %v428_v8 }
 0x4db   : > { %5506 = vmatprep.mubr.msk.bf16.mxu1 %vm479_vm0, %v6103_v46  ;;  %v2602_v46 = vpop.permute.xlu1 %2601 }
 0x4dd   : > { %3497 = vmatmul.mubr.bf16.gmra.mxu0 %v6100_v41 }
 0x4de   : > { %3504 = vmatprep.mubr.bf16.mxu0 %v6108_v11  ;;  %v5495_v11 = vcombine.low %v429_v53, %v429_v53 }
 0x4e2   : > { %3729 = vmatmul.mubr.bf16.gmra.mxu1 %v6105_v32 }
 0x4e3   : > { %5507 = vmatprep.mubr.msk.bf16.mxu1 %vm479_vm0, %v6109_v17 }
 0x4e5   : > { %3505 = vmatmul.mubr.bf16.gmra.mxu0 %v6106_v57 }
 0x4e6   : > { %3512 = vmatprep.mubr.bf16.mxu0 %v6114_v12 }
 0x4ea   : > { %3737 = vmatmul.mubr.bf16.gmra.mxu1 %v6111_v10  ;;  %v2607_v10 = vpop.permute.xlu0 %2606 }
 0x4eb   : > { %5508 = vmatprep.mubr.msk.bf16.mxu1 %vm479_vm0, %v6115_v28 }
 0x4ed   : > { %3513 = vmatmul.mubr.bf16.gmra.mxu0 %v6112_v21 }
 0x4ee   : > { %3520 = vmatprep.mubr.bf16.mxu0 %v6120_v22 }
 0x4f2   : > { %3745 = vmatmul.mubr.bf16.gmra.mxu1 %v6117_v15  ;;  %v2612_v15 = vpop.permute.xlu1 %2611 }
 0x4f3   : > { %5509 = vmatprep.mubr.msk.bf16.mxu1 %vm479_vm0, %v6121_v55 }
 0x4f5   : > { %3521 = vmatmul.mubr.bf16.gmra.mxu0 %v6118_v43 }
 0x4f6   : > { %3528 = vmatprep.mubr.bf16.mxu0 %v6126_v49 }
 0x4fa   : > { %3753 = vmatmul.mubr.bf16.gmra.mxu1 %v6123_v31 }
 0x4fb   : > { %5510 = vmatprep.mubr.msk.bf16.mxu1 %vm479_vm0, %v6127_v61 }
 0x4fd   : > { %3529 = vmatmul.mubr.bf16.gmra.mxu0 %v6124_v44 }
 0x4fe   : > { %3536 = vmatprep.mubr.bf16.mxu0 %v6132_v18 }
 0x502   : > { %3761 = vmatmul.mubr.bf16.gmra.mxu1 %v6129_v63 }
 0x503   : > { %5511 = vmatprep.mubr.msk.bf16.mxu1 %vm479_vm0, %v6133_v26 }
 0x505   : > { %3537 = vmatmul.mubr.bf16.gmra.mxu0 %v6130_v9 }
 0x506   : > { %3544 = vmatprep.mubr.bf16.mxu0 %v6138_v42 }
 0x50a   : > { %3769 = vmatmul.mubr.bf16.gmra.mxu1 %v6135_v4 }
 0x50b   : > { %5512 = vmatprep.mubr.msk.bf16.mxu1 %vm479_vm0, %v6139_v38 }
 0x50d   : > { %3545 = vmatmul.mubr.bf16.gmra.mxu0 %v6136_v27  ;;  %v2617_v27 = vpop.permute.xlu1 %2616 }
 0x50e   : > { %3552 = vmatprep.mubr.bf16.mxu0 %v6144_v7 }
 0x512   : > { %3777 = vmatmul.mubr.bf16.gmra.mxu1 %v6141_v25 }
 0x513   : > { %5513 = vmatprep.mubr.msk.bf16.mxu1 %vm479_vm0, %v6145_v30 }
 0x515   : > { %3553 = vmatmul.mubr.bf16.gmra.mxu0 %v6142_v59 }
 0x516   : > { %3560 = vmatprep.mubr.bf16.mxu0 %v6150_v23 }
 0x51a   : > { %3785 = vmatmul.mubr.bf16.gmra.mxu1 %v6147_v33 }
 0x51b   : > { %5514 = vmatprep.mubr.msk.bf16.mxu1 %vm479_vm0, %v6151_v13 }
 0x51d   : > { %3561 = vmatmul.mubr.bf16.gmra.mxu0 %v6148_v58 }
 0x51e   : > { %3568 = vmatprep.mubr.bf16.mxu0 %v6156_v16 }
 0x522   : > { %3793 = vmatmul.mubr.bf16.gmra.mxu1 %v6153_v2 }
 0x523   : > { %5515 = vmatprep.mubr.msk.bf16.mxu1 %vm479_vm0, %v6157_v60  ;;  %v2622_v60 = vpop.permute.xlu0 %2621 }
 0x525   : > { %3569 = vmatmul.mubr.bf16.gmra.mxu0 %v6154_v35 }
 0x526   : > { %3576 = vmatprep.mubr.bf16.mxu0 %v6162_v40 }
 0x52a   : > { %3801 = vmatmul.mubr.bf16.gmra.mxu1 %v6159_v45 }
 0x52b   : > { %5516 = vmatprep.mubr.msk.bf16.mxu1 %vm479_vm0, %v6163_v1 }
 0x52d   : > { %3577 = vmatmul.mubr.bf16.gmra.mxu0 %v6160_v56 }
 0x52e   : > { %3584 = vmatprep.mubr.bf16.mxu0 %v6168_v37 }
 0x532   : > { %3809 = vmatmul.mubr.bf16.gmra.mxu1 %v6165_v14 }
 0x533   : > { %5517 = vmatprep.mubr.msk.bf16.mxu1 %vm479_vm0, %v6169_v36 }
 0x535   : > { %3585 = vmatmul.mubr.bf16.gmra.mxu0 %v6166_v20 }
 0x536   : > { %3592 = vmatprep.mubr.bf16.mxu0 %v6174_v51 }
 0x53a   : > { %3817 = vmatmul.mubr.bf16.gmra.mxu1 %v6171_v47 }
 0x53b   : > { %5518 = vmatprep.mubr.msk.bf16.mxu1 %vm479_vm0, %v6175_v0 }
 0x53d   : > { %3593 = vmatmul.mubr.bf16.gmra.mxu0 %v6172_v29 }
 0x53e   : > { %3600 = vmatprep.mubr.bf16.mxu0 %v6180_v52 }
 0x542   : > { %3825 = vmatmul.mubr.bf16.gmra.mxu1 %v6177_v34 }
 0x543   : > { %5519 = vmatprep.mubr.msk.bf16.mxu1 %vm479_vm0, %v6181_v48 }
 0x545   : > { %3601 = vmatmul.mubr.bf16.gmra.mxu0 %v6178_v54 }
 0x546   : > { %3608 = vmatprep.mubr.bf16.mxu0 %v6186_v3 }
 0x54a   : > { %3833 = vmatmul.mubr.bf16.gmra.mxu1 %v6183_v39  ;;  %v2627_v39 = vpop.permute.xlu1 %2626 }
 0x54b   : > { %5520 = vmatprep.mubr.msk.bf16.mxu1 %vm479_vm0, %v6187_v50 }
 0x54d   : > { %3609 = vmatmul.mubr.bf16.gmra.mxu0 %v6184_v6 }
 0x54e   : > { %3616 = vmatprep.mubr.bf16.mxu0 %v5494_v24 }
 0x552   : > { %3841 = vmatmul.mubr.bf16.gmra.mxu1 %v6189_v19  ;;  %v10373_v19 = vmov -1.0  }
 0x553   : > { %5521 = vmatprep.mubr.msk.bf16.mxu1 %vm479_vm0, %v5496_v5 }
 0x555   : > { %v3426_v41 = vpop.f32.mrf.mxu0  ;;  %3617 = vmatmul.mubr.bf16.gmra.mxu0 %v5493_v62 }
 0x556   : > { %v3427_v17 = vadd.f32 %v3426_v41, %v2602_v46 }
 0x557   : > { %v3428_v32 = vpop.f32.mrf.mxu0 }
 0x559   : > { %v3429_v57 = vpop.f32.mrf.mxu0 }
 0x55a   : > { %v3658_v12 = vpop.f32.mrf.mxu1  ;;  %3849 = vmatmul.mubr.bf16.gmra.mxu1 %v5495_v11  ;;  %v3430_v49 = vadd.f32 %v3429_v57, %v2607_v10  ;;  %v2632_v57 = vpop.permute.xlu0 %2631 }
 0x55b   : > { %v3431_v28 = vpop.f32.mrf.mxu0  ;;  %v3659_v21 = vadd.f32 %v3658_v12, %v3427_v17 }
 0x55c   : > { %v3660_v22 = vpop.f32.mrf.mxu1 }
 0x55d   : > { %v3434_v55 = vpop.f32.mrf.mxu0  ;;  %v3905_v43 = vmul.f32 0.70710677, %v3659_v21  ;;  %v9012_v8 = vmul.f32 0.5, %v3659_v21 }
 0x55e   : > { %v3661_v31 = vpop.f32.mrf.mxu1  ;;  %v3435_v26 = vadd.f32 %v3434_v55, %v2612_v15 }
 0x55f   : > { %v3436_v61 = vpop.f32.mrf.mxu0  ;;  %v4052_v44 = vand.u32 2147483647, %v3905_v43  ;;  %v3662_v18 = vadd.f32 %v3661_v31, %v3430_v49  ;;  %vm3954_vm8 = vcmp.ge.f32.partialorder %v3905_v43, 0.0 }
 0x560   : > { %v3663_v63 = vpop.f32.mrf.mxu1  ;;  %v9018_v5 = vsel %vm3954_vm8, 1.0, %v10373_v19 }
 0x561   : > { %v3437_v9 = vpop.f32.mrf.mxu0  ;;  %v4101_v42 = vmul.f32 0.3275911, %v4052_v44  ;;  %v9001_v4 = vmul.f32 0.70710677, %v3662_v18  ;;  %v4689_v40 = vmul.f32 %v4052_v44, %v4052_v44  ;;  %v9024_v55 = vmul.f32 0.5, %v3662_v18 }
 0x562   : > { %v3666_v38 = vpop.f32.mrf.mxu1  ;;  %v3438_v58 = vadd.f32 %v3437_v9, %v2617_v27 }
 0x563   : > { %v3439_v7 = vpop.f32.mrf.mxu0  ;;  %v4150_v25 = vadd.f32 1.0, %v4101_v42  ;;  %v4053_v30 = vand.u32 2147483647, %v9001_v4  ;;  %v3667_v23 = vadd.f32 %v3666_v38, %v3435_v26  ;;  %v4738_v29 = vsub.f32 0.0, %v4689_v40 }
 0x564   : > { %v3668_v59 = vpop.f32.mrf.mxu1  ;;  %vm3955_vm9 = vcmp.ge.f32.partialorder %v9001_v4, 0.0 }
 0x565   : > { %v3442_v33 = vpop.f32.mrf.mxu0  ;;  %6198 = vrcp.f32 %v4150_v25  ;;  %v4102_v13 = vmul.f32 0.3275911, %v4053_v30  ;;  %v9004_v2 = vmul.f32 0.70710677, %v3667_v23  ;;  %v4690_v48 = vmul.f32 %v4053_v30, %v4053_v30 }
 0x566   : > { %v3669_v16 = vpop.f32.mrf.mxu1  ;;  %v3443_v56 = vadd.f32 %v3442_v33, %v2622_v60  ;;  %v4787_v11 = vmul.f32 1.442695, %v4738_v29  ;;  %v9035_v44 = vsel %vm3955_vm9, 1.0, %v10373_v19  ;;  %v9037_v63 = vmul.f32 0.5, %v3667_v23 }
 0x567   : > { %v3444_v35 = vpop.f32.mrf.mxu0  ;;  %v4151_v45 = vadd.f32 1.0, %v4102_v13  ;;  %v3670_v1 = vadd.f32 %v3669_v16, %v3438_v58  ;;  %v4054_v14 = vand.u32 2147483647, %v9004_v2  ;;  %v4739_v10 = vsub.f32 0.0, %v4690_v48  ;;  %v2637_v58 = vpop.permute.xlu1 %2636 }
 0x568   : > { %v3671_v37 = vpop.f32.mrf.mxu1  ;;  %vm3956_vm10 = vcmp.ge.f32.partialorder %v9004_v2, 0.0 }
 0x569   : > { %v3445_v36 = vpop.f32.mrf.mxu0  ;;  %6200 = vrcp.f32 %v4151_v45  ;;  %v4103_v51 = vmul.f32 0.3275911, %v4054_v14  ;;  %v9007_v47 = vmul.f32 0.70710677, %v3670_v1  ;;  %v4691_v62 = vmul.f32 %v4054_v14, %v4054_v14 }
 0x56a   : > { %v3674_v20 = vpop.f32.mrf.mxu1  ;;  %v3446_v6 = vadd.f32 %v3445_v36, %v2627_v39  ;;  %v4789_v7 = vmul.f32 1.442695, %v4739_v10  ;;  %v9044_v25 = vsel %vm3956_vm10, 1.0, %v10373_v19  ;;  %v9050_v33 = vmul.f32 0.5, %v3670_v1 }
 0x56b   : > { %v3447_v0 = vpop.f32.mrf.mxu0  ;;  %v9009_v52 = vadd.f32 %v3674_v20, %v3443_v56  ;;  %v4152_v54 = vadd.f32 1.0, %v4103_v51  ;;  %v4055_v3 = vand.u32 2147483647, %v9007_v47  ;;  %v4740_v26 = vsub.f32 0.0, %v4691_v62 }
 0x56c   : > { %v3676_v34 = vpop.f32.mrf.mxu1  ;;  %vm3957_vm11 = vcmp.ge.f32.partialorder %v9007_v47, 0.0 }
 0x56d   : > { %v3450_v50 = vpop.f32.mrf.mxu0  ;;  %v9015_v24 = vmul.f32 0.70710677, %v9009_v52  ;;  %6202 = vrcp.f32 %v4152_v54  ;;  %v4104_v46 = vmul.f32 0.3275911, %v4055_v3  ;;  %v4692_v21 = vmul.f32 %v4055_v3, %v4055_v3 }
 0x56e   : > { %v3677_v53 = vpop.f32.mrf.mxu1  ;;  %v3451_v22 = vadd.f32 %v3450_v50, %v2632_v57  ;;  %v4791_v35 = vmul.f32 1.442695, %v4740_v26  ;;  %v9068_v39 = vsel %vm3957_vm11, 1.0, %v10373_v19  ;;  %v9071_v50 = vmul.f32 0.5, %v9009_v52 }
 0x56f   : > { %v3452_v41 = vpop.f32.mrf.mxu0  ;;  %v9021_v32 = vadd.f32 %v3677_v53, %v3446_v6  ;;  %v4056_v17 = vand.u32 2147483647, %v9015_v24  ;;  %v4153_v28 = vadd.f32 1.0, %v4104_v46  ;;  %v4741_v4 = vsub.f32 0.0, %v4692_v21 }
 0x570   : > { %v3679_v12 = vpop.f32.mrf.mxu1  ;;  %vm3958_vm12 = vcmp.ge.f32.partialorder %v9015_v24, 0.0 }
 0x571   : > { %v3453_v15 = vpop.f32.mrf.mxu0  ;;  %v9028_v43 = vmul.f32 0.70710677, %v9021_v32  ;;  %v4105_v49 = vmul.f32 0.3275911, %v4056_v17  ;;  %6204 = vrcp.f32 %v4153_v28  ;;  %v4693_v14 = vmul.f32 %v4056_v17, %v4056_v17 }
 0x572   : > { %v9030_v31 = vpop.eup %6198  ;;  %v3682_v61 = vpop.f32.mrf.mxu1  ;;  %6206 = vpow2.f32 %v4787_v11  ;;  %v3454_v2 = vadd.f32 %v3453_v15, %v2637_v58  ;;  %v4793_v20 = vmul.f32 1.442695, %v4741_v4 }
 0x573   : > { %v3455_v18 = vpop.f32.mrf.mxu0  ;;  %v4248_v9 = vmul.f32 1.0614054, %v9030_v31  ;;  %v4057_v42 = vand.u32 2147483647, %v9028_v43  ;;  %v4154_v38 = vadd.f32 1.0, %v4105_v49  ;;  %v9046_v30 = vadd.f32 %v3682_v61, %v3451_v22 }
 0x574   : > { %v3684_v27 = vpop.f32.mrf.mxu1  ;;  %v4742_v17 = vsub.f32 0.0, %v4693_v14  ;;  %vm3959_vm13 = vcmp.ge.f32.partialorder %v9028_v43, 0.0 }
 0x575   : > { %v9048_v59 = vpop.f32.mrf.mxu0  ;;  %v4297_v23 = vadd.f32 -1.4531521, %v4248_v9  ;;  %v4106_v13 = vmul.f32 0.3275911, %v4057_v42  ;;  %6208 = vrcp.f32 %v4154_v38  ;;  %v9056_v40 = vmul.f32 0.70710677, %v9046_v30  ;;  %v2647_v9 = vpop.permute.xlu1 %2646 }
 0x576   : > { %v9052_v16 = vpop.eup %6200  ;;  %v3685_v60 = vpop.f32.mrf.mxu1  ;;  %6210 = vpow2.f32 %v4789_v7  ;;  %v4694_v54 = vmul.f32 %v4057_v42, %v4057_v42  ;;  %v4795_v4 = vmul.f32 1.442695, %v4742_v17 }
 0x577   : > { %v3460_v45 = vpop.f32.mrf.mxu0  ;;  %v4346_v56 = vmul.f32 %v9030_v31, %v4297_v23  ;;  %v4249_v37 = vmul.f32 1.0614054, %v9052_v16  ;;  %v4155_v1 = vadd.f32 1.0, %v4106_v13  ;;  %v9060_v51 = vadd.f32 %v3685_v60, %v3454_v2 }
 0x578   : > { %v3687_v36 = vpop.f32.mrf.mxu1  ;;  %v4058_v0 = vand.u32 2147483647, %v9056_v40  ;;  %v4743_v15 = vsub.f32 0.0, %v4694_v54  ;;  %v2642_v54 = vpop.permute.xlu0 %2641  ;;  %vm3960_vm14 = vcmp.ge.f32.partialorder %v9056_v40, 0.0 }
 0x579   : > { %v3461_v29 = vpop.f32.mrf.mxu0  ;;  %v4395_v34 = vadd.f32 1.4214138, %v4346_v56  ;;  %v4298_v48 = vadd.f32 -1.4531521, %v4249_v37  ;;  %6212 = vrcp.f32 %v4155_v1  ;;  %v9074_v6 = vmul.f32 0.70710677, %v9060_v51 }
 0x57a   : > { %v9063_v3 = vpop.f32.mrf.mxu1  ;;  %v4107_v53 = vmul.f32 0.3275911, %v4058_v0  ;;  %v9076_v62 = vpop.eup %6202  ;;  %6214 = vpow2.f32 %v4791_v35  ;;  %v4695_v10 = vmul.f32 %v4058_v0, %v4058_v0  ;;  %v3462_v23 = vadd.f32 %v3461_v29, %v2647_v9 }
 0x57b   : > { %v3463_v46 = vpop.f32.mrf.mxu0  ;;  %v4444_v41 = vmul.f32 %v9030_v31, %v4395_v34  ;;  %v4347_v11 = vmul.f32 %v9052_v16, %v4298_v48  ;;  %v4250_v47 = vmul.f32 1.0614054, %v9076_v62  ;;  %v4059_v12 = vand.u32 2147483647, %v9074_v6 }
 0x57c   : > { %v3692_v57 = vpop.f32.mrf.mxu1  ;;  %v4156_v52 = vadd.f32 1.0, %v4107_v53  ;;  %6216 = vpow2.f32 %v4793_v20  ;;  %v4744_v45 = vsub.f32 0.0, %v4695_v10  ;;  %v4797_v14 = vmul.f32 1.442695, %v4743_v15 }
 0x57d   : > { %v9082_v28 = vpop.f32.mrf.mxu0  ;;  %v4493_v21 = vadd.f32 -0.28449672, %v4444_v41  ;;  %v4396_v22 = vadd.f32 1.4214138, %v4347_v11  ;;  %v4299_v61 = vadd.f32 -1.4531521, %v4250_v47  ;;  %v4696_v18 = vmul.f32 %v4059_v12, %v4059_v12 }
 0x57e   : > { %v3693_v49 = vpop.f32.mrf.mxu1  ;;  %v4108_v26 = vmul.f32 0.3275911, %v4059_v12  ;;  %6218 = vrcp.f32 %v4156_v52  ;;  %v9084_v42 = vpop.eup %6204  ;;  %v9102_v17 = vadd.f32 %v9048_v59, %v2642_v54  ;;  %v4799_v52 = vmul.f32 1.442695, %v4744_v45 }
 0x57f   : > { %v3468_v38 = vpop.f32.mrf.mxu0  ;;  %v4542_v27 = vmul.f32 %v9030_v31, %v4493_v21  ;;  %v4445_v7 = vmul.f32 %v9052_v16, %v4396_v22  ;;  %v6207_v13 = vpop.eup %6206  ;;  %v4348_v60 = vmul.f32 %v9076_v62, %v4299_v61  ;;  %v4251_v35 = vmul.f32 1.0614054, %v9084_v42 }
 0x580   : > { %v3695_v58 = vpop.f32.mrf.mxu1  ;;  %v4157_v2 = vadd.f32 1.0, %v4108_v26  ;;  %v9092_v36 = vadd.f32 %v3693_v49, %v3462_v23  ;;  %v4745_v48 = vsub.f32 0.0, %v4696_v18  ;;  %vm3961_vm15 = vcmp.ge.f32.partialorder %v9074_v6, 0.0 }
 0x581   : > { %v9090_v56 = vpop.f32.mrf.mxu0  ;;  %v4591_v37 = vadd.f32 0.2548296, %v4542_v27  ;;  %v4494_v1 = vadd.f32 -0.28449672, %v4445_v7  ;;  %v4397_v29 = vadd.f32 1.4214138, %v4348_v60 }
 0x582   : > { %v9094_v20 = vpop.eup %6208  ;;  %v9096_v0 = vpop.f32.mrf.mxu1  ;;  %v4300_v34 = vadd.f32 -1.4531521, %v4251_v35  ;;  %6220 = vrcp.f32 %v4157_v2  ;;  %v9107_v10 = vmul.f32 0.70710677, %v9092_v36  ;;  %v4801_v9 = vmul.f32 1.442695, %v4745_v48 }
 0x583   : > { %v3471_v53 = vpop.f32.mrf.mxu0  ;;  %v4640_v46 = vmul.f32 %v9030_v31, %v4591_v37  ;;  %v4543_v41 = vmul.f32 %v9052_v16, %v4494_v1  ;;  %v4252_v11 = vmul.f32 1.0614054, %v9094_v20  ;;  %v4446_v47 = vmul.f32 %v9076_v62, %v4397_v29  ;;  %v6211_v21 = vpop.eup %6210 }
 0x584   : > { %v3700_v57 = vpop.f32.mrf.mxu1  ;;  %v4349_v12 = vmul.f32 %v9084_v42, %v4300_v34  ;;  %6222 = vpow2.f32 %v4795_v4  ;;  %v4061_v2 = vand.u32 2147483647, %v9107_v10  ;;  %vm3963_vm0 = vcmp.ge.f32.partialorder %v9107_v10, 0.0 }
 0x585   : > { %v9109_v22 = vpop.f32.mrf.mxu0  ;;  %v4885_v31 = vmul.f32 %v6207_v13, %v4640_v46  ;;  %v4592_v15 = vadd.f32 0.2548296, %v4543_v41  ;;  %v4301_v49 = vadd.f32 -1.4531521, %v4252_v11  ;;  %v4495_v26 = vadd.f32 -0.28449672, %v4446_v47 }
 0x586   : > { %v9111_v61 = vpop.eup %6212  ;;  %v9113_v59 = vpop.f32.mrf.mxu1  ;;  %v4398_v18 = vadd.f32 1.4214138, %v4349_v12  ;;  %6224 = vpow2.f32 %v4797_v14  ;;  %v4110_v53 = vmul.f32 0.3275911, %v4061_v2 }
 0x587   : > { %v3476_v38 = vpop.f32.mrf.mxu0  ;;  %v4934_v27 = vsub.f32 1.0, %v4885_v31  ;;  %v4641_v7 = vmul.f32 %v9052_v16, %v4592_v15  ;;  %v4253_v23 = vmul.f32 1.0614054, %v9111_v61  ;;  %v4350_v58 = vmul.f32 %v9094_v20, %v4301_v49  ;;  %v6215_v13 = vpop.eup %6214 }
 0x588   : > { %v3703_v60 = vpop.f32.mrf.mxu1  ;;  %v4544_v4 = vmul.f32 %v9076_v62, %v4495_v26  ;;  %v4447_v35 = vmul.f32 %v9084_v42, %v4398_v18  ;;  %6226 = vpow2.f32 %v4799_v52  ;;  %v4159_v15 = vadd.f32 1.0, %v4110_v53 }
 0x589   : > { %v9121_v45 = vpop.f32.mrf.mxu0  ;;  %v4983_v37 = vmul.f32 %v4934_v27, %v9018_v5  ;;  %v4886_v1 = vmul.f32 %v6211_v21, %v4641_v7  ;;  %v4302_v14 = vadd.f32 -1.4531521, %v4253_v23  ;;  %v4399_v16 = vadd.f32 1.4214138, %v4350_v58  ;;  %v6217_v29 = vpop.eup %6216  ;;  %v6489_v60 = vld [vmem:[%s6613_s27] sm:$0xff] }
 0x58a   : > { %v9124_v34 = vpop.f32.mrf.mxu1  ;;  %v4593_v48 = vadd.f32 0.2548296, %v4544_v4  ;;  %v4496_v54 = vadd.f32 -0.28449672, %v4447_v35  ;;  %6228 = vpow2.f32 %v4801_v9 }
 0x58b   : > { %v9127_v46 = vpop.eup %6218  ;;  %v3479_v41 = vpop.f32.mrf.mxu0  ;;  %v5032_v11 = vadd.f32 1.0, %v4983_v37  ;;  %v4935_v57 = vsub.f32 1.0, %v4886_v1  ;;  %v4351_v5 = vmul.f32 %v9111_v61, %v4302_v14  ;;  %v4448_v47 = vmul.f32 %v9094_v20, %v4399_v16 }
 0x58c   : > { %v3708_v12 = vpop.f32.mrf.mxu1  ;;  %v4642_v52 = vmul.f32 %v9076_v62, %v4593_v48  ;;  %v4545_v21 = vmul.f32 %v9084_v42, %v4496_v54  ;;  %v4254_v31 = vmul.f32 1.0614054, %v9127_v46  ;;  %6230 = vrcp.f32 %v4159_v15 }
 0x58d   : > { %v9135_v49 = vpop.f32.mrf.mxu0  ;;  %v5081_v26 = vmul.f32 %v5032_v11, %v9012_v8  ;;  %v4984_v18 = vmul.f32 %v4935_v57, %v9035_v44  ;;  %v4400_v9 = vadd.f32 1.4214138, %v4351_v5  ;;  %v4497_v38 = vadd.f32 -0.28449672, %v4448_v47 }
 0x58e   : > { %v9146_v62 = vpop.f32.mrf.mxu1  ;;  %v4887_v27 = vmul.f32 %v6215_v13, %v4642_v52  ;;  %v4594_v7 = vadd.f32 0.2548296, %v4545_v21  ;;  %v4303_v23 = vadd.f32 -1.4531521, %v4254_v31  ;;  %v4698_v57 = vmul.f32 %v4061_v2, %v4061_v2 }
 0x58f   : > { %v9148_v58 = vpop.eup %6220  ;;  %v3484_v8 = vpop.f32.mrf.mxu0  ;;  %v5130_v44 = vadd.f32 %v6489_v60, %v5081_v26  ;;  %v5033_v4 = vadd.f32 1.0, %v4984_v18  ;;  %v4449_v35 = vmul.f32 %v9111_v61, %v4400_v9  ;;  %v4546_v37 = vmul.f32 %v9094_v20, %v4497_v38  ;;  %v6490_v26 = vld [vmem:[%s6613_s27 + $0x8] sm:$0xff] }
 0x590   : > { %v3711_v1 = vpop.f32.mrf.mxu1  ;;  %v4936_v14 = vsub.f32 1.0, %v4887_v27  ;;  %v4643_v16 = vmul.f32 %v9084_v42, %v4594_v7  ;;  %v4255_v13 = vmul.f32 1.0614054, %v9148_v58  ;;  %v4352_v48 = vmul.f32 %v9127_v46, %v4303_v23 }
 0x591   : > { %v9156_v54 = vpop.f32.mrf.mxu0  ;;  %5179 = vst.msk [vmem:[%s9144_s26] sm:$0xff] %vm842_vm3, %v5130_v44  ;;  %v5082_v53 = vmul.f32 %v5033_v4, %v9024_v55  ;;  %v4498_v41 = vadd.f32 -0.28449672, %v4449_v35  ;;  %v4595_v11 = vadd.f32 0.2548296, %v4546_v37  ;;  %v6223_v5 = vpop.eup %6222  ;;  %v9169_v2 = vadd.f32 %v9063_v3, %v9102_v17 }
 0x592   : > { %v9161_v47 = vpop.f32.mrf.mxu1  ;;  %v4985_v12 = vmul.f32 %v4936_v14, %v9044_v25  ;;  %v4888_v42 = vmul.f32 %v6217_v29, %v4643_v16  ;;  %v4304_v52 = vadd.f32 -1.4531521, %v4255_v13  ;;  %v4401_v21 = vadd.f32 1.4214138, %v4352_v48 }
 0x593   : > { %v6225_v31 = vpop.eup %6224  ;;  %v3487_v15 = vpop.f32.mrf.mxu0  ;;  %v5131_v18 = vadd.f32 %v6490_v26, %v5082_v53  ;;  %v4547_v9 = vmul.f32 %v9111_v61, %v4498_v41  ;;  %v4644_v55 = vmul.f32 %v9094_v20, %v4595_v11  ;;  %v4007_v20 = vsel %vm3958_vm12, 1.0, %v10373_v19 }
 0x594   : > { %v3716_v38 = vpop.f32.mrf.mxu1  ;;  %v5034_v27 = vadd.f32 1.0, %v4985_v12  ;;  %v4937_v7 = vsub.f32 1.0, %v4888_v42  ;;  %v4353_v25 = vmul.f32 %v9148_v58, %v4304_v52  ;;  %v4450_v29 = vmul.f32 %v9127_v46, %v4401_v21  ;;  %v2657_v12 = vpop.permute.xlu1 %2656 }
 0x595   : > { %v6227_v23 = vpop.eup %6226  ;;  %v9173_v8 = vpop.f32.mrf.mxu0  ;;  %5180 = vst.msk [vmem:[%s9144_s26 + $0x8] sm:$0xff] %vm842_vm3, %v5131_v18  ;;  %v4596_v60 = vadd.f32 0.2548296, %v4547_v9  ;;  %v4889_v3 = vmul.f32 %v6223_v5, %v4644_v55  ;;  %v4747_v17 = vsub.f32 0.0, %v4698_v57  ;;  %v4008_v13 = vsel %vm3959_vm13, 1.0, %v10373_v19 }
 0x596   : > { %v9180_v44 = vpop.f32.mrf.mxu1  ;;  %v5083_v4 = vmul.f32 %v5034_v27, %v9037_v63  ;;  %v4986_v35 = vmul.f32 %v4937_v7, %v9068_v39  ;;  %v4402_v37 = vadd.f32 1.4214138, %v4353_v25  ;;  %v4499_v1 = vadd.f32 -0.28449672, %v4450_v29  ;;  %v6491_v63 = vld [vmem:[%s6613_s27 + $0x10] sm:$0xff] }
 0x597   : > { %v9184_v14 = vpop.eup %6228  ;;  %v3492_v16 = vpop.f32.mrf.mxu0  ;;  %v4645_v24 = vmul.f32 %v9111_v61, %v4596_v60  ;;  %v4938_v48 = vsub.f32 1.0, %v4889_v3  ;;  %v9191_v53 = vmul.f32 0.70710677, %v9169_v2  ;;  %v3470_v21 = vadd.f32 %v9090_v56, %v2657_v12  ;;  %v6492_v60 = vld [vmem:[%s6613_s27 + $0x18] sm:$0xff] }
 0x598   : > { %v3719_v41 = vpop.f32.mrf.mxu1  ;;  %v5132_v11 = vadd.f32 %v6491_v63, %v5083_v4  ;;  %v5035_v39 = vadd.f32 1.0, %v4986_v35  ;;  %v4451_v57 = vmul.f32 %v9148_v58, %v4402_v37  ;;  %v4548_v5 = vmul.f32 %v9127_v46, %v4499_v1 }
 0x599   : > { %v9196_v42 = vpop.f32.mrf.mxu0  ;;  %v4890_v43 = vmul.f32 %v6225_v31, %v4645_v24  ;;  %v4987_v52 = vmul.f32 %v4938_v48, %v4007_v20  ;;  %v4060_v61 = vand.u32 2147483647, %v9191_v53  ;;  %v4805_v55 = vmul.f32 1.442695, %v4747_v17  ;;  %v9205_v38 = vpop.eup %6230 }
 0x59a   : > { %v9200_v15 = vpop.f32.mrf.mxu1  ;;  %5181 = vst.msk [vmem:[%s9144_s26 + $0x10] sm:$0xff] %vm842_vm3, %v5132_v11  ;;  %v5084_v26 = vmul.f32 %v5035_v39, %v9050_v33  ;;  %v4500_v18 = vadd.f32 -0.28449672, %v4451_v57  ;;  %v4597_v9 = vadd.f32 0.2548296, %v4548_v5  ;;  %v9208_v29 = vadd.f32 %v9113_v59, %v3470_v21  ;;  %v6493_v11 = vld [vmem:[%s6613_s27 + $0x20] sm:$0xff] }
 0x59b   : > { %v3495_v27 = vpop.f32.mrf.mxu0  ;;  %v4939_v7 = vsub.f32 1.0, %v4890_v43  ;;  %v5036_v31 = vadd.f32 1.0, %v4987_v52  ;;  %v4109_v25 = vmul.f32 0.3275911, %v4060_v61  ;;  %v4257_v17 = vmul.f32 1.0614054, %v9205_v38 }
 0x59c   : > { %v3724_v56 = vpop.f32.mrf.mxu1  ;;  %v5133_v20 = vadd.f32 %v6492_v60, %v5084_v26  ;;  %v4549_v3 = vmul.f32 %v9148_v58, %v4500_v18  ;;  %v4646_v33 = vmul.f32 %v9127_v46, %v4597_v9  ;;  %6232 = vpow2.f32 %v4805_v55 }
 0x59d   : > { %v9214_v4 = vpop.f32.mrf.mxu0  ;;  %v4988_v35 = vmul.f32 %v4939_v7, %v4008_v13  ;;  %v5085_v37 = vmul.f32 %v5036_v31, %v9071_v50  ;;  %v4158_v1 = vadd.f32 1.0, %v4109_v25  ;;  %v4306_v48 = vadd.f32 -1.4531521, %v4257_v17  ;;  %v6494_v7 = vld [vmem:[%s6613_s27 + $0x28] sm:$0xff]  ;;  %v2667_v56 = vpop.permute.xlu1 %2666 }
 0x59e   : > { %v9218_v59 = vpop.f32.mrf.mxu1  ;;  %5182 = vst.msk [vmem:[%s9144_s26 + $0x18] sm:$0xff] %vm842_vm3, %v5133_v20  ;;  %v4598_v16 = vadd.f32 0.2548296, %v4549_v3  ;;  %v4891_v24 = vmul.f32 %v6227_v23, %v4646_v33  ;;  %v3861_v41 = vmul.f32 0.5, %v9021_v32  ;;  %v9227_v12 = vmul.f32 0.70710677, %v9208_v29  ;;  %v2652_v23 = vpop.permute.xlu0 %2651 }
 0x59f   : > { %v3500_v46 = vpop.f32.mrf.mxu0  ;;  %v5037_v63 = vadd.f32 1.0, %v4988_v35  ;;  %v5134_v13 = vadd.f32 %v6493_v11, %v5085_v37  ;;  %6234 = vrcp.f32 %v4158_v1  ;;  %v4355_v5 = vmul.f32 %v9205_v38, %v4306_v48 }
 0x5a0   : > { %v3727_v50 = vpop.f32.mrf.mxu1  ;;  %v4647_v39 = vmul.f32 %v9148_v58, %v4598_v16  ;;  %v4940_v57 = vsub.f32 1.0, %v4891_v24  ;;  %v3862_v32 = vmul.f32 0.5, %v9046_v30  ;;  %v4009_v21 = vsel %vm3960_vm14, 1.0, %v10373_v19 }
 0x5a1   : > { %v9229_v43 = vpop.f32.mrf.mxu0  ;;  %v5086_v52 = vmul.f32 %v5037_v63, %v3861_v41  ;;  %5183 = vst.msk [vmem:[%s9144_s26 + $0x20] sm:$0xff] %vm842_vm3, %v5134_v13  ;;  %v3467_v58 = vadd.f32 %v9082_v28, %v2652_v23  ;;  %v4404_v55 = vadd.f32 1.4214138, %v4355_v5  ;;  %v4697_v25 = vmul.f32 %v4060_v61, %v4060_v61  ;;  %v6495_v13 = vld [vmem:[%s6613_s27 + $0x30] sm:$0xff] }
 0x5a2   : > { %v9238_v26 = vpop.f32.mrf.mxu1  ;;  %v4892_v18 = vmul.f32 %v9184_v14, %v4647_v39  ;;  %v4989_v9 = vmul.f32 %v4940_v57, %v4009_v21  ;;  %v4063_v30 = vand.u32 2147483647, %v9227_v12  ;;  %v3478_v14 = vadd.f32 %v9121_v45, %v2667_v56  ;;  %v2662_v57 = vpop.permute.xlu0 %2661 }
 0x5a3   : > { %v3503_v27 = vpop.f32.mrf.mxu0  ;;  %v5135_v31 = vadd.f32 %v6494_v7, %v5086_v52  ;;  %v9245_v40 = vadd.f32 %v9096_v0, %v3467_v58  ;;  %v4453_v3 = vmul.f32 %v9205_v38, %v4404_v55  ;;  %v4010_v61 = vsel %vm3961_vm15, 1.0, %v10373_v19 }
 0x5a4   : > { %v3732_v28 = vpop.f32.mrf.mxu1  ;;  %v4941_v60 = vsub.f32 1.0, %v4892_v18  ;;  %v5038_v20 = vadd.f32 1.0, %v4989_v9  ;;  %v4112_v17 = vmul.f32 0.3275911, %v4063_v30  ;;  %v9262_v45 = vadd.f32 %v9146_v62, %v3478_v14 }
 0x5a5   : > { %v9249_v33 = vpop.f32.mrf.mxu0  ;;  %5184 = vst.msk [vmem:[%s9144_s26 + $0x28] sm:$0xff] %vm842_vm3, %v5135_v31  ;;  %v9257_v0 = vmul.f32 0.70710677, %v9245_v40  ;;  %v4502_v16 = vadd.f32 -0.28449672, %v4453_v3  ;;  %v4746_v48 = vsub.f32 0.0, %v4697_v25  ;;  %v3475_v21 = vadd.f32 %v9109_v22, %v2662_v57  ;;  %v2677_v3 = vpop.permute.xlu1 %2676 }
 0x5a6   : > { %v9259_v35 = vpop.f32.mrf.mxu1  ;;  %v4990_v37 = vmul.f32 %v4941_v60, %v4010_v61  ;;  %v5087_v1 = vmul.f32 %v5038_v20, %v3862_v32  ;;  %v4161_v46 = vadd.f32 1.0, %v4112_v17  ;;  %v3863_v63 = vmul.f32 0.5, %v9060_v51  ;;  %v6496_v25 = vld [vmem:[%s6613_s27 + $0x38] sm:$0xff] }
 0x5a7   : > { %v3508_v24 = vpop.f32.mrf.mxu0  ;;  %v4062_v6 = vand.u32 2147483647, %v9257_v0  ;;  %v4551_v39 = vmul.f32 %v9205_v38, %v4502_v16  ;;  %v9276_v51 = vmul.f32 0.70710677, %v9262_v45  ;;  %v3865_v9 = vmul.f32 0.5, %v9092_v36 }
 0x5a8   : > { %v3735_v41 = vpop.f32.mrf.mxu1  ;;  %v5039_v11 = vadd.f32 1.0, %v4990_v37  ;;  %v5136_v50 = vadd.f32 %v6495_v13, %v5087_v1  ;;  %6236 = vrcp.f32 %v4161_v46  ;;  %v4803_v55 = vmul.f32 1.442695, %v4746_v48  ;;  %v2672_v1 = vpop.permute.xlu0 %2671 }
 0x5a9   : > { %v9268_v5 = vpop.f32.mrf.mxu0  ;;  %v4111_v62 = vmul.f32 0.3275911, %v4062_v6  ;;  %v4600_v32 = vadd.f32 0.2548296, %v4551_v39  ;;  %v6233_v58 = vpop.eup %6232  ;;  %v4700_v60 = vmul.f32 %v4063_v30, %v4063_v30  ;;  %v4065_v20 = vand.u32 2147483647, %v9276_v51 }
 0x5aa   : > { %v9271_v23 = vpop.f32.mrf.mxu1  ;;  %v5088_v52 = vmul.f32 %v5039_v11, %v3863_v63  ;;  %5185 = vst.msk [vmem:[%s9144_s26 + $0x30] sm:$0xff] %vm842_vm3, %v5136_v50  ;;  %v4012_v36 = vsel %vm3963_vm0, 1.0, %v10373_v19  ;;  %v3486_v61 = vadd.f32 %v9156_v54, %v2677_v3  ;;  %vm3962_vm1 = vcmp.ge.f32.partialorder %v9191_v53, 0.0 }
 0x5ab   : > { %v3511_v18 = vpop.f32.mrf.mxu0  ;;  %v4160_v27 = vadd.f32 1.0, %v4111_v62  ;;  %v4649_v28 = vmul.f32 %v9205_v38, %v4600_v32  ;;  %v4114_v30 = vmul.f32 0.3275911, %v4065_v20  ;;  %v9298_v37 = vadd.f32 %v9124_v34, %v3475_v21 }
 0x5ac   : > { %v9280_v7 = vpop.eup %6234  ;;  %v3740_v31 = vpop.f32.mrf.mxu1  ;;  %v5137_v56 = vadd.f32 %v6496_v25, %v5088_v52  ;;  %v9301_v24 = vadd.f32 %v9180_v44, %v3486_v61  ;;  %v3483_v54 = vadd.f32 %v9135_v49, %v2672_v1  ;;  %vm3965_vm2 = vcmp.ge.f32.partialorder %v9227_v12, 0.0 }
 0x5ad   : > { %v9285_v14 = vpop.f32.mrf.mxu0  ;;  %v4256_v22 = vmul.f32 1.0614054, %v9280_v7  ;;  %6238 = vrcp.f32 %v4160_v27  ;;  %v4894_v38 = vmul.f32 %v6233_v58, %v4649_v28  ;;  %v4749_v41 = vsub.f32 0.0, %v4700_v60 }
 0x5ae   : > { %v9292_v17 = vpop.f32.mrf.mxu1  ;;  %5186 = vst.msk [vmem:[%s9144_s26 + $0x38] sm:$0xff] %vm842_vm3, %v5137_v56  ;;  %6240 = vpow2.f32 %v4803_v55  ;;  %v4163_v63 = vadd.f32 1.0, %v4114_v30  ;;  %v4699_v13 = vmul.f32 %v4062_v6, %v4062_v6  ;;  %v9309_v50 = vmul.f32 0.70710677, %v9298_v37 }
 0x5af   : > { %v3516_v16 = vpop.f32.mrf.mxu0  ;;  %v4305_v10 = vadd.f32 -1.4531521, %v4256_v22  ;;  %v4943_v46 = vsub.f32 1.0, %v4894_v38  ;;  %v9312_v39 = vmul.f32 0.70710677, %v9301_v24  ;;  %v9317_v57 = vmul.f32 0.5, %v9169_v2 }
 0x5b0   : > { %v3743_v48 = vpop.f32.mrf.mxu1  ;;  %6242 = vrcp.f32 %v4163_v63  ;;  %v9320_v62 = vadd.f32 %v9161_v47, %v3483_v54  ;;  %v9325_v6 = vsel %vm3962_vm1, 1.0, %v10373_v19  ;;  %v9328_v21 = vmul.f32 0.5, %v9208_v29 }
 0x5b1   : > { %v9305_v11 = vpop.f32.mrf.mxu0  ;;  %v4354_v34 = vmul.f32 %v9280_v7, %v4305_v10  ;;  %v4992_v49 = vmul.f32 %v4943_v46, %v4012_v36  ;;  %v4064_v58 = vand.u32 2147483647, %v9309_v50  ;;  %v9334_v2 = vsel %vm3965_vm2, 1.0, %v10373_v19  ;;  %v6497_v10 = vld [vmem:[%s6613_s27 + $0x48] sm:$0xff] }
 0x5b2   : > { %v9314_v44 = vpop.f32.mrf.mxu1  ;;  %v4809_v47 = vmul.f32 1.442695, %v4749_v41  ;;  %vm3964_vm4 = vcmp.ge.f32.partialorder %v9257_v0, 0.0  ;;  %v4748_v31 = vsub.f32 0.0, %v4699_v13  ;;  %v4067_v25 = vand.u32 2147483647, %v9312_v39 }
 0x5b3   : > { %v3519_v52 = vpop.f32.mrf.mxu0  ;;  %v4403_v32 = vadd.f32 1.4214138, %v4354_v34  ;;  %v5041_v55 = vadd.f32 1.0, %v4992_v49  ;;  %v4113_v29 = vmul.f32 0.3275911, %v4064_v58  ;;  %v9346_v12 = vmul.f32 0.5, %v9245_v40 }
 0x5b4   : > { %v3748_v18 = vpop.f32.mrf.mxu1  ;;  %v4702_v3 = vmul.f32 %v4065_v20, %v4065_v20  ;;  %v9349_v36 = vmul.f32 0.70710677, %v9320_v62  ;;  %v9353_v30 = vmul.f32 0.5, %v9262_v45  ;;  %6244 = vpow2.f32 %v4809_v47  ;;  %v2687_v52 = vpop.permute.xlu1 %2686 }
 0x5b5   : > { %v9337_v27 = vpop.f32.mrf.mxu0  ;;  %v4452_v53 = vmul.f32 %v9280_v7, %v4403_v32  ;;  %v9341_v56 = vpop.eup %6236  ;;  %v5090_v60 = vmul.f32 %v5041_v55, %v3865_v9  ;;  %v4162_v1 = vadd.f32 1.0, %v4113_v29  ;;  %v9359_v40 = vsel %vm3964_vm4, 1.0, %v10373_v19 }
 0x5b6   : > { %v9343_v28 = vpop.f32.mrf.mxu1  ;;  %v4259_v38 = vmul.f32 1.0614054, %v9341_v56  ;;  %v4116_v9 = vmul.f32 0.3275911, %v4067_v25  ;;  %v4807_v41 = vmul.f32 1.442695, %v4748_v31  ;;  %v4701_v13 = vmul.f32 %v4064_v58, %v4064_v58 }
 0x5b7   : > { %v3524_v22 = vpop.f32.mrf.mxu0  ;;  %v4501_v61 = vadd.f32 -0.28449672, %v4452_v53  ;;  %v5139_v54 = vadd.f32 %v6497_v10, %v5090_v60  ;;  %6246 = vrcp.f32 %v4162_v1  ;;  %v4751_v34 = vsub.f32 0.0, %v4702_v3 }
 0x5b8   : > { %v3751_v16 = vpop.f32.mrf.mxu1  ;;  %v4308_v46 = vadd.f32 -1.4531521, %v4259_v38  ;;  %v4165_v49 = vadd.f32 1.0, %v4116_v9  ;;  %v4066_v0 = vand.u32 2147483647, %v9349_v36  ;;  %v3494_v53 = vadd.f32 %v9196_v42, %v2687_v52 }
 0x5b9   : > { %v9361_v20 = vpop.f32.mrf.mxu0  ;;  %v4550_v48 = vmul.f32 %v9280_v7, %v4501_v61  ;;  %5188 = vst.msk [vmem:[%s9144_s26 + $0x48] sm:$0xff] %vm842_vm3, %v5139_v54  ;;  %vm3967_vm5 = vcmp.ge.f32.partialorder %v9276_v51, 0.0  ;;  %v4704_v60 = vmul.f32 %v4067_v25, %v4067_v25  ;;  %v2682_v16 = vpop.permute.xlu0 %2681  ;;  %v4750_v42 = vsub.f32 0.0, %v4701_v13 }
 0x5ba   : > { %v9364_v45 = vpop.eup %6238  ;;  %v9366_v63 = vpop.f32.mrf.mxu1  ;;  %v4357_v55 = vmul.f32 %v9341_v56, %v4308_v46  ;;  %6248 = vrcp.f32 %v4165_v49  ;;  %v4115_v3 = vmul.f32 0.3275911, %v4066_v0  ;;  %v9379_v1 = vadd.f32 %v9218_v59, %v3494_v53 }
 0x5bb   : > { %v3527_v32 = vpop.f32.mrf.mxu0  ;;  %v4599_v18 = vadd.f32 0.2548296, %v4550_v48  ;;  %v4258_v47 = vmul.f32 1.0614054, %v9364_v45  ;;  %v6241_v31 = vpop.eup %6240  ;;  %6250 = vpow2.f32 %v4807_v41  ;;  %v3491_v9 = vadd.f32 %v9173_v8, %v2682_v16 }
 0x5bc   : > { %v3756_v29 = vpop.f32.mrf.mxu1  ;;  %v4406_v61 = vadd.f32 1.4214138, %v4357_v55  ;;  %v4164_v54 = vadd.f32 1.0, %v4115_v3  ;;  %v4813_v52 = vmul.f32 1.442695, %v4751_v34  ;;  %v9397_v53 = vsel %vm3967_vm5, 1.0, %v10373_v19 }
 0x5bd   : > { %v9375_v58 = vpop.f32.mrf.mxu0  ;;  %v4648_v22 = vmul.f32 %v9280_v7, %v4599_v18  ;;  %v4307_v38 = vadd.f32 -1.4531521, %v4258_v47  ;;  %v9384_v48 = vpop.eup %6242  ;;  %v4753_v18 = vsub.f32 0.0, %v4704_v60  ;;  %v9390_v41 = vmul.f32 0.70710677, %v9379_v1 }
 0x5be   : > { %v9381_v10 = vpop.f32.mrf.mxu1  ;;  %v4455_v49 = vmul.f32 %v9341_v56, %v4406_v61  ;;  %v4261_v59 = vmul.f32 1.0614054, %v9384_v48  ;;  %6252 = vrcp.f32 %v4164_v54  ;;  %v4811_v29 = vmul.f32 1.442695, %v4750_v42 }
 0x5bf   : > { %v3532_v25 = vpop.f32.mrf.mxu0  ;;  %v4893_v46 = vmul.f32 %v6241_v31, %v4648_v22  ;;  %v4356_v7 = vmul.f32 %v9364_v45, %v4307_v38  ;;  %v4069_v60 = vand.u32 2147483647, %v9390_v41  ;;  %v9403_v3 = vadd.f32 %v9200_v15, %v3491_v9 }
 0x5c0   : > { %v3759_v32 = vpop.f32.mrf.mxu1  ;;  %v4504_v55 = vadd.f32 -0.28449672, %v4455_v49  ;;  %v4310_v34 = vadd.f32 -1.4531521, %v4261_v59  ;;  %6254 = vpow2.f32 %v4813_v52  ;;  %v4817_v25 = vmul.f32 1.442695, %v4753_v18 }
 0x5c1   : > { %v9392_v13 = vpop.f32.mrf.mxu0  ;;  %v4942_v8 = vsub.f32 1.0, %v4893_v46  ;;  %v4405_v47 = vadd.f32 1.4214138, %v4356_v7  ;;  %v4703_v46 = vmul.f32 %v4066_v0, %v4066_v0  ;;  %v4118_v49 = vmul.f32 0.3275911, %v4069_v60  ;;  %v6245_v42 = vpop.eup %6244 }
 0x5c2   : > { %v9399_v31 = vpop.f32.mrf.mxu1  ;;  %v4553_v38 = vmul.f32 %v9341_v56, %v4504_v55  ;;  %v4359_v54 = vmul.f32 %v9384_v48, %v4310_v34  ;;  %vm3966_vm6 = vcmp.ge.f32.partialorder %v9309_v50, 0.0  ;;  %6256 = vpow2.f32 %v4811_v29 }
 0x5c3   : > { %v3535_v22 = vpop.f32.mrf.mxu0  ;;  %v4991_v61 = vmul.f32 %v4942_v8, %v9325_v6  ;;  %v4454_v16 = vmul.f32 %v9364_v45, %v4405_v47  ;;  %v4167_v8 = vadd.f32 1.0, %v4118_v49  ;;  %v9417_v18 = vmul.f32 0.70710677, %v9403_v3 }
 0x5c4   : > { %v3764_v51 = vpop.f32.mrf.mxu1  ;;  %v4602_v15 = vadd.f32 0.2548296, %v4553_v38  ;;  %v9412_v6 = vpop.eup %6246  ;;  %v4408_v52 = vadd.f32 1.4214138, %v4359_v54  ;;  %v4752_v29 = vsub.f32 0.0, %v4703_v46  ;;  %v6498_v54 = vld [vmem:[%s6613_s27 + $0x40] sm:$0xff] }
 0x5c5   : > { %v9409_v7 = vpop.f32.mrf.mxu0  ;;  %v5040_v32 = vadd.f32 1.0, %v4991_v61  ;;  %v4503_v9 = vadd.f32 -0.28449672, %v4454_v16  ;;  %v4260_v22 = vmul.f32 1.0614054, %v9412_v6  ;;  %v9425_v16 = vmul.f32 0.5, %v9298_v37 }
 0x5c6   : > { %10449 = vst [vmem:[#allocation14_spill] sm:$0xff] %v9409_v7  ;;  %v9414_v59 = vpop.f32.mrf.mxu1  ;;  %v4651_v47 = vmul.f32 %v9341_v56, %v4602_v15  ;;  %v4457_v38 = vmul.f32 %v9384_v48, %v4408_v52  ;;  %6258 = vrcp.f32 %v4167_v8  ;;  %v9437_v37 = vsel %vm3966_vm6, 1.0, %v10373_v19 }
 0x5c7   : > { %v5089_v0 = vmul.f32 %v5040_v32, %v9317_v57  ;;  %v3540_v55 = vpop.f32.mrf.mxu0  ;;  %v4552_v34 = vmul.f32 %v9364_v45, %v4503_v9  ;;  %v9427_v51 = vpop.eup %6248  ;;  %v4309_v15 = vadd.f32 -1.4531521, %v4260_v22  ;;  %6260 = vpow2.f32 %v4817_v25 }
 0x5c8   : > { %v3767_v61 = vpop.f32.mrf.mxu1  ;;  %v4896_v49 = vmul.f32 %v6245_v42, %v4651_v47  ;;  %v4506_v55 = vadd.f32 -0.28449672, %v4457_v38  ;;  %v4263_v46 = vmul.f32 1.0614054, %v9427_v51  ;;  %v6251_v52 = vpop.eup %6250  ;;  %v4815_v38 = vmul.f32 1.442695, %v4752_v29 }
 0x5c9   : > { %v5138_v57 = vadd.f32 %v6498_v54, %v5089_v0  ;;  %v9430_v32 = vpop.f32.mrf.mxu0  ;;  %v4601_v56 = vadd.f32 0.2548296, %v4552_v34  ;;  %v4358_v47 = vmul.f32 %v9412_v6, %v4309_v15  ;;  %v4068_v34 = vand.u32 2147483647, %v9417_v18 }
 0x5ca   : > { %v9432_v9 = vpop.f32.mrf.mxu1  ;;  %v4945_v8 = vsub.f32 1.0, %v4896_v49  ;;  %v4555_v61 = vmul.f32 %v9384_v48, %v4506_v55  ;;  %v4312_v50 = vadd.f32 -1.4531521, %v4263_v46  ;;  %v9446_v54 = vmul.f32 %v4069_v60, %v4069_v60 }
 0x5cb   : > { %10450 = vst [vmem:[#allocation31_spill] sm:$0xff] %v9432_v9  ;;  %5187 = vst.msk [vmem:[%s9144_s26 + $0x40] sm:$0xff] %vm842_vm3, %v5138_v57  ;;  %v4650_v42 = vmul.f32 %v9364_v45, %v4601_v56  ;;  %v3543_v0 = vpop.f32.mrf.mxu0  ;;  %v9448_v19 = vpop.eup %6252  ;;  %v4407_v45 = vadd.f32 1.4214138, %v4358_v47  ;;  %v4117_v56 = vmul.f32 0.3275911, %v4068_v34 }
 0x5cc   : > { %v3772_v22 = vpop.f32.mrf.mxu1  ;;  %v4994_v25 = vmul.f32 %v4945_v8, %v9334_v2  ;;  %v2697_v0 = vpop.permute.xlu1 %2696  ;;  %v4604_v9 = vadd.f32 0.2548296, %v4555_v61  ;;  %v4262_v55 = vmul.f32 1.0614054, %v9448_v19  ;;  %vm3969_vm7 = vcmp.ge.f32.partialorder %v9312_v39, 0.0 }
 0x5cd   : > { %v4895_v57 = vmul.f32 %v6251_v52, %v4650_v42  ;;  %v9451_v49 = vpop.f32.mrf.mxu0  ;;  %v4361_v22 = vmul.f32 %v9427_v51, %v4312_v50  ;;  %v3502_v60 = vadd.f32 %v9229_v43, %v2697_v0  ;;  %v4456_v7 = vmul.f32 %v9412_v6, %v4407_v45  ;;  %v6255_v8 = vpop.eup %6254 }
 0x5ce   : > { %10451 = vst [vmem:[#allocation28_spill] sm:$0xff] %v9451_v49  ;;  %v9453_v15 = vpop.f32.mrf.mxu1  ;;  %v5043_v29 = vadd.f32 1.0, %v4994_v25  ;;  %v4166_v52 = vadd.f32 1.0, %v4117_v56  ;;  %v4653_v42 = vmul.f32 %v9384_v48, %v4604_v9  ;;  %vm3968_vm8 = vcmp.ge.f32.partialorder %v9349_v36, 0.0 }
 0x5cf   : > { %10452 = vst [vmem:[#allocation13_spill] sm:$0xff] %v9453_v15  ;;  %v4944_v46 = vsub.f32 1.0, %v4895_v57  ;;  %v3548_v2 = vpop.f32.mrf.mxu0  ;;  %v4410_v49 = vadd.f32 1.4214138, %v4361_v22  ;;  %v4311_v15 = vadd.f32 -1.4531521, %v4262_v55  ;;  %v9461_v61 = vadd.f32 %v9259_v35, %v3502_v60  ;;  %v6257_v0 = vpop.eup %6256 }
 0x5d0   : > { %v3775_v47 = vpop.f32.mrf.mxu1  ;;  %v5092_v50 = vmul.f32 %v5043_v29, %v9328_v21  ;;  %v4505_v25 = vadd.f32 -0.28449672, %v4456_v7  ;;  %6262 = vrcp.f32 %v4166_v52  ;;  %v4898_v45 = vmul.f32 %v6255_v8, %v4653_v42  ;;  %v6499_v35 = vld [vmem:[%s6613_s27 + $0x58] sm:$0xff]  ;;  %v2692_v60 = vpop.permute.xlu0 %2691 }
 0x5d1   : > { %v4993_v43 = vmul.f32 %v4944_v46, %v9359_v40  ;;  %v9465_v57 = vpop.f32.mrf.mxu0  ;;  %v4459_v48 = vmul.f32 %v9427_v51, %v4410_v49  ;;  %v4360_v9 = vmul.f32 %v9448_v19, %v4311_v15  ;;  %6264 = vpow2.f32 %v4815_v38  ;;  %v2707_v39 = vpop.permute.xlu1 %2706 }
 0x5d2   : > { %v9467_v56 = vpop.f32.mrf.mxu1  ;;  %v5141_v22 = vadd.f32 %v6499_v35, %v5092_v50  ;;  %v4554_v21 = vmul.f32 %v9412_v6, %v4505_v25  ;;  %v4755_v7 = vsub.f32 0.0, %v9446_v54  ;;  %v4947_v29 = vsub.f32 1.0, %v4898_v45 }
 0x5d3   : > { %v5042_v55 = vadd.f32 1.0, %v4993_v43  ;;  %v3551_v40 = vpop.f32.mrf.mxu0  ;;  %v4508_v46 = vadd.f32 -0.28449672, %v4459_v48  ;;  %v4409_v2 = vadd.f32 1.4214138, %v4360_v9  ;;  %v3499_v38 = vadd.f32 %v9214_v4, %v2692_v60  ;;  %v9476_v15 = vpop.eup %6258 }
 0x5d4   : > { %v3780_v49 = vpop.f32.mrf.mxu1  ;;  %5190 = vst.msk [vmem:[%s9144_s26 + $0x58] sm:$0xff] %vm842_vm3, %v5141_v22  ;;  %v4603_v8 = vadd.f32 0.2548296, %v4554_v21  ;;  %v4705_v54 = vmul.f32 %v4068_v34, %v4068_v34  ;;  %v9484_v47 = vmul.f32 0.70710677, %v9461_v61  ;;  %v4996_v50 = vmul.f32 %v4947_v29, %v9397_v53  ;;  %v6261_v48 = vpop.eup %6260 }
 0x5d5   : > { %v5091_v52 = vmul.f32 %v5042_v55, %v9346_v12  ;;  %v9481_v42 = vpop.f32.mrf.mxu0  ;;  %v4557_v43 = vmul.f32 %v9427_v51, %v4508_v46  ;;  %v4458_v4 = vmul.f32 %v9448_v19, %v4409_v2  ;;  %v4265_v45 = vmul.f32 1.0614054, %v9476_v15  ;;  %v6500_v12 = vld [vmem:[%s6613_s27 + $0x50] sm:$0xff] }
 0x5d6   : > { %v9489_v25 = vpop.f32.mrf.mxu1  ;;  %v4652_v35 = vmul.f32 %v9412_v6, %v4603_v8  ;;  %v4821_v34 = vmul.f32 1.442695, %v4755_v7  ;;  %v9495_v55 = vand.u32 2147483647, %v9484_v47  ;;  %v5045_v53 = vadd.f32 1.0, %v4996_v50 }
 0x5d7   : > { %v5140_v9 = vadd.f32 %v6500_v12, %v5091_v52  ;;  %v3556_v22 = vpop.f32.mrf.mxu0  ;;  %v4606_v21 = vadd.f32 0.2548296, %v4557_v43  ;;  %v4507_v40 = vadd.f32 -0.28449672, %v4458_v4  ;;  %v9498_v29 = vadd.f32 %v9238_v26, %v3499_v38  ;;  %v6501_v4 = vld [vmem:[%s6613_s27 + $0x68] sm:$0xff] }
 0x5d8   : > { %v3783_v60 = vpop.f32.mrf.mxu1  ;;  %v4897_v46 = vmul.f32 %v6257_v0, %v4652_v35  ;;  %v4314_v2 = vadd.f32 -1.4531521, %v4265_v45  ;;  %v4754_v49 = vsub.f32 0.0, %v4705_v54  ;;  %v4120_v6 = vmul.f32 0.3275911, %v9495_v55 }
 0x5d9   : > { %5189 = vst.msk [vmem:[%s9144_s26 + $0x50] sm:$0xff] %vm842_vm3, %v5140_v9  ;;  %v9503_v7 = vpop.f32.mrf.mxu0  ;;  %v5094_v52 = vmul.f32 %v5045_v53, %v9353_v30  ;;  %v4655_v8 = vmul.f32 %v9427_v51, %v4606_v21  ;;  %v4556_v50 = vmul.f32 %v9448_v19, %v4507_v40  ;;  %6266 = vpow2.f32 %v4821_v34 }
 0x5da   : > { %v9509_v26 = vpop.f32.mrf.mxu1  ;;  %v4946_v38 = vsub.f32 1.0, %v4897_v46  ;;  %v4363_v43 = vmul.f32 %v9476_v15, %v4314_v2  ;;  %v4169_v0 = vadd.f32 1.0, %v4120_v6  ;;  %v9514_v30 = vmul.f32 0.70710677, %v9498_v29 }
 0x5db   : > { %v3559_v54 = vpop.f32.mrf.mxu0  ;;  %v5143_v45 = vadd.f32 %v6501_v4, %v5094_v52  ;;  %v4900_v12 = vmul.f32 %v6261_v48, %v4655_v8  ;;  %v4605_v9 = vadd.f32 0.2548296, %v4556_v50  ;;  %v4819_v53 = vmul.f32 1.442695, %v4754_v49 }
 0x5dc   : > { %v3788_v51 = vpop.f32.mrf.mxu1  ;;  %v4995_v35 = vmul.f32 %v4946_v38, %v9437_v37  ;;  %v4412_v22 = vadd.f32 1.4214138, %v4363_v43  ;;  %6268 = vrcp.f32 %v4169_v0  ;;  %v3871_v34 = vmul.f32 0.5, %v9301_v24 }
 0x5dd   : > { %v9517_v21 = vpop.f32.mrf.mxu0  ;;  %v9519_v40 = vpop.eup %6262  ;;  %5192 = vst.msk [vmem:[%s9144_s26 + $0x68] sm:$0xff] %vm842_vm3, %v5143_v45  ;;  %v4949_v60 = vsub.f32 1.0, %v4900_v12  ;;  %v4654_v48 = vmul.f32 %v9448_v19, %v4605_v9  ;;  %v4070_v46 = vand.u32 2147483647, %v9514_v30  ;;  %v10453_v52 = vmov -1.0  }
 0x5de   : > { %v9526_v2 = vpop.f32.mrf.mxu1  ;;  %v6265_v6 = vpop.eup %6264  ;;  %v5044_v37 = vadd.f32 1.0, %v4995_v35  ;;  %v4018_v49 = vsel %vm3969_vm7, 1.0, %v10453_v52  ;;  %v4461_v8 = vmul.f32 %v9476_v15, %v4412_v22  ;;  %v4264_v50 = vmul.f32 1.0614054, %v9519_v40 }
 0x5df   : > { %v3564_v38 = vpop.f32.mrf.mxu0  ;;  %v4998_v43 = vmul.f32 %v4949_v60, %v4018_v49  ;;  %v4017_v19 = vsel %vm3968_vm8, 1.0, %v10453_v52  ;;  %v4899_v24 = vmul.f32 %v6265_v6, %v4654_v48  ;;  %v4119_v0 = vmul.f32 0.3275911, %v4070_v46  ;;  %v6502_v49 = vld [vmem:[%s6613_s27 + $0x60] sm:$0xff] }
 0x5e0   : > { %v3791_v54 = vpop.f32.mrf.mxu1  ;;  %v5093_v4 = vmul.f32 %v5044_v37, %v9425_v16  ;;  %v4510_v45 = vadd.f32 -0.28449672, %v4461_v8  ;;  %v4313_v12 = vadd.f32 -1.4531521, %v4264_v50  ;;  %6270 = vpow2.f32 %v4819_v53 }
 0x5e1   : > { %v9537_v9 = vpop.f32.mrf.mxu0  ;;  %v5047_v51 = vadd.f32 1.0, %v4998_v43  ;;  %v4948_v35 = vsub.f32 1.0, %v4899_v24  ;;  %v4168_v22 = vadd.f32 1.0, %v4119_v0  ;;  %v3510_v60 = vadd.f32 %v9268_v5, %v2707_v39  ;;  %v2702_v5 = vpop.permute.xlu0 %2701 }
 0x5e2   : > { %v9540_v36 = vpop.f32.mrf.mxu1  ;;  %v5142_v48 = vadd.f32 %v6502_v49, %v5093_v4  ;;  %v4559_v6 = vmul.f32 %v9476_v15, %v4510_v45  ;;  %v4362_v16 = vmul.f32 %v9519_v40, %v4313_v12  ;;  %v4708_v53 = vmul.f32 %v9495_v55, %v9495_v55  ;;  %v6503_v55 = vld [vmem:[%s6613_s27 + $0x78] sm:$0xff] }
 0x5e3   : > { %v3567_v37 = vpop.f32.mrf.mxu0  ;;  %v5096_v8 = vmul.f32 %v5047_v51, %v3871_v34  ;;  %v4997_v50 = vmul.f32 %v4948_v35, %v4017_v19  ;;  %6272 = vrcp.f32 %v4168_v22  ;;  %v9548_v38 = vadd.f32 %v9292_v17, %v3510_v60 }
 0x5e4   : > { %v3796_v43 = vpop.f32.mrf.mxu1  ;;  %5191 = vst.msk [vmem:[%s9144_s26 + $0x60] sm:$0xff] %vm842_vm3, %v5142_v48  ;;  %v3870_v24 = vmul.f32 0.5, %v9320_v62  ;;  %v4608_v0 = vadd.f32 0.2548296, %v4559_v6  ;;  %v4411_v54 = vadd.f32 1.4214138, %v4362_v16  ;;  %v3507_v4 = vadd.f32 %v9249_v33, %v2702_v5  ;;  %v2717_v37 = vpop.permute.xlu1 %2716 }
 0x5e5   : > { %v9554_v45 = vpop.f32.mrf.mxu0  ;;  %v5145_v34 = vadd.f32 %v6503_v55, %v5096_v8  ;;  %v5046_v19 = vadd.f32 1.0, %v4997_v50  ;;  %vm3971_vm9 = vcmp.ge.f32.partialorder %v9390_v41, 0.0  ;;  %v9559_v17 = vmul.f32 0.70710677, %v9548_v38 }
 0x5e6   : > { %v9561_v12 = vpop.f32.mrf.mxu1  ;;  %v4657_v39 = vmul.f32 %v9476_v15, %v4608_v0  ;;  %v4460_v62 = vmul.f32 %v9519_v40, %v4411_v54  ;;  %v4757_v51 = vsub.f32 0.0, %v4708_v53  ;;  %v9566_v33 = vadd.f32 %v9271_v23, %v3507_v4  ;;  %v6267_v22 = vpop.eup %6266  ;;  %v6504_v23 = vld [vmem:[%s6613_s27 + $0x70] sm:$0xff] }
 0x5e7   : > { %v3572_v35 = vpop.f32.mrf.mxu0  ;;  %5194 = vst.msk [vmem:[%s9144_s26 + $0x78] sm:$0xff] %vm842_vm3, %v5145_v34  ;;  %v5095_v60 = vmul.f32 %v5046_v19, %v3870_v24  ;;  %v4707_v41 = vmul.f32 %v4070_v46, %v4070_v46  ;;  %v4073_v49 = vand.u32 2147483647, %v9559_v17  ;;  %v4020_v6 = vsel %vm3971_vm9, 1.0, %v10453_v52 }
 0x5e8   : > { %v3799_v48 = vpop.f32.mrf.mxu1  ;;  %v4902_v16 = vmul.f32 %v6267_v22, %v4657_v39  ;;  %v4509_v15 = vadd.f32 -0.28449672, %v4460_v62  ;;  %v9578_v43 = vmul.f32 0.70710677, %v9566_v33  ;;  %v3518_v46 = vadd.f32 %v9305_v11, %v2717_v37 }
 0x5e9   : > { %v9572_v8 = vpop.f32.mrf.mxu0  ;;  %v9574_v53 = vpop.eup %6268  ;;  %v5144_v50 = vadd.f32 %v6504_v23, %v5095_v60  ;;  %v4122_v5 = vmul.f32 0.3275911, %v4073_v49  ;;  %v4825_v55 = vmul.f32 1.442695, %v4757_v51  ;;  %v4756_v19 = vsub.f32 0.0, %v4707_v41 }
 0x5ea   : > { %v9581_v24 = vpop.f32.mrf.mxu1  ;;  %v4951_v0 = vsub.f32 1.0, %v4902_v16  ;;  %v4558_v54 = vmul.f32 %v9519_v40, %v4509_v15  ;;  %v4267_v4 = vmul.f32 1.0614054, %v9574_v53  ;;  %v4072_v62 = vand.u32 2147483647, %v9578_v43  ;;  %v2712_v23 = vpop.permute.xlu0 %2711 }
 0x5eb   : > { %v3575_v34 = vpop.f32.mrf.mxu0  ;;  %5193 = vst.msk [vmem:[%s9144_s26 + $0x70] sm:$0xff] %vm842_vm3, %v5144_v50  ;;  %v4171_v39 = vadd.f32 1.0, %v4122_v5  ;;  %v9589_v35 = vadd.f32 %v9343_v28, %v3518_v46  ;;  %v3873_v11 = vmul.f32 0.5, %v9379_v1  ;;  %v3872_v51 = vmul.f32 0.5, %v9403_v3 }
 0x5ec   : > { %v3804_v22 = vpop.f32.mrf.mxu1  ;;  %v5000_v60 = vmul.f32 %v4951_v0, %v4020_v6  ;;  %v4607_v48 = vadd.f32 0.2548296, %v4558_v54  ;;  %v4316_v16 = vadd.f32 -1.4531521, %v4267_v4  ;;  %vm3970_vm10 = vcmp.ge.f32.partialorder %v9417_v18, 0.0 }
 0x5ed   : > { %v9592_v15 = vpop.f32.mrf.mxu0  ;;  %v6271_v37 = vpop.eup %6270  ;;  %6274 = vrcp.f32 %v4171_v39  ;;  %v4121_v41 = vmul.f32 0.3275911, %v4072_v62  ;;  %vm3973_vm11 = vcmp.ge.f32.partialorder %v9484_v47, 0.0  ;;  %v4823_v46 = vmul.f32 1.442695, %v4756_v19 }
 0x5ee   : > { %10454 = vst [vmem:[#allocation26_spill] sm:$0xff] %v9592_v15  ;;  %v9596_v50 = vpop.f32.mrf.mxu1  ;;  %v5049_v28 = vadd.f32 1.0, %v5000_v60  ;;  %v4656_v5 = vmul.f32 %v9519_v40, %v4607_v48  ;;  %v4365_v1 = vmul.f32 %v9574_v53, %v4316_v16  ;;  %6276 = vpow2.f32 %v4825_v55 }
 0x5ef   : > { %v3580_v6 = vpop.f32.mrf.mxu0  ;;  %v4170_v0 = vadd.f32 1.0, %v4121_v41  ;;  %v9602_v3 = vmul.f32 0.70710677, %v9589_v35  ;;  %v3515_v40 = vadd.f32 %v9285_v14, %v2712_v23  ;;  %v4019_v55 = vsel %vm3970_vm10, 1.0, %v10453_v52  ;;  %v6505_v41 = vld [vmem:[%s6613_s27 + $0x88] sm:$0xff] }
 0x5f0   : > { %v3807_v54 = vpop.f32.mrf.mxu1  ;;  %v9604_v4 = vpop.eup %6272  ;;  %v5098_v34 = vmul.f32 %v5049_v28, %v3873_v11  ;;  %v4901_v39 = vmul.f32 %v6271_v37, %v4656_v5  ;;  %v4414_v22 = vadd.f32 1.4214138, %v4365_v1  ;;  %v4710_v48 = vmul.f32 %v4073_v49, %v4073_v49 }
 0x5f1   : > { %v9607_v60 = vpop.f32.mrf.mxu0  ;;  %v4266_v19 = vmul.f32 1.0614054, %v9604_v4  ;;  %6278 = vrcp.f32 %v4170_v0  ;;  %v9617_v37 = vmul.f32 0.5, %v9461_v61  ;;  %v9623_v18 = vsel %vm3973_vm11, 1.0, %v10453_v52  ;;  %v2722_v1 = vpop.permute.xlu0 %2721 }
 0x5f2   : > { %v9613_v16 = vpop.f32.mrf.mxu1  ;;  %v5147_v6 = vadd.f32 %v6505_v41, %v5098_v34  ;;  %v4950_v11 = vsub.f32 1.0, %v4901_v39  ;;  %v4463_v14 = vmul.f32 %v9574_v53, %v4414_v22  ;;  %v9626_v49 = vand.u32 2147483647, %v9602_v3 }
 0x5f3   : > { %10455 = vst [vmem:[#allocation27_spill] sm:$0xff] %v9613_v16  ;;  %v3583_v23 = vpop.f32.mrf.mxu0  ;;  %v4315_v28 = vadd.f32 -1.4531521, %v4266_v19  ;;  %v9629_v5 = vadd.f32 %v9314_v44, %v3515_v40  ;;  %6280 = vpow2.f32 %v4823_v46  ;;  %v3523_v34 = vadd.f32 %v9337_v27, %v2722_v1 }
 0x5f4   : > { %v3812_v0 = vpop.f32.mrf.mxu1  ;;  %5196 = vst.msk [vmem:[%s9144_s26 + $0x88] sm:$0xff] %vm842_vm3, %v5147_v6  ;;  %v4999_v61 = vmul.f32 %v4950_v11, %v4019_v55  ;;  %v4512_v54 = vadd.f32 -0.28449672, %v4463_v14  ;;  %v4759_v22 = vsub.f32 0.0, %v4710_v48  ;;  %v4709_v19 = vmul.f32 %v4072_v62, %v4072_v62  ;;  %v2727_v23 = vpop.permute.xlu1 %2726 }
 0x5f5   : > { %v9634_v39 = vpop.f32.mrf.mxu0  ;;  %v4364_v47 = vmul.f32 %v9604_v4, %v4315_v28  ;;  %v4124_v41 = vmul.f32 0.3275911, %v9626_v49  ;;  %v9642_v55 = vmul.f32 0.70710677, %v9629_v5  ;;  %v3526_v46 = vadd.f32 %v9361_v20, %v2727_v23 }
 0x5f6   : > { %10456 = vst [vmem:[#allocation3_spill] sm:$0xff] %v9634_v39  ;;  %v9638_v44 = vpop.f32.mrf.mxu1  ;;  %v5048_v40 = vadd.f32 1.0, %v4999_v61  ;;  %v4561_v0 = vmul.f32 %v9574_v53, %v4512_v54  ;;  %vm3972_vm12 = vcmp.ge.f32.partialorder %v9514_v30, 0.0  ;;  %v9647_v62 = vadd.f32 %v9366_v63, %v3523_v34  ;;  %v6506_v34 = vld [vmem:[%s6613_s27 + $0x80] sm:$0xff] }
 0x5f7   : > { %v3588_v27 = vpop.f32.mrf.mxu0  ;;  %v4413_v6 = vadd.f32 1.4214138, %v4364_v47  ;;  %v4173_v48 = vadd.f32 1.0, %v4124_v41  ;;  %v9650_v1 = vand.u32 2147483647, %v9642_v55  ;;  %v9653_v61 = vadd.f32 %v9381_v10, %v3526_v46 }
 0x5f8   : > { %v3815_v11 = vpop.f32.mrf.mxu1  ;;  %v5097_v14 = vmul.f32 %v5048_v40, %v3872_v51  ;;  %v4610_v28 = vadd.f32 0.2548296, %v4561_v0  ;;  %v9658_v20 = vmul.f32 0.5, %v9498_v29  ;;  %v4829_v41 = vmul.f32 1.442695, %v4759_v22 }
 0x5f9   : > { %v9655_v54 = vpop.f32.mrf.mxu0  ;;  %v4462_v47 = vmul.f32 %v9604_v4, %v4413_v6  ;;  %6282 = vrcp.f32 %v4173_v48  ;;  %v4758_v10 = vsub.f32 0.0, %v4709_v19  ;;  %v4123_v0 = vmul.f32 0.3275911, %v9650_v1 }
 0x5fa   : > { %10457 = vst [vmem:[#allocation25_spill] sm:$0xff] %v9655_v54  ;;  %v9661_v63 = vpop.f32.mrf.mxu1  ;;  %v9663_v51 = vpop.eup %6274  ;;  %v5146_v23 = vadd.f32 %v6506_v34, %v5097_v14  ;;  %v4659_v40 = vmul.f32 %v9574_v53, %v4610_v28  ;;  %v9671_v29 = vsel %vm3972_vm12, 1.0, %v10453_v52  ;;  %v9674_v6 = vmul.f32 0.5, %v9548_v38 }
 0x5fb   : > { %10458 = vst [vmem:[#allocation22_spill] sm:$0xff] %v9661_v63  ;;  %v3591_v46 = vpop.f32.mrf.mxu0  ;;  %v6277_v27 = vpop.eup %6276  ;;  %v4511_v22 = vadd.f32 -0.28449672, %v4462_v47  ;;  %v4269_v48 = vmul.f32 1.0614054, %v9663_v51  ;;  %vm3975_vm13 = vcmp.ge.f32.partialorder %v9559_v17, 0.0  ;;  %6284 = vpow2.f32 %v4829_v41 }
 0x5fc   : > { %v3820_v11 = vpop.f32.mrf.mxu1  ;;  %5195 = vst.msk [vmem:[%s9144_s26 + $0x80] sm:$0xff] %vm842_vm3, %v5146_v23  ;;  %v4904_v53 = vmul.f32 %v6277_v27, %v4659_v40  ;;  %v4172_v19 = vadd.f32 1.0, %v4123_v0  ;;  %v9681_v14 = vmul.f32 0.70710677, %v9653_v61  ;;  %vm3974_vm14 = vcmp.ge.f32.partialorder %v9578_v43, 0.0 }
 0x5fd   : > { %v9683_v28 = vpop.f32.mrf.mxu0  ;;  %v4560_v30 = vmul.f32 %v9604_v4, %v4511_v22  ;;  %v4318_v47 = vadd.f32 -1.4531521, %v4269_v48  ;;  %v4827_v40 = vmul.f32 1.442695, %v4758_v10  ;;  %v9692_v0 = vmul.f32 0.70710677, %v9647_v62 }
 0x5fe   : > { %10459 = vst [vmem:[#allocation4_spill] sm:$0xff] %v9683_v28  ;;  %v9687_v38 = vpop.f32.mrf.mxu1  ;;  %v9689_v34 = vpop.eup %6278  ;;  %v4953_v23 = vsub.f32 1.0, %v4904_v53  ;;  %6286 = vrcp.f32 %v4172_v19  ;;  %v4712_v41 = vmul.f32 %v9626_v49, %v9626_v49  ;;  %v9702_v10 = vsel %vm3975_vm13, 1.0, %v10453_v52 }
 0x5ff   : > { %10460 = vst [vmem:[#allocation20_spill] sm:$0xff] %v9687_v38  ;;  %v3596_v46 = vpop.f32.mrf.mxu0  ;;  %v4609_v27 = vadd.f32 0.2548296, %v4560_v30  ;;  %v4367_v11 = vmul.f32 %v9663_v51, %v4318_v47  ;;  %v4268_v22 = vmul.f32 1.0614054, %v9689_v34  ;;  %v9705_v53 = vmul.f32 0.5, %v9566_v33 }
 0x600   : > { %v3823_v48 = vpop.f32.mrf.mxu1  ;;  %v5002_v28 = vmul.f32 %v4953_v23, %v9623_v18  ;;  %v4077_v19 = vand.u32 2147483647, %v9681_v14  ;;  %v6281_v47 = vpop.eup %6280  ;;  %v9714_v18 = vsel %vm3974_vm14, 1.0, %v10453_v52  ;;  %6288 = vpow2.f32 %v4827_v40 }
 0x601   : > { %v9708_v30 = vpop.f32.mrf.mxu0  ;;  %v4658_v46 = vmul.f32 %v9604_v4, %v4609_v27  ;;  %v4416_v63 = vadd.f32 1.4214138, %v4367_v11  ;;  %v4317_v49 = vadd.f32 -1.4531521, %v4268_v22  ;;  %v4076_v48 = vand.u32 2147483647, %v9692_v0 }
 0x602   : > { %10461 = vst [vmem:[#allocation30_spill] sm:$0xff] %v9708_v30  ;;  %v9716_v17 = vpop.f32.mrf.mxu1  ;;  %v5051_v23 = vadd.f32 1.0, %v5002_v28  ;;  %v4126_v33 = vmul.f32 0.3275911, %v4077_v19  ;;  %v4761_v27 = vsub.f32 0.0, %v4712_v41  ;;  %v4711_v22 = vmul.f32 %v9650_v1, %v9650_v1 }
 0x603   : > { %10462 = vst [vmem:[#allocation21_spill] sm:$0xff] %v9716_v17  ;;  %v3599_v39 = vpop.f32.mrf.mxu0  ;;  %v4903_v38 = vmul.f32 %v6281_v47, %v4658_v46  ;;  %v4465_v30 = vmul.f32 %v9663_v51, %v4416_v63  ;;  %v4366_v4 = vmul.f32 %v9689_v34, %v4317_v49  ;;  %v4125_v28 = vmul.f32 0.3275911, %v4076_v48  ;;  %v2737_v63 = vpop.permute.xlu1 %2736  ;;  %v6507_v46 = vld [vmem:[%s6613_s27 + $0x98] sm:$0xff] }
 0x604   : > { %v3828_v11 = vpop.f32.mrf.mxu1  ;;  %v5100_v43 = vmul.f32 %v5051_v23, %v9617_v37  ;;  %v4175_v17 = vadd.f32 1.0, %v4126_v33  ;;  %vm3977_vm15 = vcmp.ge.f32.partialorder %v9602_v3, 0.0  ;;  %v3534_v1 = vadd.f32 %v9392_v13, %v2737_v63 }
 0x605   : > { %v9724_v40 = vpop.f32.mrf.mxu0  ;;  %v4952_v54 = vsub.f32 1.0, %v4903_v38  ;;  %v4514_v16 = vadd.f32 -0.28449672, %v4465_v30  ;;  %v4415_v39 = vadd.f32 1.4214138, %v4366_v4  ;;  %v4174_v49 = vadd.f32 1.0, %v4125_v28 }
 0x606   : > { %10463 = vst [vmem:[#allocation29_spill] sm:$0xff] %v9724_v40  ;;  %v9727_v47 = vpop.f32.mrf.mxu1  ;;  %v9729_v41 = vpop.eup %6282  ;;  %v5149_v37 = vadd.f32 %v6507_v46, %v5100_v43  ;;  %6290 = vrcp.f32 %v4175_v17  ;;  %v4833_v40 = vmul.f32 1.442695, %v4761_v27  ;;  %v4714_v15 = vmul.f32 %v4077_v19, %v4077_v19 }
 0x607   : > { %10464 = vst [vmem:[#allocation2_spill] sm:$0xff] %v9727_v47  ;;  %v3604_v23 = vpop.f32.mrf.mxu0  ;;  %v5001_v33 = vmul.f32 %v4952_v54, %v9671_v29  ;;  %v4563_v38 = vmul.f32 %v9663_v51, %v4514_v16  ;;  %v4464_v30 = vmul.f32 %v9689_v34, %v4415_v39  ;;  %v4271_v4 = vmul.f32 1.0614054, %v9729_v41 }
 0x608   : > { %v3831_v11 = vpop.f32.mrf.mxu1  ;;  %5198 = vst.msk [vmem:[%s9144_s26 + $0x98] sm:$0xff] %vm842_vm3, %v5149_v37  ;;  %v4760_v47 = vsub.f32 0.0, %v4711_v22  ;;  %v9740_v17 = vadd.f32 %v9414_v59, %v3534_v1  ;;  %6292 = vrcp.f32 %v4174_v49  ;;  %v6285_v29 = vpop.eup %6284  ;;  %v9747_v39 = vmul.f32 0.5, %v9589_v35 }
 0x609   : > { %v9742_v43 = vpop.f32.mrf.mxu0  ;;  %v5050_v13 = vadd.f32 1.0, %v5001_v33  ;;  %v4612_v28 = vadd.f32 0.2548296, %v4563_v38  ;;  %v4513_v54 = vadd.f32 -0.28449672, %v4464_v30  ;;  %v9752_v19 = vsel %vm3977_vm15, 1.0, %v10453_v52  ;;  %v2732_v11 = vpop.permute.xlu0 %2731 }
 0x60a   : > { %v9744_v16 = vpop.f32.mrf.mxu1  ;;  %v4320_v59 = vadd.f32 -1.4531521, %v4271_v4  ;;  %v4713_v27 = vmul.f32 %v4076_v48, %v4076_v48  ;;  %v9760_v1 = vmul.f32 0.70710677, %v9740_v17  ;;  %6294 = vpow2.f32 %v4833_v40  ;;  %v6508_v33 = vld [vmem:[%s6613_s27 + $0x90] sm:$0xff] }
 0x60b   : > { %v3607_v22 = vpop.f32.mrf.mxu0  ;;  %v9754_v63 = vpop.eup %6286  ;;  %v5099_v46 = vmul.f32 %v5050_v13, %v9658_v20  ;;  %v4661_v37 = vmul.f32 %v9663_v51, %v4612_v28  ;;  %v4562_v49 = vmul.f32 %v9689_v34, %v4513_v54  ;;  %v4831_v48 = vmul.f32 1.442695, %v4760_v47 }
 0x60c   : > { %v3836_v35 = vpop.f32.mrf.mxu1  ;;  %v4369_v3 = vmul.f32 %v9729_v41, %v4320_v59  ;;  %v4270_v23 = vmul.f32 1.0614054, %v9754_v63  ;;  %v4763_v20 = vsub.f32 0.0, %v4714_v15  ;;  %v4762_v28 = vsub.f32 0.0, %v4713_v27 }
 0x60d   : > { %v5148_v38 = vadd.f32 %v6508_v33, %v5099_v46  ;;  %v4906_v30 = vmul.f32 %v6285_v29, %v4661_v37  ;;  %v4611_v4 = vadd.f32 0.2548296, %v4562_v49  ;;  %v3531_v54 = vadd.f32 %v9375_v58, %v2732_v11  ;;  %v6289_v22 = vpop.eup %6288  ;;  %v9773_v29 = vpop.f32.mrf.mxu0 }
 0x60e   : > { %v4418_v51 = vadd.f32 1.4214138, %v4369_v3  ;;  %v4319_v13 = vadd.f32 -1.4531521, %v4270_v23  ;;  %v9770_v59 = vmul.f32 0.5, %v9629_v5  ;;  %6296 = vpow2.f32 %v4831_v48  ;;  %v9780_v27 = vpop.f32.mrf.mxu1 }
 0x60f   : > { %5197 = vst.msk [vmem:[%s9144_s26 + $0x90] sm:$0xff] %vm842_vm3, %v5148_v38  ;;  %v4955_v35 = vsub.f32 1.0, %v4906_v30  ;;  %v4660_v40 = vmul.f32 %v9689_v34, %v4611_v4  ;;  %v4079_v47 = vand.u32 2147483647, %v9760_v1  ;;  %v9778_v58 = vadd.f32 %v9399_v31, %v3531_v54  ;;  %v3612_v3 = vpop.f32.mrf.mxu0  ;;  %v2747_v30 = vpop.permute.xlu1 %2746 }
 0x610   : > { %v4467_v15 = vmul.f32 %v9729_v41, %v4418_v51  ;;  %v4368_v46 = vmul.f32 %v9754_v63, %v4319_v13  ;;  %v4837_v49 = vmul.f32 1.442695, %v4763_v20  ;;  %v4835_v38 = vmul.f32 1.442695, %v4762_v28  ;;  %v3839_v4 = vpop.f32.mrf.mxu1 }
 0x611   : > { %v5004_v37 = vmul.f32 %v4955_v35, %v9702_v10  ;;  %v4905_v34 = vmul.f32 %v6289_v22, %v4660_v40  ;;  %v4128_v5 = vmul.f32 0.3275911, %v4079_v47  ;;  %v3542_v13 = vadd.f32 %v9430_v32, %v2747_v30  ;;  %v10465_v40 = vld [vmem:[#allocation13_spill] sm:$0xff] }
 0x612   : > { %v4516_v23 = vadd.f32 -0.28449672, %v4467_v15  ;;  %v4417_v33 = vadd.f32 1.4214138, %v4368_v46  ;;  %vm3976_vm0 = vcmp.ge.f32.partialorder %v9642_v55, 0.0  ;;  %vm3979_vm1 = vcmp.ge.f32.partialorder %v9681_v14, 0.0 }
 0x613   : > { %v9783_v11 = vpop.eup %6290  ;;  %v5053_v51 = vadd.f32 1.0, %v5004_v37  ;;  %v4954_v48 = vsub.f32 1.0, %v4905_v34  ;;  %v4177_v31 = vadd.f32 1.0, %v4128_v5  ;;  %v9791_v28 = vmul.f32 0.70710677, %v9778_v58  ;;  %v6509_v5 = vld [vmem:[%s6613_s27 + $0xa8] sm:$0xff] }
 0x614   : > { %v4565_v54 = vmul.f32 %v9729_v41, %v4516_v23  ;;  %v4466_v10 = vmul.f32 %v9754_v63, %v4417_v33  ;;  %v4273_v20 = vmul.f32 1.0614054, %v9783_v11  ;;  %v9796_v15 = vadd.f32 %v10465_v40, %v3542_v13 }
 0x615   : > { %v5102_v22 = vmul.f32 %v5053_v51, %v9674_v6  ;;  %v5003_v35 = vmul.f32 %v4954_v48, %v9714_v18  ;;  %6298 = vrcp.f32 %v4177_v31  ;;  %v9798_v32 = vpop.eup %6292  ;;  %v4078_v4 = vand.u32 2147483647, %v9791_v28 }
 0x616   : > { %v4614_v46 = vadd.f32 0.2548296, %v4565_v54  ;;  %v4515_v37 = vadd.f32 -0.28449672, %v4466_v10  ;;  %v4322_v34 = vadd.f32 -1.4531521, %v4273_v20  ;;  %6300 = vpow2.f32 %v4837_v49  ;;  %v2742_v20 = vpop.permute.xlu0 %2741 }
 0x617   : > { %v5151_v3 = vadd.f32 %v6509_v5, %v5102_v22  ;;  %v5052_v23 = vadd.f32 1.0, %v5003_v35  ;;  %v4272_v33 = vmul.f32 1.0614054, %v9798_v32  ;;  %v6295_v51 = vpop.eup %6294  ;;  %6302 = vpow2.f32 %v4835_v38  ;;  %v9812_v22 = vpop.f32.mrf.mxu0  ;;  %v6510_v35 = vld [vmem:[%s6613_s27 + $0xa0] sm:$0xff] }
 0x618   : > { %v4663_v6 = vmul.f32 %v9729_v41, %v4614_v46  ;;  %v4564_v18 = vmul.f32 %v9754_v63, %v4515_v37  ;;  %v4371_v30 = vmul.f32 %v9783_v11, %v4322_v34  ;;  %v9810_v49 = vmul.f32 0.70710677, %v9796_v15  ;;  %v10466_v34 = vld [vmem:[#allocation14_spill] sm:$0xff]  ;;  %v9817_v5 = vpop.f32.mrf.mxu1 }
 0x619   : > { %5200 = vst.msk [vmem:[%s9144_s26 + $0xa8] sm:$0xff] %vm842_vm3, %v5151_v3  ;;  %v5101_v48 = vmul.f32 %v5052_v23, %v9705_v53  ;;  %v4321_v31 = vadd.f32 -1.4531521, %v4272_v33  ;;  %v4127_v10 = vmul.f32 0.3275911, %v4078_v4  ;;  %v4716_v37 = vmul.f32 %v4079_v47, %v4079_v47  ;;  %v10467_v47 = vld [vmem:[#allocation31_spill] sm:$0xff] }
 0x61a   : > { %v4908_v13 = vmul.f32 %v6295_v51, %v4663_v6  ;;  %v4613_v54 = vadd.f32 0.2548296, %v4564_v18  ;;  %v4420_v41 = vadd.f32 1.4214138, %v4371_v30  ;;  %v3539_v53 = vadd.f32 %v10466_v34, %v2742_v20  ;;  %v3615_v6 = vpop.f32.mrf.mxu0 }
 0x61b   : > { %v5150_v40 = vadd.f32 %v6510_v35, %v5101_v48  ;;  %v4370_v46 = vmul.f32 %v9798_v32, %v4321_v31  ;;  %v4176_v33 = vadd.f32 1.0, %v4127_v10  ;;  %v6297_v18 = vpop.eup %6296  ;;  %v4081_v51 = vand.u32 2147483647, %v9810_v49  ;;  %v3844_v31 = vpop.f32.mrf.mxu1 }
 0x61c   : > { %v4957_v38 = vsub.f32 1.0, %v4908_v13  ;;  %v4662_v3 = vmul.f32 %v9754_v63, %v4613_v54  ;;  %v4469_v23 = vmul.f32 %v9783_v11, %v4420_v41  ;;  %v9826_v48 = vadd.f32 %v10467_v47, %v3539_v53  ;;  %v9837_v6 = vpop.f32.mrf.mxu0 }
 0x61d   : > { %5199 = vst.msk [vmem:[%s9144_s26 + $0xa0] sm:$0xff] %vm842_vm3, %v5150_v40  ;;  %v4419_v30 = vadd.f32 1.4214138, %v4370_v46  ;;  %6304 = vrcp.f32 %v4176_v33  ;;  %v4025_v54 = vsel %vm3976_vm0, 1.0, %v10453_v52  ;;  %v4765_v10 = vsub.f32 0.0, %v4716_v37  ;;  %10468 = vst [vmem:[#allocation18_spill] sm:$0xff] %v9837_v6  ;;  %v9845_v37 = vpop.f32.mrf.mxu1 }
 0x61e   : > { %v5006_v13 = vmul.f32 %v4957_v38, %v9752_v19  ;;  %v4907_v20 = vmul.f32 %v6297_v18, %v4662_v3  ;;  %v4518_v63 = vadd.f32 -0.28449672, %v4469_v23  ;;  %v4130_v35 = vmul.f32 0.3275911, %v4081_v51  ;;  %10469 = vst [vmem:[#allocation24_spill] sm:$0xff] %v9845_v37  ;;  %v3620_v47 = vpop.f32.mrf.mxu0 }
 0x61f   : > { %v4468_v41 = vmul.f32 %v9798_v32, %v4419_v30  ;;  %v9834_v34 = vmul.f32 0.5, %v9653_v61  ;;  %v4028_v19 = vsel %vm3979_vm1, 1.0, %v10453_v52  ;;  %v9843_v3 = vmul.f32 0.70710677, %v9826_v48 }
 0x620   : > { %v5055_v40 = vadd.f32 1.0, %v5006_v13  ;;  %v4956_v46 = vsub.f32 1.0, %v4907_v20  ;;  %v4567_v53 = vmul.f32 %v9783_v11, %v4518_v63  ;;  %v4179_v55 = vadd.f32 1.0, %v4130_v35  ;;  %v3847_v20 = vpop.f32.mrf.mxu1 }
 0x621   : > { %v4517_v38 = vadd.f32 -0.28449672, %v4468_v41  ;;  %v4715_v30 = vmul.f32 %v4078_v4, %v4078_v4  ;;  %v4841_v13 = vmul.f32 1.442695, %v4765_v10  ;;  %v6511_v41 = vld [vmem:[%s6613_s27 + $0xb8] sm:$0xff]  ;;  %vm3978_vm2 = vcmp.ge.f32.partialorder %v9692_v0, 0.0 }
 0x622   : > { %v9847_v23 = vpop.eup %6298  ;;  %v5104_v61 = vmul.f32 %v5055_v40, %v9747_v39  ;;  %v5005_v33 = vmul.f32 %v4956_v46, %v4025_v54  ;;  %v4616_v18 = vadd.f32 0.2548296, %v4567_v53  ;;  %6306 = vrcp.f32 %v4179_v55  ;;  %v3621_v39 = vpop.f32.mrf.mxu0  ;;  %v6512_v20 = vld [vmem:[%s6613_s27 + $0xb0] sm:$0xff] }
 0x623   : > { %v4566_v31 = vmul.f32 %v9798_v32, %v4517_v38  ;;  %v4275_v14 = vmul.f32 1.0614054, %v9847_v23  ;;  %v6301_v63 = vpop.eup %6300  ;;  %v4080_v40 = vand.u32 2147483647, %v9843_v3  ;;  %v2757_v46 = vpop.permute.xlu1 %2756  ;;  %6308 = vpow2.f32 %v4841_v13 }
 0x624   : > { %v5153_v35 = vadd.f32 %v6511_v41, %v5104_v61  ;;  %v5054_v6 = vadd.f32 1.0, %v5005_v33  ;;  %v4665_v37 = vmul.f32 %v9783_v11, %v4616_v18  ;;  %v9856_v53 = vpop.f32.mrf.mxu1  ;;  %v6303_v10 = vpop.eup %6302  ;;  %v4764_v61 = vsub.f32 0.0, %v4715_v30  ;;  %v10471_v30 = vld [vmem:[#allocation28_spill] sm:$0xff] }
 0x625   : > { %v4615_v54 = vadd.f32 0.2548296, %v4566_v31  ;;  %v4324_v4 = vadd.f32 -1.4531521, %v4275_v14  ;;  %10470 = vst [vmem:[#allocation16_spill] sm:$0xff] %v9856_v53  ;;  %v3550_v11 = vadd.f32 %v9465_v57, %v2757_v46  ;;  %v3622_v33 = vpop.f32.mrf.mxu0  ;;  %v4718_v53 = vmul.f32 %v4081_v51, %v4081_v51 }
 0x626   : > { %5202 = vst.msk [vmem:[%s9144_s26 + $0xb8] sm:$0xff] %vm842_vm3, %v5153_v35  ;;  %v5103_v38 = vmul.f32 %v5054_v6, %v9770_v59  ;;  %v4910_v55 = vmul.f32 %v6301_v63, %v4665_v37  ;;  %v4129_v31 = vmul.f32 0.3275911, %v4080_v40  ;;  %v3852_v14 = vpop.f32.mrf.mxu1  ;;  %v2752_v59 = vpop.permute.xlu0 %2751  ;;  %v3880_v13 = vmul.f32 0.5, %v9647_v62 }
 0x627   : > { %v4664_v18 = vmul.f32 %v9798_v32, %v4615_v54  ;;  %v4373_v47 = vmul.f32 %v9847_v23, %v4324_v4  ;;  %v9866_v35 = vadd.f32 %v9489_v25, %v3550_v11  ;;  %v3547_v63 = vadd.f32 %v10471_v30, %v2752_v59 }
 0x628   : > { %v5152_v41 = vadd.f32 %v6512_v20, %v5103_v38  ;;  %v4959_v39 = vsub.f32 1.0, %v4910_v55  ;;  %v4178_v57 = vadd.f32 1.0, %v4129_v31  ;;  %v3853_v32 = vpop.f32.mrf.mxu1  ;;  %v4839_v4 = vmul.f32 1.442695, %v4764_v61 }
 0x629   : > { %v4909_v6 = vmul.f32 %v6303_v10, %v4664_v18  ;;  %v4422_v37 = vadd.f32 1.4214138, %v4373_v47  ;;  %v9873_v46 = vmul.f32 0.70710677, %v9866_v35  ;;  %v9879_v10 = vadd.f32 %v9467_v56, %v3547_v63  ;;  %v2767_v32 = vpop.permute.xlu1 %2766 }
 0x62a   : > { %5201 = vst.msk [vmem:[%s9144_s26 + $0xb0] sm:$0xff] %vm842_vm3, %v5152_v41  ;;  %v5008_v54 = vmul.f32 %v4959_v39, %v4028_v19  ;;  %v9875_v51 = vpop.eup %6304  ;;  %6310 = vrcp.f32 %v4178_v57  ;;  %v3854_v55 = vpop.f32.mrf.mxu1  ;;  %v4027_v19 = vsel %vm3978_vm2, 1.0, %v10453_v52  ;;  %v9887_v18 = vmul.f32 0.5, %v9740_v17  ;;  %v6513_v17 = vld [vmem:[%s6613_s27 + $0xc8] sm:$0xff] }
 0x62b   : > { %v4958_v25 = vsub.f32 1.0, %v4909_v6  ;;  %v4471_v38 = vmul.f32 %v9847_v23, %v4422_v37  ;;  %v4274_v62 = vmul.f32 1.0614054, %v9875_v51  ;;  %v4083_v61 = vand.u32 2147483647, %v9873_v46  ;;  %v6514_v55 = vld [vmem:[%s6613_s27 + $0xc0] sm:$0xff] }
 0x62c   : > { %v5057_v11 = vadd.f32 1.0, %v5008_v54  ;;  %v4767_v31 = vsub.f32 0.0, %v4718_v53  ;;  %v4717_v20 = vmul.f32 %v4080_v40, %v4080_v40  ;;  %vm3981_vm4 = vcmp.ge.f32.partialorder %v9760_v1, 0.0 }
 0x62d   : > { %v5007_v33 = vmul.f32 %v4958_v25, %v4027_v19  ;;  %v4520_v47 = vadd.f32 -0.28449672, %v4471_v38  ;;  %v4323_v14 = vadd.f32 -1.4531521, %v4274_v62  ;;  %v4132_v41 = vmul.f32 0.3275911, %v4083_v61 }
 0x62e   : > { %v5106_v56 = vmul.f32 %v5057_v11, %v9834_v34  ;;  %v9893_v59 = vmul.f32 0.70710677, %v9879_v10  ;;  %6312 = vpow2.f32 %v4839_v4  ;;  %v4845_v63 = vmul.f32 1.442695, %v4767_v31 }
 0x62f   : > { %v5056_v39 = vadd.f32 1.0, %v5007_v33  ;;  %v4569_v0 = vmul.f32 %v9847_v23, %v4520_v47  ;;  %v9895_v6 = vpop.eup %6306  ;;  %v4372_v53 = vmul.f32 %v9875_v51, %v4323_v14  ;;  %v4181_v34 = vadd.f32 1.0, %v4132_v41 }
 0x630   : > { %v5155_v37 = vadd.f32 %v6513_v17, %v5106_v56  ;;  %v4277_v30 = vmul.f32 1.0614054, %v9895_v6  ;;  %v4766_v25 = vsub.f32 0.0, %v4717_v20  ;;  %v3558_v38 = vadd.f32 %v9503_v7, %v2767_v32  ;;  %v6309_v62 = vpop.eup %6308  ;;  %v2762_v20 = vpop.permute.xlu0 %2761 }
 0x631   : > { %v5105_v40 = vmul.f32 %v5056_v39, %v3880_v13  ;;  %v4618_v57 = vadd.f32 0.2548296, %v4569_v0  ;;  %v4421_v54 = vadd.f32 1.4214138, %v4372_v53  ;;  %6314 = vrcp.f32 %v4181_v34 }
 0x632   : > { %5204 = vst.msk [vmem:[%s9144_s26 + $0xc8] sm:$0xff] %vm842_vm3, %v5155_v37  ;;  %v4326_v4 = vadd.f32 -1.4531521, %v4277_v30  ;;  %v4082_v13 = vand.u32 2147483647, %v9893_v59  ;;  %v4030_v33 = vsel %vm3981_vm4, 1.0, %v10453_v52  ;;  %v9914_v56 = vadd.f32 %v9526_v2, %v3558_v38 }
 0x633   : > { %v5154_v11 = vadd.f32 %v6514_v55, %v5105_v40  ;;  %v4667_v19 = vmul.f32 %v9847_v23, %v4618_v57  ;;  %v9910_v47 = vmul.f32 0.5, %v9778_v58  ;;  %v4470_v31 = vmul.f32 %v9875_v51, %v4421_v54  ;;  %v2777_v55 = vpop.permute.xlu1 %2776 }
 0x634   : > { %v4375_v23 = vmul.f32 %v9895_v6, %v4326_v4  ;;  %6316 = vpow2.f32 %v4845_v63  ;;  %v4131_v14 = vmul.f32 0.3275911, %v4082_v13  ;;  %vm3980_vm5 = vcmp.ge.f32.partialorder %v9791_v28, 0.0 }
 0x635   : > { %5203 = vst.msk [vmem:[%s9144_s26 + $0xc0] sm:$0xff] %vm842_vm3, %v5154_v11  ;;  %v4912_v7 = vmul.f32 %v6309_v62, %v4667_v19  ;;  %v4519_v1 = vadd.f32 -0.28449672, %v4470_v31  ;;  %v9921_v41 = vmul.f32 0.70710677, %v9914_v56  ;;  %v3555_v58 = vadd.f32 %v9481_v42, %v2762_v20 }
 0x636   : > { %v4424_v0 = vadd.f32 1.4214138, %v4375_v23  ;;  %v4843_v2 = vmul.f32 1.442695, %v4766_v25  ;;  %v4180_v17 = vadd.f32 1.0, %v4131_v14  ;;  %v4720_v34 = vmul.f32 %v4083_v61, %v4083_v61 }
 0x637   : > { %v4961_v39 = vsub.f32 1.0, %v4912_v7  ;;  %v9924_v37 = vpop.eup %6310  ;;  %v4568_v53 = vmul.f32 %v9875_v51, %v4519_v1  ;;  %v4085_v40 = vand.u32 2147483647, %v9921_v41  ;;  %v9929_v57 = vadd.f32 %v9509_v26, %v3555_v58 }
 0x638   : > { %v4473_v63 = vmul.f32 %v9895_v6, %v4424_v0  ;;  %v4276_v32 = vmul.f32 1.0614054, %v9924_v37  ;;  %6318 = vrcp.f32 %v4180_v17  ;;  %v4029_v42 = vsel %vm3980_vm5, 1.0, %v10453_v52 }
 0x639   : > { %v5010_v30 = vmul.f32 %v4961_v39, %v4030_v33  ;;  %v4617_v54 = vadd.f32 0.2548296, %v4568_v53  ;;  %v9937_v25 = vmul.f32 0.5, %v9796_v15  ;;  %vm3983_vm6 = vcmp.ge.f32.partialorder %v9810_v49, 0.0 }
 0x63a   : > { %v4522_v38 = vadd.f32 -0.28449672, %v4473_v63  ;;  %v4325_v26 = vadd.f32 -1.4531521, %v4276_v32  ;;  %6320 = vpow2.f32 %v4843_v2  ;;  %v4769_v19 = vsub.f32 0.0, %v4720_v34 }
 0x63b   : > { %v5059_v61 = vadd.f32 1.0, %v5010_v30  ;;  %v4666_v11 = vmul.f32 %v9875_v51, %v4617_v54  ;;  %v4134_v4 = vmul.f32 0.3275911, %v4085_v40  ;;  %v3566_v62 = vadd.f32 %v9537_v9, %v2777_v55  ;;  %v6313_v28 = vpop.eup %6312  ;;  %v6515_v9 = vld [vmem:[%s6613_s27 + $0xd8] sm:$0xff] }
 0x63c   : > { %v4571_v15 = vmul.f32 %v9895_v6, %v4522_v38  ;;  %v4374_v31 = vmul.f32 %v9924_v37, %v4325_v26  ;;  %v9946_v7 = vmul.f32 0.70710677, %v9929_v57  ;;  %v4719_v14 = vmul.f32 %v4082_v13, %v4082_v13 }
 0x63d   : > { %v5108_v33 = vmul.f32 %v5059_v61, %v9887_v18  ;;  %v4911_v23 = vmul.f32 %v6313_v28, %v4666_v11  ;;  %v4183_v20 = vadd.f32 1.0, %v4134_v4  ;;  %v9949_v51 = vadd.f32 %v9561_v12, %v3566_v62 }
 0x63e   : > { %v9951_v1 = vpop.eup %6314  ;;  %v4620_v39 = vadd.f32 0.2548296, %v4571_v15  ;;  %v9955_v18 = vmul.f32 0.5, %v9826_v48  ;;  %v4423_v0 = vadd.f32 1.4214138, %v4374_v31  ;;  %v4032_v12 = vsel %vm3983_vm6, 1.0, %v10453_v52 }
 0x63f   : > { %v5157_v58 = vadd.f32 %v6515_v9, %v5108_v33  ;;  %v4960_v2 = vsub.f32 1.0, %v4911_v23  ;;  %v4279_v17 = vmul.f32 1.0614054, %v9951_v1  ;;  %v4849_v53 = vmul.f32 1.442695, %v4769_v19 }
 0x640   : > { %6322 = vrcp.f32 %v4183_v20  ;;  %v4669_v13 = vmul.f32 %v9895_v6, %v4620_v39  ;;  %v4472_v34 = vmul.f32 %v9924_v37, %v4423_v0  ;;  %v4084_v30 = vand.u32 2147483647, %v9946_v7  ;;  %v6516_v39 = vld [vmem:[%s6613_s27 + $0xd0] sm:$0xff] }
 0x641   : > { %5206 = vst.msk [vmem:[%s9144_s26 + $0xd8] sm:$0xff] %vm842_vm3, %v5157_v58  ;;  %v6317_v48 = vpop.eup %6316  ;;  %v5009_v63 = vmul.f32 %v4960_v2, %v4029_v42  ;;  %v4328_v32 = vadd.f32 -1.4531521, %v4279_v17  ;;  %v4768_v54 = vsub.f32 0.0, %v4719_v14  ;;  %v9967_v61 = vmul.f32 0.70710677, %v9949_v51 }
 0x642   : > { %v4914_v38 = vmul.f32 %v6317_v48, %v4669_v13  ;;  %vm3982_vm7 = vcmp.ge.f32.partialorder %v9843_v3, 0.0  ;;  %v4521_v26 = vadd.f32 -0.28449672, %v4472_v34  ;;  %v4133_v55 = vmul.f32 0.3275911, %v4084_v30 }
 0x643   : > { %v5058_v49 = vadd.f32 1.0, %v5009_v63  ;;  %v4377_v11 = vmul.f32 %v9951_v1, %v4328_v32  ;;  %6324 = vpow2.f32 %v4849_v53  ;;  %v4087_v6 = vand.u32 2147483647, %v9967_v61 }
 0x644   : > { %v4963_v19 = vsub.f32 1.0, %v4914_v38  ;;  %v4570_v42 = vmul.f32 %v9924_v37, %v4521_v26  ;;  %v4722_v4 = vmul.f32 %v4085_v40, %v4085_v40  ;;  %v4182_v62 = vadd.f32 1.0, %v4133_v55  ;;  %v2787_v26 = vpop.permute.xlu1 %2786 }
 0x645   : > { %v9973_v28 = vpop.eup %6318  ;;  %v5107_v33 = vmul.f32 %v5058_v49, %v9910_v47  ;;  %v4426_v15 = vadd.f32 1.4214138, %v4377_v11  ;;  %v4847_v31 = vmul.f32 1.442695, %v4768_v54  ;;  %v4136_v23 = vmul.f32 0.3275911, %v4087_v6 }
 0x646   : > { %v5012_v14 = vmul.f32 %v4963_v19, %v4032_v12  ;;  %v4619_v20 = vadd.f32 0.2548296, %v4570_v42  ;;  %v4278_v9 = vmul.f32 1.0614054, %v9973_v28  ;;  %6326 = vrcp.f32 %v4182_v62  ;;  %v2772_v12 = vpop.permute.xlu0 %2771 }
 0x647   : > { %v6321_v58 = vpop.eup %6320  ;;  %v5156_v0 = vadd.f32 %v6516_v39, %v5107_v33  ;;  %v4031_v40 = vsel %vm3982_vm7, 1.0, %v10453_v52  ;;  %v4475_v2 = vmul.f32 %v9951_v1, %v4426_v15  ;;  %v4185_v17 = vadd.f32 1.0, %v4136_v23 }
 0x648   : > { %v5061_v47 = vadd.f32 1.0, %v5012_v14  ;;  %v4668_v53 = vmul.f32 %v9924_v37, %v4619_v20  ;;  %v4327_v13 = vadd.f32 -1.4531521, %v4278_v9  ;;  %v4771_v34 = vsub.f32 0.0, %v4722_v4 }
 0x649   : > { %5205 = vst.msk [vmem:[%s9144_s26 + $0xd0] sm:$0xff] %vm842_vm3, %v5156_v0  ;;  %v4524_v48 = vadd.f32 -0.28449672, %v4475_v2  ;;  %6328 = vpow2.f32 %v4847_v31  ;;  %v4721_v63 = vmul.f32 %v4084_v30, %v4084_v30  ;;  %v3563_v32 = vadd.f32 %v9517_v21, %v2772_v12  ;;  %v6517_v21 = vld [vmem:[%s6613_s27 + $0xe8] sm:$0xff] }
 0x64a   : > { %v5110_v3 = vmul.f32 %v5061_v47, %v9937_v25  ;;  %v4913_v54 = vmul.f32 %v6321_v58, %v4668_v53  ;;  %v4376_v38 = vmul.f32 %v9973_v28, %v4327_v13  ;;  %6330 = vrcp.f32 %v4185_v17 }
 0x64b   : > { %vm3985_vm8 = vcmp.ge.f32.partialorder %v9873_v46, 0.0  ;;  %v4573_v37 = vmul.f32 %v9951_v1, %v4524_v48  ;;  %v9991_v55 = vadd.f32 %v9540_v36, %v3563_v32  ;;  %v3574_v49 = vadd.f32 %v9572_v8, %v2787_v26 }
 0x64c   : > { %v5159_v11 = vadd.f32 %v6517_v21, %v5110_v3  ;;  %v4962_v25 = vsub.f32 1.0, %v4913_v54  ;;  %v4425_v19 = vadd.f32 1.4214138, %v4376_v38  ;;  %v4853_v42 = vmul.f32 1.442695, %v4771_v34 }
 0x64d   : > { %v9994_v30 = vpop.eup %6322  ;;  %v4622_v4 = vadd.f32 0.2548296, %v4573_v37  ;;  %v4770_v33 = vsub.f32 0.0, %v4721_v63  ;;  %v9999_v15 = vadd.f32 %v9596_v50, %v3574_v49  ;;  %v3887_v31 = vmul.f32 0.5, %v9866_v35  ;;  %v6518_v63 = vld [vmem:[%s6613_s27 + $0xe0] sm:$0xff] }
 0x64e   : > { %v4281_v62 = vmul.f32 1.0614054, %v9994_v30  ;;  %5208 = vst.msk [vmem:[%s9144_s26 + $0xe8] sm:$0xff] %vm842_vm3, %v5159_v11  ;;  %v5011_v36 = vmul.f32 %v4962_v25, %v4031_v40  ;;  %v4474_v8 = vmul.f32 %v9973_v28, %v4425_v19  ;;  %v10006_v23 = vmul.f32 0.70710677, %v9991_v55  ;;  %v2782_v25 = vpop.permute.xlu0 %2781 }
 0x64f   : > { %v4034_v14 = vsel %vm3985_vm8, 1.0, %v10453_v52  ;;  %v4671_v20 = vmul.f32 %v9951_v1, %v4622_v4  ;;  %v4724_v58 = vmul.f32 %v4087_v6, %v4087_v6  ;;  %6332 = vpow2.f32 %v4853_v42 }
 0x650   : > { %v4330_v9 = vadd.f32 -1.4531521, %v4281_v62  ;;  %v6325_v50 = vpop.eup %6324  ;;  %v5060_v39 = vadd.f32 1.0, %v5011_v36  ;;  %v4523_v0 = vadd.f32 -0.28449672, %v4474_v8  ;;  %vm3984_vm9 = vcmp.ge.f32.partialorder %v9893_v59, 0.0 }
 0x651   : > { %v4086_v35 = vand.u32 2147483647, %v10006_v23  ;;  %v4916_v40 = vmul.f32 %v6325_v50, %v4671_v20  ;;  %v4851_v17 = vmul.f32 1.442695, %v4770_v33  ;;  %v10015_v47 = vmul.f32 0.70710677, %v9999_v15 }
 0x652   : > { %v4379_v2 = vmul.f32 %v9994_v30, %v4330_v9  ;;  %v5109_v46 = vmul.f32 %v5060_v39, %v9955_v18  ;;  %v4572_v1 = vmul.f32 %v9973_v28, %v4523_v0  ;;  %v4773_v12 = vsub.f32 0.0, %v4724_v58  ;;  %v2797_v9 = vpop.permute.xlu1 %2796 }
 0x653   : > { %v4135_v6 = vmul.f32 0.3275911, %v4086_v35  ;;  %v10020_v53 = vpop.eup %6326  ;;  %v4965_v13 = vsub.f32 1.0, %v4916_v40  ;;  %v4089_v48 = vand.u32 2147483647, %v10015_v47  ;;  %v4033_v59 = vsel %vm3984_vm9, 1.0, %v10453_v52 }
 0x654   : > { %v4428_v34 = vadd.f32 1.4214138, %v4379_v2  ;;  %v5158_v32 = vadd.f32 %v6518_v63, %v5109_v46  ;;  %v4621_v3 = vadd.f32 0.2548296, %v4572_v1  ;;  %v4280_v54 = vmul.f32 1.0614054, %v10020_v53 }
 0x655   : > { %v4184_v38 = vadd.f32 1.0, %v4135_v6  ;;  %v5014_v18 = vmul.f32 %v4965_v13, %v4034_v14  ;;  %6334 = vpow2.f32 %v4851_v17  ;;  %v4138_v11 = vmul.f32 0.3275911, %v4089_v48  ;;  %v6519_v17 = vld [vmem:[%s6613_s27 + $0xf8] sm:$0xff] }
 0x656   : > { %v4477_v26 = vmul.f32 %v9994_v30, %v4428_v34  ;;  %v6329_v37 = vpop.eup %6328  ;;  %5207 = vst.msk [vmem:[%s9144_s26 + $0xe0] sm:$0xff] %vm842_vm3, %v5158_v32  ;;  %v4670_v49 = vmul.f32 %v9973_v28, %v4621_v3  ;;  %v4329_v21 = vadd.f32 -1.4531521, %v4280_v54  ;;  %v4857_v62 = vmul.f32 1.442695, %v4773_v12 }
 0x657   : > { %6336 = vrcp.f32 %v4184_v38  ;;  %v10030_v19 = vpop.eup %6330  ;;  %v5063_v42 = vadd.f32 1.0, %v5014_v18  ;;  %v3571_v33 = vadd.f32 %v9554_v45, %v2782_v25  ;;  %v4187_v20 = vadd.f32 1.0, %v4138_v11  ;;  %v6520_v25 = vld [vmem:[%s6613_s27 + $0xf0] sm:$0xff] }
 0x658   : > { %v4526_v4 = vadd.f32 -0.28449672, %v4477_v26  ;;  %v4915_v36 = vmul.f32 %v6329_v37, %v4670_v49  ;;  %v4378_v8 = vmul.f32 %v10020_v53, %v4329_v21  ;;  %v4283_v14 = vmul.f32 1.0614054, %v10030_v19 }
 0x659   : > { %v5112_v28 = vmul.f32 %v5063_v42, %v3887_v31  ;;  %v4723_v50 = vmul.f32 %v4086_v35, %v4086_v35  ;;  %v3582_v39 = vadd.f32 %v9607_v60, %v2797_v9  ;;  %6338 = vrcp.f32 %v4187_v20 }
 0x65a   : > { %v4575_v58 = vmul.f32 %v9994_v30, %v4526_v4  ;;  %v4964_v0 = vsub.f32 1.0, %v4915_v36  ;;  %v4427_v40 = vadd.f32 1.4214138, %v4378_v8  ;;  %v4332_v2 = vadd.f32 -1.4531521, %v4283_v14 }
 0x65b   : > { %v5161_v45 = vadd.f32 %v6519_v17, %v5112_v28  ;;  %6340 = vpow2.f32 %v4857_v62  ;;  %v10039_v1 = vadd.f32 %v9581_v24, %v3571_v33  ;;  %v10044_v35 = vadd.f32 %v9638_v44, %v3582_v39 }
 0x65c   : > { %v4624_v46 = vadd.f32 0.2548296, %v4575_v58  ;;  %v5013_v6 = vmul.f32 %v4964_v0, %v4033_v59  ;;  %v4476_v31 = vmul.f32 %v10020_v53, %v4427_v40  ;;  %v4381_v13 = vmul.f32 %v10030_v19, %v4332_v2  ;;  %v6333_v60 = vpop.eup %6332  ;;  %v2792_v58 = vpop.permute.xlu0 %2791  ;;  %v10472_v0 = vld [vmem:[#allocation26_spill] sm:$0xff] }
 0x65d   : > { %5210 = vst.msk [vmem:[%s9144_s26 + $0xf8] sm:$0xff] %vm842_vm3, %v5161_v45  ;;  %v3886_v34 = vmul.f32 0.5, %v9879_v10  ;;  %vm3987_vm10 = vcmp.ge.f32.partialorder %v9921_v41, 0.0  ;;  %v10052_v24 = vmul.f32 0.70710677, %v10039_v1  ;;  %v4772_v54 = vsub.f32 0.0, %v4723_v50 }
 0x65e   : > { %v4673_v12 = vmul.f32 %v9994_v30, %v4624_v46  ;;  %v5062_v63 = vadd.f32 1.0, %v5013_v6  ;;  %v4525_v32 = vadd.f32 -0.28449672, %v4476_v31  ;;  %v4430_v3 = vadd.f32 1.4214138, %v4381_v13  ;;  %v10473_v13 = vld [vmem:[#allocation27_spill] sm:$0xff] }
 0x65f   : > { %v4726_v44 = vmul.f32 %v4089_v48, %v4089_v48  ;;  %v4088_v18 = vand.u32 2147483647, %v10052_v24  ;;  %v10056_v59 = vmul.f32 0.70710677, %v10044_v35  ;;  %v3889_v41 = vmul.f32 0.5, %v9914_v56 }
 0x660   : > { %v4918_v38 = vmul.f32 %v6333_v60, %v4673_v12  ;;  %v5111_v10 = vmul.f32 %v5062_v63, %v3886_v34  ;;  %v4574_v30 = vmul.f32 %v10020_v53, %v4525_v32  ;;  %v4479_v26 = vmul.f32 %v10030_v19, %v4430_v3 }
 0x661   : > { %v4036_v37 = vsel %vm3987_vm10, 1.0, %v10453_v52  ;;  %v3888_v21 = vmul.f32 0.5, %v9929_v57  ;;  %v4137_v11 = vmul.f32 0.3275911, %v4088_v18  ;;  %v4855_v33 = vmul.f32 1.442695, %v4772_v54 }
 0x662   : > { %v4967_v49 = vsub.f32 1.0, %v4918_v38  ;;  %v6335_v48 = vpop.eup %6334  ;;  %v5160_v42 = vadd.f32 %v6520_v25, %v5111_v10  ;;  %v4623_v4 = vadd.f32 0.2548296, %v4574_v30  ;;  %v4528_v62 = vadd.f32 -0.28449672, %v4479_v26  ;;  %v6521_v54 = vld [vmem:[%s6613_s27 + $0x108] sm:$0xff] }
 0x663   : > { %v4775_v8 = vsub.f32 0.0, %v4726_v44  ;;  %v4186_v14 = vadd.f32 1.0, %v4137_v11  ;;  %v4091_v20 = vand.u32 2147483647, %v10056_v59  ;;  %vm3986_vm11 = vcmp.ge.f32.partialorder %v9946_v7, 0.0  ;;  %v10474_v11 = vld [vmem:[#allocation25_spill] sm:$0xff] }
 0x664   : > { %v10064_v36 = vpop.eup %6336  ;;  %v5016_v56 = vmul.f32 %v4967_v49, %v4036_v37  ;;  %5209 = vst.msk [vmem:[%s9144_s26 + $0xf0] sm:$0xff] %vm842_vm3, %v5160_v42  ;;  %v4672_v57 = vmul.f32 %v10020_v53, %v4623_v4  ;;  %v4577_v9 = vmul.f32 %v10030_v19, %v4528_v62  ;;  %v3579_v40 = vadd.f32 %v10472_v0, %v2792_v58  ;;  %v2807_v37 = vpop.permute.xlu1 %2806 }
 0x665   : > { %v4282_v28 = vmul.f32 1.0614054, %v10064_v36  ;;  %6342 = vrcp.f32 %v4186_v14  ;;  %v4140_v39 = vmul.f32 0.3275911, %v4091_v20  ;;  %v4861_v31 = vmul.f32 1.442695, %v4775_v8  ;;  %v2802_v58 = vpop.permute.xlu0 %2801 }
 0x666   : > { %v5065_v50 = vadd.f32 1.0, %v5016_v56  ;;  %v4917_v2 = vmul.f32 %v6335_v48, %v4672_v57  ;;  %v4626_v17 = vadd.f32 0.2548296, %v4577_v9  ;;  %6344 = vpow2.f32 %v4855_v33  ;;  %v10074_v46 = vpop.eup %6338 }
 0x667   : > { %v4331_v45 = vadd.f32 -1.4531521, %v4282_v28  ;;  %v4189_v53 = vadd.f32 1.0, %v4140_v39  ;;  %v10077_v60 = vadd.f32 %v10473_v13, %v3579_v40  ;;  %v4285_v3 = vmul.f32 1.0614054, %v10074_v46  ;;  %v10476_v40 = vld [vmem:[#allocation3_spill] sm:$0xff] }
 0x668   : > { %v5114_v6 = vmul.f32 %v5065_v50, %v3889_v41  ;;  %v6341_v34 = vpop.eup %6340  ;;  %v4966_v12 = vsub.f32 1.0, %v4917_v2  ;;  %v4675_v63 = vmul.f32 %v10030_v19, %v4626_v17  ;;  %v4035_v44 = vsel %vm3986_vm11, 1.0, %v10453_v52 }
 0x669   : > { %v4380_v32 = vmul.f32 %v10064_v36, %v4331_v45  ;;  %vm3989_vm12 = vcmp.ge.f32.partialorder %v9967_v61, 0.0  ;;  %6346 = vrcp.f32 %v4189_v53  ;;  %v4334_v26 = vadd.f32 -1.4531521, %v4285_v3  ;;  %v6522_v61 = vld [vmem:[%s6613_s27 + $0x100] sm:$0xff] }
 0x66a   : > { %v5163_v38 = vadd.f32 %v6521_v54, %v5114_v6  ;;  %v5015_v10 = vmul.f32 %v4966_v12, %v4035_v44  ;;  %v4920_v41 = vmul.f32 %v6341_v34, %v4675_v63  ;;  %6348 = vpow2.f32 %v4861_v31  ;;  %v10477_v63 = vld [vmem:[#allocation22_spill] sm:$0xff]  ;;  %v6523_v44 = vld [vmem:[%s6613_s27 + $0x118] sm:$0xff] }
 0x66b   : > { %v4429_v30 = vadd.f32 1.4214138, %v4380_v32  ;;  %v4725_v19 = vmul.f32 %v4088_v18, %v4088_v18  ;;  %v10090_v49 = vmul.f32 0.70710677, %v10077_v60  ;;  %v3590_v48 = vadd.f32 %v10474_v11, %v2807_v37  ;;  %v10475_v18 = vld [vmem:[#allocation20_spill] sm:$0xff] }
 0x66c   : > { %5212 = vst.msk [vmem:[%s9144_s26 + $0x108] sm:$0xff] %vm842_vm3, %v5163_v38  ;;  %v5064_v25 = vadd.f32 1.0, %v5015_v10  ;;  %v4969_v7 = vsub.f32 1.0, %v4920_v41  ;;  %v4383_v4 = vmul.f32 %v10074_v46, %v4334_v26  ;;  %v4038_v62 = vsel %vm3989_vm12, 1.0, %v10453_v52 }
 0x66d   : > { %v4478_v42 = vmul.f32 %v10064_v36, %v4429_v30  ;;  %v4728_v33 = vmul.f32 %v4091_v20, %v4091_v20  ;;  %v4090_v56 = vand.u32 2147483647, %v10090_v49  ;;  %v10100_v8 = vadd.f32 %v10475_v18, %v3590_v48 }
 0x66e   : > { %v5113_v14 = vmul.f32 %v5064_v25, %v3888_v21  ;;  %v5018_v57 = vmul.f32 %v4969_v7, %v4038_v62  ;;  %v4432_v28 = vadd.f32 1.4214138, %v4383_v4  ;;  %v3891_v50 = vmul.f32 0.5, %v9949_v51 }
 0x66f   : > { %v4527_v9 = vadd.f32 -0.28449672, %v4478_v42  ;;  %v4774_v39 = vsub.f32 0.0, %v4725_v19  ;;  %v4139_v0 = vmul.f32 0.3275911, %v4090_v56  ;;  %v3587_v2 = vadd.f32 %v10476_v40, %v2802_v58 }
 0x670   : > { %v5162_v17 = vadd.f32 %v6522_v61, %v5113_v14  ;;  %v5067_v20 = vadd.f32 1.0, %v5018_v57  ;;  %v4481_v6 = vmul.f32 %v10074_v46, %v4432_v28  ;;  %vm3988_vm13 = vcmp.ge.f32.partialorder %v10006_v23, 0.0 }
 0x671   : > { %v4576_v45 = vmul.f32 %v10064_v36, %v4527_v9  ;;  %v4777_v21 = vsub.f32 0.0, %v4728_v33  ;;  %v4188_v31 = vadd.f32 1.0, %v4139_v0  ;;  %v10109_v53 = vmul.f32 0.70710677, %v10100_v8  ;;  %v2817_v9 = vpop.permute.xlu1 %2816 }
 0x672   : > { %v10111_v51 = vpop.eup %6342  ;;  %5211 = vst.msk [vmem:[%s9144_s26 + $0x100] sm:$0xff] %vm842_vm3, %v5162_v17  ;;  %v5116_v13 = vmul.f32 %v5067_v20, %v3891_v50  ;;  %v4530_v12 = vadd.f32 -0.28449672, %v4481_v6  ;;  %v10116_v32 = vadd.f32 %v10477_v63, %v3587_v2  ;;  %v4859_v38 = vmul.f32 1.442695, %v4774_v39  ;;  %v10478_v39 = vld [vmem:[#allocation30_spill] sm:$0xff] }
 0x673   : > { %v4625_v34 = vadd.f32 0.2548296, %v4576_v45  ;;  %v6345_v3 = vpop.eup %6344  ;;  %v4284_v54 = vmul.f32 1.0614054, %v10111_v51  ;;  %6350 = vrcp.f32 %v4188_v31  ;;  %v3890_v41 = vmul.f32 0.5, %v9991_v55  ;;  %v10479_v45 = vld [vmem:[#allocation2_spill] sm:$0xff] }
 0x674   : > { %v5165_v10 = vadd.f32 %v6523_v44, %v5116_v13  ;;  %v4579_v26 = vmul.f32 %v10074_v46, %v4530_v12  ;;  %v4037_v37 = vsel %vm3988_vm13, 1.0, %v10453_v52  ;;  %vm3991_vm14 = vcmp.ge.f32.partialorder %v10015_v47, 0.0 }
 0x675   : > { %v4674_v30 = vmul.f32 %v10064_v36, %v4625_v34  ;;  %v4333_v19 = vadd.f32 -1.4531521, %v4284_v54  ;;  %v4093_v11 = vand.u32 2147483647, %v10109_v53  ;;  %v4865_v55 = vmul.f32 1.442695, %v4777_v21 }
 0x676   : > { %v10128_v48 = vpop.eup %6346  ;;  %5214 = vst.msk [vmem:[%s9144_s26 + $0x118] sm:$0xff] %vm842_vm3, %v5165_v10  ;;  %v4628_v7 = vadd.f32 0.2548296, %v4579_v26  ;;  %v10133_v36 = vmul.f32 0.70710677, %v10116_v32  ;;  %6352 = vpow2.f32 %v4859_v38  ;;  %v4727_v14 = vmul.f32 %v4090_v56, %v4090_v56  ;;  %v2812_v38 = vpop.permute.xlu0 %2811  ;;  %v10480_v26 = vld [vmem:[#allocation4_spill] sm:$0xff] }
 0x677   : > { %v4919_v25 = vmul.f32 %v6345_v3, %v4674_v30  ;;  %v4382_v42 = vmul.f32 %v10111_v51, %v4333_v19  ;;  %v4287_v23 = vmul.f32 1.0614054, %v10128_v48  ;;  %v4142_v4 = vmul.f32 0.3275911, %v4093_v11  ;;  %v6349_v62 = vpop.eup %6348  ;;  %v6524_v19 = vld [vmem:[%s6613_s27 + $0x110] sm:$0xff] }
 0x678   : > { %v4677_v18 = vmul.f32 %v10074_v46, %v4628_v7  ;;  %v4092_v57 = vand.u32 2147483647, %v10133_v36  ;;  %v3598_v0 = vadd.f32 %v10478_v39, %v2817_v9  ;;  %6354 = vpow2.f32 %v4865_v55  ;;  %v6525_v39 = vld [vmem:[%s6613_s27 + $0x128] sm:$0xff] }
 0x679   : > { %v4968_v33 = vsub.f32 1.0, %v4919_v25  ;;  %v4431_v28 = vadd.f32 1.4214138, %v4382_v42  ;;  %v4336_v58 = vadd.f32 -1.4531521, %v4287_v23  ;;  %v4191_v50 = vadd.f32 1.0, %v4142_v4 }
 0x67a   : > { %v4922_v2 = vmul.f32 %v6349_v62, %v4677_v18  ;;  %v4141_v61 = vmul.f32 0.3275911, %v4092_v57  ;;  %v10143_v46 = vadd.f32 %v10479_v45, %v3598_v0  ;;  %v4776_v21 = vsub.f32 0.0, %v4727_v14  ;;  %v10481_v4 = vld [vmem:[#allocation21_spill] sm:$0xff] }
 0x67b   : > { %v5017_v40 = vmul.f32 %v4968_v33, %v4037_v37  ;;  %v4480_v17 = vmul.f32 %v10111_v51, %v4431_v28  ;;  %v4385_v20 = vmul.f32 %v10128_v48, %v4336_v58  ;;  %6356 = vrcp.f32 %v4191_v50 }
 0x67c   : > { %v4971_v6 = vsub.f32 1.0, %v4922_v2  ;;  %v4190_v31 = vadd.f32 1.0, %v4141_v61  ;;  %v4040_v13 = vsel %vm3991_vm14, 1.0, %v10453_v52  ;;  %v3893_v3 = vmul.f32 0.5, %v9999_v15 }
 0x67d   : > { %v5066_v56 = vadd.f32 1.0, %v5017_v40  ;;  %v4529_v34 = vadd.f32 -0.28449672, %v4480_v17  ;;  %v4434_v12 = vadd.f32 1.4214138, %v4385_v20  ;;  %v3595_v37 = vadd.f32 %v10480_v26, %v2812_v38  ;;  %v2827_v20 = vpop.permute.xlu1 %2826 }
 0x67e   : > { %v5020_v54 = vmul.f32 %v4971_v6, %v4040_v13  ;;  %6358 = vrcp.f32 %v4190_v31  ;;  %v10152_v30 = vmul.f32 0.70710677, %v10143_v46  ;;  %v4863_v7 = vmul.f32 1.442695, %v4776_v21 }
 0x67f   : > { %v5115_v63 = vmul.f32 %v5066_v56, %v3890_v41  ;;  %v4578_v44 = vmul.f32 %v10111_v51, %v4529_v34  ;;  %v4483_v10 = vmul.f32 %v10128_v48, %v4434_v12  ;;  %v4730_v15 = vmul.f32 %v4093_v11, %v4093_v11 }
 0x680   : > { %v10155_v47 = vpop.eup %6350  ;;  %v5069_v41 = vadd.f32 1.0, %v5020_v54  ;;  %v10160_v62 = vadd.f32 %v10481_v4, %v3595_v37  ;;  %v3892_v18 = vmul.f32 0.5, %v10039_v1  ;;  %v4729_v14 = vmul.f32 %v4092_v57, %v4092_v57 }
 0x681   : > { %v5164_v25 = vadd.f32 %v6524_v19, %v5115_v63  ;;  %v4627_v55 = vadd.f32 0.2548296, %v4578_v44  ;;  %v4532_v42 = vadd.f32 -0.28449672, %v4483_v10  ;;  %v4286_v23 = vmul.f32 1.0614054, %v10155_v47 }
 0x682   : > { %v5118_v33 = vmul.f32 %v5069_v41, %v3893_v3  ;;  %v4095_v9 = vand.u32 2147483647, %v10152_v30  ;;  %vm3990_vm15 = vcmp.ge.f32.partialorder %v10052_v24, 0.0  ;;  %6360 = vpow2.f32 %v4863_v7 }
 0x683   : > { %5213 = vst.msk [vmem:[%s9144_s26 + $0x110] sm:$0xff] %vm842_vm3, %v5164_v25  ;;  %v4676_v11 = vmul.f32 %v10111_v51, %v4627_v55  ;;  %v4581_v28 = vmul.f32 %v10128_v48, %v4532_v42  ;;  %v4335_v58 = vadd.f32 -1.4531521, %v4286_v23  ;;  %v6353_v50 = vpop.eup %6352  ;;  %v4779_v40 = vsub.f32 0.0, %v4730_v15 }
 0x684   : > { %v5167_v0 = vadd.f32 %v6525_v39, %v5118_v33  ;;  %v4144_v2 = vmul.f32 0.3275911, %v4095_v9  ;;  %v10172_v57 = vmul.f32 0.70710677, %v10160_v62  ;;  %v4039_v51 = vsel %vm3990_vm15, 1.0, %v10453_v52  ;;  %v2822_v33 = vpop.permute.xlu0 %2821 }
 0x685   : > { %v4921_v61 = vmul.f32 %v6353_v50, %v4676_v11  ;;  %v4630_v17 = vadd.f32 0.2548296, %v4581_v28  ;;  %v4384_v1 = vmul.f32 %v10155_v47, %v4335_v58  ;;  %v4778_v45 = vsub.f32 0.0, %v4729_v14  ;;  %v6355_v21 = vpop.eup %6354  ;;  %v10482_v28 = vld [vmem:[#allocation29_spill] sm:$0xff]  ;;  %v6526_v50 = vld [vmem:[%s6613_s27 + $0x120] sm:$0xff] }
 0x686   : > { %5216 = vst.msk [vmem:[%s9144_s26 + $0x128] sm:$0xff] %vm842_vm3, %v5167_v0  ;;  %v4193_v56 = vadd.f32 1.0, %v4144_v2  ;;  %v3606_v6 = vadd.f32 %v9742_v43, %v2827_v20  ;;  %vm3993_vm0 = vcmp.ge.f32.partialorder %v10056_v59, 0.0  ;;  %v4869_v63 = vmul.f32 1.442695, %v4779_v40 }
 0x687   : > { %v4970_v31 = vsub.f32 1.0, %v4921_v61  ;;  %v4679_v13 = vmul.f32 %v10128_v48, %v4630_v17  ;;  %v4433_v34 = vadd.f32 1.4214138, %v4384_v1  ;;  %v4094_v3 = vand.u32 2147483647, %v10172_v57 }
 0x688   : > { %v10182_v12 = vpop.eup %6356  ;;  %6362 = vrcp.f32 %v4193_v56  ;;  %v10186_v24 = vadd.f32 %v9780_v27, %v3606_v6  ;;  %v3895_v59 = vmul.f32 0.5, %v10044_v35  ;;  %v4042_v48 = vsel %vm3993_vm0, 1.0, %v10453_v52 }
 0x689   : > { %v5019_v54 = vmul.f32 %v4970_v31, %v4039_v51  ;;  %v4924_v38 = vmul.f32 %v6355_v21, %v4679_v13  ;;  %v4482_v43 = vmul.f32 %v10155_v47, %v4433_v34  ;;  %v4289_v44 = vmul.f32 1.0614054, %v10182_v12  ;;  %v6527_v21 = vld [vmem:[%s6613_s27 + $0x138] sm:$0xff] }
 0x68a   : > { %v4867_v10 = vmul.f32 1.442695, %v4778_v45  ;;  %v4143_v26 = vmul.f32 0.3275911, %v4094_v3  ;;  %6364 = vpow2.f32 %v4869_v63  ;;  %v10196_v55 = vmul.f32 0.70710677, %v10186_v24 }
 0x68b   : > { %v10192_v37 = vpop.eup %6358  ;;  %v5068_v19 = vadd.f32 1.0, %v5019_v54  ;;  %v4973_v25 = vsub.f32 1.0, %v4924_v38  ;;  %v4531_v41 = vadd.f32 -0.28449672, %v4482_v43  ;;  %v4338_v27 = vadd.f32 -1.4531521, %v4289_v44 }
 0x68c   : > { %v4288_v7 = vmul.f32 1.0614054, %v10192_v37  ;;  %v4192_v15 = vadd.f32 1.0, %v4143_v26  ;;  %v4732_v11 = vmul.f32 %v4095_v9, %v4095_v9  ;;  %v3603_v58 = vadd.f32 %v10482_v28, %v2822_v33 }
 0x68d   : > { %v5117_v42 = vmul.f32 %v5068_v19, %v3892_v18  ;;  %v5022_v35 = vmul.f32 %v4973_v25, %v4042_v48  ;;  %v4580_v23 = vmul.f32 %v10155_v47, %v4531_v41  ;;  %v4387_v4 = vmul.f32 %v10182_v12, %v4338_v27  ;;  %v2832_v27 = vpop.permute.xlu0 %2831 }
 0x68e   : > { %v4337_v14 = vadd.f32 -1.4531521, %v4288_v7  ;;  %6366 = vrcp.f32 %v4192_v15  ;;  %vm3992_vm1 = vcmp.ge.f32.partialorder %v10090_v49, 0.0  ;;  %v4097_v61 = vand.u32 2147483647, %v10196_v55 }
 0x68f   : > { %v5166_v39 = vadd.f32 %v6526_v50, %v5117_v42  ;;  %v5071_v0 = vadd.f32 1.0, %v5022_v35  ;;  %v4629_v40 = vadd.f32 0.2548296, %v4580_v23  ;;  %v4436_v2 = vadd.f32 1.4214138, %v4387_v4  ;;  %v6361_v17 = vpop.eup %6360  ;;  %v2837_v42 = vpop.permute.xlu1 %2836 }
 0x690   : > { %v4386_v18 = vmul.f32 %v10192_v37, %v4337_v14  ;;  %6368 = vpow2.f32 %v4867_v10  ;;  %v10210_v51 = vadd.f32 %v9744_v16, %v3603_v58  ;;  %vm3995_vm2 = vcmp.ge.f32.partialorder %v10109_v53, 0.0 }
 0x691   : > { %5215 = vst.msk [vmem:[%s9144_s26 + $0x120] sm:$0xff] %vm842_vm3, %v5166_v39  ;;  %v5120_v9 = vmul.f32 %v5071_v0, %v3895_v59  ;;  %v4678_v1 = vmul.f32 %v10155_v47, %v4629_v40  ;;  %v4485_v20 = vmul.f32 %v10182_v12, %v4436_v2  ;;  %v4781_v56 = vsub.f32 0.0, %v4732_v11  ;;  %v10483_v2 = vld [vmem:[#allocation24_spill] sm:$0xff] }
 0x692   : > { %v4435_v45 = vadd.f32 1.4214138, %v4386_v18  ;;  %v4146_v6 = vmul.f32 0.3275911, %v4097_v61  ;;  %v4731_v63 = vmul.f32 %v4094_v3, %v4094_v3  ;;  %v3894_v54 = vmul.f32 0.5, %v10077_v60 }
 0x693   : > { %v5169_v31 = vadd.f32 %v6527_v21, %v5120_v9  ;;  %v4923_v13 = vmul.f32 %v6361_v17, %v4678_v1  ;;  %v4534_v34 = vadd.f32 -0.28449672, %v4485_v20  ;;  %v10217_v43 = vmul.f32 0.70710677, %v10210_v51  ;;  %v6528_v1 = vld [vmem:[%s6613_s27 + $0x130] sm:$0xff] }
 0x694   : > { %v4484_v47 = vmul.f32 %v10192_v37, %v4435_v45  ;;  %v4195_v38 = vadd.f32 1.0, %v4146_v6  ;;  %v4041_v44 = vsel %vm3992_vm1, 1.0, %v10453_v52  ;;  %v4044_v3 = vsel %vm3995_vm2, 1.0, %v10453_v52 }
 0x695   : > { %v10219_v16 = vpop.eup %6362  ;;  %5218 = vst.msk [vmem:[%s9144_s26 + $0x138] sm:$0xff] %vm842_vm3, %v5169_v31  ;;  %v4972_v59 = vsub.f32 1.0, %v4923_v13  ;;  %v4583_v60 = vmul.f32 %v10182_v12, %v4534_v34  ;;  %vm3994_vm4 = vcmp.ge.f32.partialorder %v10133_v36, 0.0  ;;  %v4873_v26 = vmul.f32 1.442695, %v4781_v56 }
 0x696   : > { %v4533_v48 = vadd.f32 -0.28449672, %v4484_v47  ;;  %v4291_v10 = vmul.f32 1.0614054, %v10219_v16  ;;  %6370 = vrcp.f32 %v4195_v38  ;;  %v4780_v41 = vsub.f32 0.0, %v4731_v63 }
 0x697   : > { %v5021_v19 = vmul.f32 %v4972_v59, %v4041_v44  ;;  %v4632_v25 = vadd.f32 0.2548296, %v4583_v60  ;;  %v4096_v49 = vand.u32 2147483647, %v10217_v43  ;;  %v4734_v53 = vmul.f32 %v4097_v61, %v4097_v61  ;;  %v6365_v23 = vpop.eup %6364 }
 0x698   : > { %v4582_v7 = vmul.f32 %v10192_v37, %v4533_v48  ;;  %v4340_v15 = vadd.f32 -1.4531521, %v4291_v10  ;;  %v3611_v35 = vadd.f32 %v9773_v29, %v2832_v27  ;;  %v3614_v11 = vadd.f32 %v9812_v22, %v2837_v42 }
 0x699   : > { %v5070_v4 = vadd.f32 1.0, %v5021_v19  ;;  %v4681_v33 = vmul.f32 %v10182_v12, %v4632_v25  ;;  %v4145_v14 = vmul.f32 0.3275911, %v4096_v49  ;;  %6372 = vpow2.f32 %v4873_v26 }
 0x69a   : > { %v4631_v28 = vadd.f32 0.2548296, %v4582_v7  ;;  %v4389_v58 = vmul.f32 %v10219_v16, %v4340_v15  ;;  %v10239_v50 = vadd.f32 %v9817_v5, %v3611_v35  ;;  %v10244_v18 = vadd.f32 %v10483_v2, %v3614_v11  ;;  %v2842_v11 = vpop.permute.xlu0 %2841  ;;  %v6530_v2 = vld [vmem:[%s6613_s27 + $0x140] sm:$0xff] }
 0x69b   : > { %v10241_v39 = vpop.eup %6366  ;;  %v5119_v0 = vmul.f32 %v5070_v4, %v3894_v54  ;;  %v4926_v40 = vmul.f32 %v6365_v23, %v4681_v33  ;;  %v4194_v29 = vadd.f32 1.0, %v4145_v14  ;;  %v4871_v17 = vmul.f32 1.442695, %v4780_v41 }
 0x69c   : > { %v4680_v12 = vmul.f32 %v10192_v37, %v4631_v28  ;;  %v4438_v61 = vadd.f32 1.4214138, %v4389_v58  ;;  %v4290_v22 = vmul.f32 1.0614054, %v10241_v39  ;;  %v4783_v45 = vsub.f32 0.0, %v4734_v53  ;;  %v6529_v53 = vld [vmem:[%s6613_s27 + $0x148] sm:$0xff] }
 0x69d   : > { %v6369_v9 = vpop.eup %6368  ;;  %v5168_v20 = vadd.f32 %v6528_v1, %v5119_v0  ;;  %v4975_v5 = vsub.f32 1.0, %v4926_v40  ;;  %6374 = vrcp.f32 %v4194_v29  ;;  %v10251_v31 = vmul.f32 0.70710677, %v10239_v50  ;;  %v10484_v40 = vld [vmem:[#allocation18_spill] sm:$0xff] }
 0x69e   : > { %v4925_v56 = vmul.f32 %v6369_v9, %v4680_v12  ;;  %v4487_v6 = vmul.f32 %v10219_v16, %v4438_v61  ;;  %v4339_v21 = vadd.f32 -1.4531521, %v4290_v22  ;;  %v3897_v37 = vmul.f32 0.5, %v10100_v8 }
 0x69f   : > { %5217 = vst.msk [vmem:[%s9144_s26 + $0x130] sm:$0xff] %vm842_vm3, %v5168_v20  ;;  %v5024_v13 = vmul.f32 %v4975_v5, %v4044_v3  ;;  %v3896_v34 = vmul.f32 0.5, %v10116_v32  ;;  %v10258_v63 = vmul.f32 0.70710677, %v10244_v18  ;;  %6376 = vpow2.f32 %v4871_v17 }
 0x6a0   : > { %v4974_v54 = vsub.f32 1.0, %v4925_v56  ;;  %v4536_v47 = vadd.f32 -0.28449672, %v4487_v6  ;;  %v4388_v38 = vmul.f32 %v10241_v39, %v4339_v21  ;;  %v4043_v59 = vsel %vm3994_vm4, 1.0, %v10453_v52 }
 0x6a1   : > { %v5073_v44 = vadd.f32 1.0, %v5024_v13  ;;  %v4877_v60 = vmul.f32 1.442695, %v4783_v45  ;;  %v4098_v8 = vand.u32 2147483647, %v10251_v31  ;;  %vm3997_vm5 = vcmp.ge.f32.partialorder %v10152_v30, 0.0 }
 0x6a2   : > { %v5023_v3 = vmul.f32 %v4974_v54, %v4043_v59  ;;  %v4585_v32 = vmul.f32 %v10219_v16, %v4536_v47  ;;  %v4437_v48 = vadd.f32 1.4214138, %v4388_v38  ;;  %v4733_v19 = vmul.f32 %v4096_v49, %v4096_v49 }
 0x6a3   : > { %v10267_v10 = vpop.eup %6370  ;;  %v5122_v26 = vmul.f32 %v5073_v44, %v3897_v37  ;;  %v4147_v25 = vmul.f32 0.3275911, %v4098_v8  ;;  %v4099_v41 = vand.u32 2147483647, %v10258_v63  ;;  %6378 = vpow2.f32 %v4877_v60 }
 0x6a4   : > { %v5072_v36 = vadd.f32 1.0, %v5023_v3  ;;  %v4634_v27 = vadd.f32 0.2548296, %v4585_v32  ;;  %v4486_v7 = vmul.f32 %v10241_v39, %v4437_v48  ;;  %v4293_v15 = vmul.f32 1.0614054, %v10267_v10 }
 0x6a5   : > { %v5171_v42 = vadd.f32 %v6529_v53, %v5122_v26  ;;  %v4196_v35 = vadd.f32 1.0, %v4147_v25  ;;  %v4148_v23 = vmul.f32 0.3275911, %v4099_v41  ;;  %v4782_v58 = vsub.f32 0.0, %v4733_v19 }
 0x6a6   : > { %v5121_v4 = vmul.f32 %v5072_v36, %v3896_v34  ;;  %v4683_v33 = vmul.f32 %v10219_v16, %v4634_v27  ;;  %v4535_v49 = vadd.f32 -0.28449672, %v4486_v7  ;;  %v4342_v14 = vadd.f32 -1.4531521, %v4293_v15  ;;  %v6373_v28 = vpop.eup %6372  ;;  %v10485_v16 = vld [vmem:[#allocation16_spill] sm:$0xff] }
 0x6a7   : > { %5220 = vst.msk [vmem:[%s9144_s26 + $0x148] sm:$0xff] %vm842_vm3, %v5171_v42  ;;  %6380 = vrcp.f32 %v4196_v35  ;;  %v4197_v0 = vadd.f32 1.0, %v4148_v23  ;;  %v3619_v29 = vadd.f32 %v10484_v40, %v2842_v11  ;;  %v4046_v56 = vsel %vm3997_vm5, 1.0, %v10453_v52 }
 0x6a8   : > { %v5170_v12 = vadd.f32 %v6530_v2, %v5121_v4  ;;  %v4928_v61 = vmul.f32 %v6373_v28, %v4683_v33  ;;  %v4584_v22 = vmul.f32 %v10241_v39, %v4535_v49  ;;  %v4391_v17 = vmul.f32 %v10267_v10, %v4342_v14 }
 0x6a9   : > { %v10281_v9 = vadd.f32 %v10485_v16, %v3619_v29  ;;  %6382 = vrcp.f32 %v4197_v0  ;;  %v4875_v21 = vmul.f32 1.442695, %v4782_v58  ;;  %v3899_v38 = vmul.f32 0.5, %v10143_v46 }
 0x6aa   : > { %v10283_v1 = vpop.eup %6374  ;;  %5219 = vst.msk [vmem:[%s9144_s26 + $0x140] sm:$0xff] %vm842_vm3, %v5170_v12  ;;  %v4977_v20 = vsub.f32 1.0, %v4928_v61  ;;  %v4633_v5 = vadd.f32 0.2548296, %v4584_v22  ;;  %v4440_v45 = vadd.f32 1.4214138, %v4391_v17  ;;  %v4735_v59 = vmul.f32 %v4098_v8, %v4098_v8 }
 0x6ab   : > { %v4292_v6 = vmul.f32 1.0614054, %v10283_v1  ;;  %v10294_v54 = vmul.f32 0.70710677, %v10281_v9  ;;  %vm3996_vm6 = vcmp.ge.f32.partialorder %v10172_v57, 0.0  ;;  %6384 = vpow2.f32 %v4875_v21  ;;  %v6531_v57 = vld [vmem:[%s6613_s27 + $0x158] sm:$0xff] }
 0x6ac   : > { %v5026_v37 = vmul.f32 %v4977_v20, %v4046_v56  ;;  %v4682_v13 = vmul.f32 %v10241_v39, %v4633_v5  ;;  %v4489_v34 = vmul.f32 %v10267_v10, %v4440_v45  ;;  %v6377_v47 = vpop.eup %6376  ;;  %v4736_v25 = vmul.f32 %v4099_v41, %v4099_v41  ;;  %v6532_v61 = vld [vmem:[%s6613_s27 + $0x150] sm:$0xff] }
 0x6ad   : > { %v4341_v44 = vadd.f32 -1.4531521, %v4292_v6  ;;  %v4100_v39 = vand.u32 2147483647, %v10294_v54  ;;  %v4045_v46 = vsel %vm3996_vm6, 1.0, %v10453_v52  ;;  %v4784_v36 = vsub.f32 0.0, %v4735_v59 }
 0x6ae   : > { %v5075_v60 = vadd.f32 1.0, %v5026_v37  ;;  %v4927_v30 = vmul.f32 %v6377_v47, %v4682_v13  ;;  %v4538_v3 = vadd.f32 -0.28449672, %v4489_v34  ;;  %v3898_v33 = vmul.f32 0.5, %v10160_v62 }
 0x6af   : > { %v4390_v32 = vmul.f32 %v10283_v1, %v4341_v44  ;;  %v4149_v27 = vmul.f32 0.3275911, %v4100_v39  ;;  %v4785_v14 = vsub.f32 0.0, %v4736_v25  ;;  %v4879_v58 = vmul.f32 1.442695, %v4784_v36 }
 0x6b0   : > { %v5124_v48 = vmul.f32 %v5075_v60, %v3899_v38  ;;  %v4976_v26 = vsub.f32 1.0, %v4927_v30  ;;  %v4587_v19 = vmul.f32 %v10267_v10, %v4538_v3  ;;  %v6379_v7 = vpop.eup %6378  ;;  %vm3999_vm7 = vcmp.ge.f32.partialorder %v10196_v55, 0.0 }
 0x6b1   : > { %v4439_v8 = vadd.f32 1.4214138, %v4390_v32  ;;  %v4198_v23 = vadd.f32 1.0, %v4149_v27  ;;  %v4881_v16 = vmul.f32 1.442695, %v4785_v14  ;;  %v4737_v55 = vmul.f32 %v4100_v39, %v4100_v39  ;;  %v6533_v39 = vld [vmem:[%s6613_s27 + $0x168] sm:$0xff] }
 0x6b2   : > { %v5173_v15 = vadd.f32 %v6531_v57, %v5124_v48  ;;  %v5025_v53 = vmul.f32 %v4976_v26, %v4045_v46  ;;  %v4636_v42 = vadd.f32 0.2548296, %v4587_v19  ;;  %v3901_v13 = vmul.f32 0.5, %v10186_v24 }
 0x6b3   : > { %v4488_v35 = vmul.f32 %v10283_v1, %v4439_v8  ;;  %6386 = vrcp.f32 %v4198_v23  ;;  %vm3998_vm8 = vcmp.ge.f32.partialorder %v10217_v43, 0.0  ;;  %v4786_v30 = vsub.f32 0.0, %v4737_v55 }
 0x6b4   : > { %v6381_v4 = vpop.eup %6380  ;;  %5222 = vst.msk [vmem:[%s9144_s26 + $0x158] sm:$0xff] %vm842_vm3, %v5173_v15  ;;  %v5074_v41 = vadd.f32 1.0, %v5025_v53  ;;  %v4685_v49 = vmul.f32 %v10267_v10, %v4636_v42  ;;  %v4048_v10 = vsel %vm3999_vm7, 1.0, %v10453_v52  ;;  %6388 = vpow2.f32 %v4879_v58 }
 0x6b5   : > { %v4537_v11 = vadd.f32 -0.28449672, %v4488_v35  ;;  %v4294_v28 = vmul.f32 1.0614054, %v6381_v4  ;;  %6390 = vpow2.f32 %v4881_v16  ;;  %v4883_v43 = vmul.f32 1.442695, %v4786_v30 }
 0x6b6   : > { %v5123_v0 = vmul.f32 %v5074_v41, %v3898_v33  ;;  %v4930_v40 = vmul.f32 %v6379_v7, %v4685_v49  ;;  %v6383_v29 = vpop.eup %6382  ;;  %v3900_v8 = vmul.f32 0.5, %v10210_v51  ;;  %vm4000_vm9 = vcmp.ge.f32.partialorder %v10251_v31, 0.0  ;;  %v6534_v33 = vld [vmem:[%s6613_s27 + $0x160] sm:$0xff] }
 0x6b7   : > { %v4586_v2 = vmul.f32 %v10283_v1, %v4537_v11  ;;  %v4343_v12 = vadd.f32 -1.4531521, %v4294_v28  ;;  %v4295_v17 = vmul.f32 1.0614054, %v6383_v29  ;;  %6392 = vpow2.f32 %v4883_v43 }
 0x6b8   : > { %v5172_v22 = vadd.f32 %v6532_v61, %v5123_v0  ;;  %v4979_v62 = vsub.f32 1.0, %v4930_v40  ;;  %v6385_v37 = vpop.eup %6384  ;;  %v4049_v0 = vsel %vm4000_vm9, 1.0, %v10453_v52  ;;  %vm4001_vm10 = vcmp.ge.f32.partialorder %v10258_v63, 0.0  ;;  %v6535_v63 = vld [vmem:[%s6613_s27 + $0x170] sm:$0xff] }
 0x6b9   : > { %v4635_v20 = vadd.f32 0.2548296, %v4586_v2  ;;  %v4392_v5 = vmul.f32 %v6381_v4, %v4343_v12  ;;  %v4344_v56 = vadd.f32 -1.4531521, %v4295_v17  ;;  %v3902_v12 = vmul.f32 0.5, %v10239_v50 }
 0x6ba   : > { %5221 = vst.msk [vmem:[%s9144_s26 + $0x150] sm:$0xff] %vm842_vm3, %v5172_v22  ;;  %v5028_v45 = vmul.f32 %v4979_v62, %v4048_v10  ;;  %v3903_v10 = vmul.f32 0.5, %v10244_v18  ;;  %vm4002_vm11 = vcmp.ge.f32.partialorder %v10294_v54, 0.0  ;;  %vm5227_vm12 = vcmask 816128  }
 0x6bb   : > { %v4684_v6 = vmul.f32 %v10283_v1, %v4635_v20  ;;  %v4441_v21 = vadd.f32 1.4214138, %v4392_v5  ;;  %v4393_v47 = vmul.f32 %v6383_v29, %v4344_v56  ;;  %v4047_v1 = vsel %vm3998_vm8, 1.0, %v10453_v52 }
 0x6bc   : > { %v5077_v34 = vadd.f32 1.0, %v5028_v45  ;;  %v4051_v18 = vsel %vm4002_vm11, 1.0, %v10453_v52 }
 0x6bd   : > { %v4929_v38 = vmul.f32 %v6385_v37, %v4684_v6  ;;  %v4490_v44 = vmul.f32 %v6381_v4, %v4441_v21  ;;  %v4442_v60 = vadd.f32 1.4214138, %v4393_v47  ;;  %v6536_v6 = vld [vmem:[%s6613_s27 + $0x178] sm:$0xff]  ;;  %v3904_v47 = vmul.f32 0.5, %v10281_v9 }
 0x6be   : > { %v5126_v59 = vmul.f32 %v5077_v34, %v3901_v13 }
 0x6bf   : > { %v4978_v3 = vsub.f32 1.0, %v4929_v38  ;;  %v4539_v32 = vadd.f32 -0.28449672, %v4490_v44  ;;  %v4491_v26 = vmul.f32 %v6383_v29, %v4442_v60 }
 0x6c0   : > { %v5175_v48 = vadd.f32 %v6533_v39, %v5126_v59  ;;  %v6387_v25 = vpop.eup %6386  ;;  %v6537_v59 = vld [vmem:[%s6613_s27 + $0x180] sm:$0x3f] }
 0x6c1   : > { %v5027_v19 = vmul.f32 %v4978_v3, %v4047_v1  ;;  %v4588_v24 = vmul.f32 %v6381_v4, %v4539_v32  ;;  %v4540_v46 = vadd.f32 -0.28449672, %v4491_v26  ;;  %v4296_v7 = vmul.f32 1.0614054, %v6387_v25  ;;  %v6389_v35 = vpop.eup %6388 }
 0x6c2   : > { %5224 = vst.msk [vmem:[%s9144_s26 + $0x168] sm:$0xff] %vm842_vm3, %v5175_v48  ;;  %v6391_v28 = vpop.eup %6390 }
 0x6c3   : > { %v5076_v36 = vadd.f32 1.0, %v5027_v19  ;;  %v4637_v27 = vadd.f32 0.2548296, %v4588_v24  ;;  %v4589_v57 = vmul.f32 %v6383_v29, %v4540_v46  ;;  %v4345_v42 = vadd.f32 -1.4531521, %v4296_v7 }
 0x6c4   : > { %v6393_v55 = vpop.eup %6392 }
 0x6c5   : > { %v5125_v15 = vmul.f32 %v5076_v36, %v3900_v8  ;;  %v4686_v53 = vmul.f32 %v6381_v4, %v4637_v27  ;;  %v4638_v23 = vadd.f32 0.2548296, %v4589_v57  ;;  %v4394_v14 = vmul.f32 %v6387_v25, %v4345_v42 }
 0x6c7   : > { %v5174_v41 = vadd.f32 %v6534_v33, %v5125_v15  ;;  %v4931_v49 = vmul.f32 %v6389_v35, %v4686_v53  ;;  %v4687_v11 = vmul.f32 %v6383_v29, %v4638_v23  ;;  %v4443_v58 = vadd.f32 1.4214138, %v4394_v14 }
 0x6c8   : > { %v4050_v29 = vsel %vm4001_vm10, 1.0, %v10453_v52 }
 0x6c9   : > { %5223 = vst.msk [vmem:[%s9144_s26 + $0x160] sm:$0xff] %vm842_vm3, %v5174_v41  ;;  %v4980_v51 = vsub.f32 1.0, %v4931_v49  ;;  %v4932_v4 = vmul.f32 %v6391_v28, %v4687_v11  ;;  %v4492_v31 = vmul.f32 %v6387_v25, %v4443_v58 }
 0x6cb   : > { %v5029_v40 = vmul.f32 %v4980_v51, %v4049_v0  ;;  %v4981_v2 = vsub.f32 1.0, %v4932_v4  ;;  %v4541_v22 = vadd.f32 -0.28449672, %v4492_v31 }
 0x6cd   : > { %v5078_v61 = vadd.f32 1.0, %v5029_v40  ;;  %v5030_v62 = vmul.f32 %v4981_v2, %v4050_v29  ;;  %v4590_v16 = vmul.f32 %v6387_v25, %v4541_v22 }
 0x6cf   : > { %v5127_v17 = vmul.f32 %v5078_v61, %v3902_v12  ;;  %v5079_v20 = vadd.f32 1.0, %v5030_v62  ;;  %v4639_v45 = vadd.f32 0.2548296, %v4590_v16 }
 0x6d1   : > { %v5176_v5 = vadd.f32 %v6535_v63, %v5127_v17  ;;  %v5128_v56 = vmul.f32 %v5079_v20, %v3903_v10  ;;  %v4688_v50 = vmul.f32 %v6387_v25, %v4639_v45 }
 0x6d3   : > { %5225 = vst.msk [vmem:[%s9144_s26 + $0x170] sm:$0xff] %vm842_vm3, %v5176_v5  ;;  %v5177_v21 = vadd.f32 %v6536_v6, %v5128_v56  ;;  %v4933_v37 = vmul.f32 %v6393_v55, %v4688_v50 }
 0x6d5   : > { %5226 = vst.msk [vmem:[%s9144_s26 + $0x178] sm:$0xff] %vm842_vm3, %v5177_v21  ;;  %v4982_v13 = vsub.f32 1.0, %v4933_v37 }
 0x6d7   : > { %v5031_v34 = vmul.f32 %v4982_v13, %v4051_v18 }
 0x6d9   : > { %v5080_v38 = vadd.f32 1.0, %v5031_v34 }
 0x6db   : > { %v5129_v44 = vmul.f32 %v5080_v38, %v3904_v47 }
 0x6dd   : > { %v5178_v60 = vadd.f32 %v6537_v59, %v5129_v44 }
 0x6df   : > { %5228 = vst.msk [vmem:[%s9144_s26 + $0x180] sm:$0x3f] %vm5227_vm12, %v5178_v60 }
 0x6e0 PF: > { %s15_s18 = sadd.s32 1, %s6544_s18  }
 0x6e1   : > { %p12_p4 = scmp.ge.s32.totalorder %s15_s18, 4  }
 0x6e3   :  { %14 = sbr.rel (!%p12_p4) target bundleno = 1 (0x1), region = 70 }

</bundles_post_ra>
